<compile_context>
chip_gen: v5e
topology: v5e:2x2
jax: 0.10.0
libtpu: 0.0.40
codegen_flags: <defaults>
</compile_context>

<pallas_src>
import functools

import jax
import jax.numpy as jnp
from jax import lax
from jax.experimental import pallas as pl
from jax.experimental.pallas import tpu as pltpu


# ---------------------------------------------------------------------------
# Fused bidirectional GRU layer kernel (one time chunk per grid step)
# ---------------------------------------------------------------------------
def _bigru_layer_kernel(*refs, S, Tc, B, H, write_seq):
    """One grid step = one time chunk, both directions.

    Inputs (in order):
      xs_f[0..S-1]   (Tc*B, D_s)  forward-time chunk i of each input stream
      xs_b[0..S-1]   (Tc*B, D_s)  chunk (Nc-1-i) of each input stream (for the bwd dir)
      wih_f[0..S-1]  (D_s, 3H)    bf16, input->gates weights split per stream (fwd)
      wih_b[0..S-1]  (D_s, 3H)    bf16 (bwd)
      whh_f, whh_b   (H, 3H)      bf16 hidden->gates weights
      bx_f, bx_b     (1, 3H)      f32 combined input-side bias (r,z: b_ih+b_hh, n: b_ih)
      bhn_f, bhn_b   (1, H)       f32 n-gate hidden bias (stays inside r*(...))
    Outputs:
      [seq_f (Tc*B,H) blk i, seq_b (Tc*B,H) blk Nc-1-i,]  hfin_f (B,H), hfin_b (B,H)
    Scratch:
      h_f, h_b       (B, H) f32   persistent hidden-state carry across grid steps
      gx_f, gx_b     (Tc*B, 3H)   f32 hoisted per-chunk input projections
    """
    idx = 0
    xs_f = refs[idx:idx + S]; idx += S
    xs_b = refs[idx:idx + S]; idx += S
    wih_f = refs[idx:idx + S]; idx += S
    wih_b = refs[idx:idx + S]; idx += S
    (whh_f_ref, whh_b_ref, bx_f_ref, bx_b_ref,
     bhn_f_ref, bhn_b_ref) = refs[idx:idx + 6]; idx += 6
    if write_seq:
        seq_f_ref, seq_b_ref, hfin_f_ref, hfin_b_ref = refs[idx:idx + 4]; idx += 4
    else:
        hfin_f_ref, hfin_b_ref = refs[idx:idx + 2]; idx += 2
    h_f_ref, h_b_ref, gxf_ref, gxb_ref = refs[idx:idx + 4]

    i = pl.program_id(0)
    last = pl.num_programs(0) - 1

    @pl.when(i == 0)
    def _init():
        h_f_ref[...] = jnp.zeros_like(h_f_ref)
        h_b_ref[...] = jnp.zeros_like(h_b_ref)

    # ---- hoisted input projection: one big MXU matmul per stream per direction ----
    def chunk_proj(x_refs, w_refs, b_ref, out_ref):
        acc = None
        for xr, wr in zip(x_refs, w_refs):
            xm = xr[...].astype(wr.dtype)                       # bf16 for the MXU
            p = jnp.dot(xm, wr[...], preferred_element_type=jnp.float32)
            acc = p if acc is None else acc + p
        out_ref[...] = acc + b_ref[...].astype(jnp.float32)     # (Tc*B, 3H) f32

    chunk_proj(xs_f, wih_f, bx_f_ref, gxf_ref)
    chunk_proj(xs_b, wih_b, bx_b_ref, gxb_ref)

    whh_f = whh_f_ref[...]
    whh_b = whh_b_ref[...]
    bhn_f = bhn_f_ref[...].astype(jnp.float32)
    bhn_b = bhn_b_ref[...].astype(jnp.float32)

    # NOTE: for real workloads choose H as a multiple of 128 (and B a multiple of 8)
    # so these gate slices / stores are lane-dense, unmasked vector ops.
    def gru_update(gx, gh, bhn, h):
        r = jax.nn.sigmoid(gx[:, 0:H] + gh[:, 0:H])
        z = jax.nn.sigmoid(gx[:, H:2 * H] + gh[:, H:2 * H])
        n = jnp.tanh(gx[:, 2 * H:3 * H] + r * (gh[:, 2 * H:3 * H] + bhn))
        return (1.0 - z) * n + z * h

    # ---- recurrence: only gh = h @ W_hh remains on the serial chain; the two
    #      directions' MXU / VPU / EUP work is interleaved every step.
    def step(t, carry):
        hf, hb = carry
        tb = Tc - 1 - t                                          # bwd dir walks the chunk backwards
        gh_f = jnp.dot(hf.astype(whh_f.dtype), whh_f,
                       preferred_element_type=jnp.float32)
        gh_b = jnp.dot(hb.astype(whh_b.dtype), whh_b,
                       preferred_element_type=jnp.float32)
        rf = pl.multiple_of(t * B, B)
        rb = pl.multiple_of(tb * B, B)
        hf_new = gru_update(gxf_ref[pl.ds(rf, B), :], gh_f, bhn_f, hf)
        hb_new = gru_update(gxb_ref[pl.ds(rb, B), :], gh_b, bhn_b, hb)
        if write_seq:
            seq_f_ref[pl.ds(rf, B), :] = hf_new.astype(seq_f_ref.dtype)
            seq_b_ref[pl.ds(rb, B), :] = hb_new.astype(seq_b_ref.dtype)
        return hf_new, hb_new

    hf_fin, hb_fin = lax.fori_loop(0, Tc, step, (h_f_ref[...], h_b_ref[...]),
                                   unroll=(Tc <= 8))
    h_f_ref[...] = hf_fin
    h_b_ref[...] = hb_fin

    @pl.when(i == last)
    def _finalize():
        hfin_f_ref[...] = hf_fin.astype(hfin_f_ref.dtype)
        hfin_b_ref[...] = hb_fin.astype(hfin_b_ref.dtype)


def _pick_time_chunk(T, B, target):
    """Largest divisor of T <= target such that the (Tc*B, D) block is sublane-aligned."""
    for tc in range(min(target, T), 0, -1):
        if T % tc == 0 and (tc * B) % 8 == 0:
            return tc
    return T  # single chunk: block == full array, always a legal BlockSpec


def _run_bigru_layer(streams, lp, *, T, B, H, Tc, write_seq, out_dtype):
    """streams: list of flattened time-major (T*B, D_s) arrays (the implicit concat
    of the previous layer's fwd/bwd outputs, or the layer-0 input)."""
    S = len(streams)
    Nc = T // Tc
    TB = Tc * B

    kernel = functools.partial(_bigru_layer_kernel, S=S, Tc=Tc, B=B, H=H,
                               write_seq=write_seq)

    def fwd_map(i):
        return (i, 0)

    def bwd_map(i, _n=Nc):
        return (_n - 1 - i, 0)

    def const_map(i):
        return (0, 0)

    inputs, in_specs = [], []
    for s in streams:                                   # forward-time chunk views
        inputs.append(s)
        in_specs.append(pl.BlockSpec((TB, s.shape[-1]), fwd_map))
    for s in streams:                                   # reversed chunk views (same arrays)
        inputs.append(s)
        in_specs.append(pl.BlockSpec((TB, s.shape[-1]), bwd_map))
    for d in ("fwd", "bwd"):                            # per-stream input->gate weights
        for w in lp[d]["wih"]:
            inputs.append(w)
            in_specs.append(pl.BlockSpec(w.shape, const_map))
    for name in ("whh", "bx", "bhn"):                   # hidden weights + biases
        for d in ("fwd", "bwd"):
            inputs.append(lp[d][name])
            in_specs.append(pl.BlockSpec(lp[d][name].shape, const_map))

    if write_seq:
        out_shape = (jax.ShapeDtypeStruct((T * B, H), out_dtype),
                     jax.ShapeDtypeStruct((T * B, H), out_dtype),
                     jax.ShapeDtypeStruct((B, H), out_dtype),
                     jax.ShapeDtypeStruct((B, H), out_dtype))
        out_specs = (pl.BlockSpec((TB, H), fwd_map),
                     pl.BlockSpec((TB, H), bwd_map),
                     pl.BlockSpec((B, H), const_map),
                     pl.BlockSpec((B, H), const_map))
    else:
        out_shape = (jax.ShapeDtypeStruct((B, H), out_dtype),
                     jax.ShapeDtypeStruct((B, H), out_dtype))
        out_specs = (pl.BlockSpec((B, H), const_map),
                     pl.BlockSpec((B, H), const_map))

    scratch_shapes = [
        pltpu.VMEM((B, H), jnp.float32),        # h_f carry
        pltpu.VMEM((B, H), jnp.float32),        # h_b carry
        pltpu.VMEM((TB, 3 * H), jnp.float32),   # hoisted gx (fwd chunk)
        pltpu.VMEM((TB, 3 * H), jnp.float32),   # hoisted gx (bwd chunk)
    ]

    return pl.pallas_call(
        kernel,
        out_shape=out_shape,
        grid=(Nc,),
        in_specs=in_specs,
        out_specs=out_specs,
        scratch_shapes=scratch_shapes,
        compiler_params=pltpu.CompilerParams(
            dimension_semantics=("arbitrary",),          # h carried across time chunks
            vmem_limit_bytes=32 * 1024 * 1024),
    )(*inputs)


# ---------------------------------------------------------------------------
# Parameters (PyTorch nn.GRU layout) and one-time preparation
# ---------------------------------------------------------------------------
def init_gru_params(key, input_size, hidden_size, num_layers, bidirectional=True):
    num_dir = 2 if bidirectional else 1
    k = 1.0 / float(hidden_size) ** 0.5
    params = {}
    for layer in range(num_layers):
        d_in = input_size if layer == 0 else hidden_size * num_dir
        for d in range(num_dir):
            key, k1, k2, k3, k4 = jax.random.split(key, 5)
            params[(layer, d)] = dict(
                w_ih=jax.random.uniform(k1, (3 * hidden_size, d_in), jnp.float32, -k, k),
                w_hh=jax.random.uniform(k2, (3 * hidden_size, hidden_size), jnp.float32, -k, k),
                b_ih=jax.random.uniform(k3, (3 * hidden_size,), jnp.float32, -k, k),
                b_hh=jax.random.uniform(k4, (3 * hidden_size,), jnp.float32, -k, k),
            )
    return params


def prepare_params(raw, input_size, hidden_size, num_layers, mxu_dtype=jnp.bfloat16):
    """Pre-transpose weights (-> (D,3H)/(H,3H) bf16), split W_ih per input stream,
    and pre-combine the r/z biases. Done once, outside the per-call path."""
    H = hidden_size
    prepared = []
    for layer in range(num_layers):
        splits = (input_size,) if layer == 0 else (H, H)   # layer>0 input = [seq_fwd, seq_bwd]
        layer_p = {}
        for d, name in enumerate(("fwd", "bwd")):
            p = raw[(layer, d)]
            wih_t = jnp.transpose(p["w_ih"], (1, 0)).astype(mxu_dtype)   # (D_in, 3H)
            offs, wih_parts = 0, []
            for w in splits:
                wih_parts.append(wih_t[offs:offs + w])
                offs += w
            whh_t = jnp.transpose(p["w_hh"], (1, 0)).astype(mxu_dtype)   # (H, 3H)
            b_ih, b_hh = p["b_ih"], p["b_hh"]
            bx = jnp.concatenate([b_ih[:2 * H] + b_hh[:2 * H], b_ih[2 * H:]]
                                 ).reshape(1, 3 * H).astype(jnp.float32)
            bhn = b_hh[2 * H:].reshape(1, H).astype(jnp.float32)
            layer_p[name] = dict(wih=tuple(wih_parts), whh=whh_t, bx=bx, bhn=bhn)
        prepared.append(layer_p)
    return prepared


# ---------------------------------------------------------------------------
# SeqToVec forward
# ---------------------------------------------------------------------------
def seq_to_vec(x_btd, prepared_params, hidden_size, *, time_chunk=32):
    """x: (B, T, input_size) -> (B, num_layers * 2 * hidden_size).
    time_chunk sizes the per-grid-step VMEM block; halve it for v7x-class VMEM."""
    B, T, _ = x_btd.shape
    H = hidden_size
    Tc = _pick_time_chunk(T, B, time_chunk)
    num_layers = len(prepared_params)

    # time-major flattened (T*B, D) layout for all inter-layer streams (free bitcast)
    x_tb = jnp.transpose(x_btd, (1, 0, 2)).reshape(T * B, -1)
    streams = [x_tb]
    h_finals = []
    for layer, lp in enumerate(prepared_params):
        write_seq = layer < num_layers - 1                # last layer: h_n only
        outs = _run_bigru_layer(streams, lp, T=T, B=B, H=H, Tc=Tc,
                                write_seq=write_seq, out_dtype=x_btd.dtype)
        if write_seq:
            seq_f, seq_b, hf, hb = outs
            streams = [seq_f, seq_b]                      # no HBM concat between layers
        else:
            hf, hb = outs
        h_finals += [hf, hb]

    h_n = jnp.stack(h_finals, axis=0)                     # (2L, B, H), PyTorch h_n order
    return jnp.transpose(h_n, (1, 0, 2)).reshape(B, -1)


# ---------------------------------------------------------------------------
# Pure-JAX reference (mirrors the kernel's bf16-matmul / f32-accumulate precision)
# ---------------------------------------------------------------------------
def _gru_reference(x_btd, raw_params, hidden_size, num_layers, mxu_dtype=jnp.bfloat16):
    H = hidden_size
    B, T, _ = x_btd.shape
    layer_in = x_btd.astype(jnp.float32)
    h_finals = []
    for layer in range(num_layers):
        dir_seqs = []
        for d in range(2):
            p = raw_params[(layer, d)]
            w_ih = p["w_ih"].astype(mxu_dtype)
            w_hh = p["w_hh"].astype(mxu_dtype)
            b_ih, b_hh = p["b_ih"], p["b_hh"]
            xs = layer_in if d == 0 else layer_in[:, ::-1]
            h = jnp.zeros((B, H), jnp.float32)
            outs = []
            for t in range(T):
                x_t = xs[:, t]
                gx = jnp.dot(x_t.astype(mxu_dtype), w_ih.T,
                             preferred_element_type=jnp.float32) + b_ih
                gh = jnp.dot(h.astype(mxu_dtype), w_hh.T,
                             preferred_element_type=jnp.float32) + b_hh
                r = jax.nn.sigmoid(gx[:, :H] + gh[:, :H])
                z = jax.nn.sigmoid(gx[:, H:2 * H] + gh[:, H:2 * H])
                n = jnp.tanh(gx[:, 2 * H:] + r * gh[:, 2 * H:])
                h = (1.0 - z) * n + z * h
                outs.append(h)
            seq = jnp.stack(outs, axis=1)
            if d == 1:
                seq = seq[:, ::-1]
            dir_seqs.append(seq)
            h_finals.append(h)
        layer_in = jnp.concatenate(dir_seqs, axis=-1)
    h_n = jnp.stack(h_finals, axis=0)
    return jnp.transpose(h_n, (1, 0, 2)).reshape(B, -1)


if __name__ == "__main__":
    batch, seq_len, input_size, hidden_size, num_layers = 2, 8, 16, 32, 2
    bidirectional = True

    key = jax.random.PRNGKey(0)
    key, xkey, pkey = jax.random.split(key, 3)
    x = jax.random.normal(xkey, (batch, seq_len, input_size), dtype=jnp.float32)
    raw = init_gru_params(pkey, input_size, hidden_size, num_layers, bidirectional)
    prepared = prepare_params(raw, input_size, hidden_size, num_layers)

    run = jax.jit(lambda xx: seq_to_vec(xx, prepared, hidden_size, time_chunk=4))
    out = jax.block_until_ready(run(x))

    expected_shape = (batch, num_layers * 2 * hidden_size)
    assert out.shape == expected_shape, (out.shape, expected_shape)
    assert bool(jnp.all(jnp.isfinite(out)))

    ref = _gru_reference(x, raw, hidden_size, num_layers)
    err = float(jnp.max(jnp.abs(out - ref)))
    assert err < 1e-2, f"max abs error vs reference: {err}"

    print("KERNEL_OK")
</pallas_src>

<mosaic_0001>
module attributes {stable_mosaic.version = 11 : i64} {
  func.func @_bigru_layer_kernel(%arg0: i32, %arg1: memref<8x16xf32, #tpu.memory_space<vmem>>, %arg2: memref<8x16xf32, #tpu.memory_space<vmem>>, %arg3: memref<16x96xbf16, #tpu.memory_space<vmem>>, %arg4: memref<16x96xbf16, #tpu.memory_space<vmem>>, %arg5: memref<32x96xbf16, #tpu.memory_space<vmem>>, %arg6: memref<32x96xbf16, #tpu.memory_space<vmem>>, %arg7: memref<1x96xf32, #tpu.memory_space<vmem>>, %arg8: memref<1x96xf32, #tpu.memory_space<vmem>>, %arg9: memref<1x32xf32, #tpu.memory_space<vmem>>, %arg10: memref<1x32xf32, #tpu.memory_space<vmem>>, %arg11: memref<8x32xf32, #tpu.memory_space<vmem>>, %arg12: memref<8x32xf32, #tpu.memory_space<vmem>>, %arg13: memref<2x32xf32, #tpu.memory_space<vmem>>, %arg14: memref<2x32xf32, #tpu.memory_space<vmem>>, %arg15: memref<2x32xf32, #tpu.memory_space<vmem>>, %arg16: memref<2x32xf32, #tpu.memory_space<vmem>>, %arg17: memref<8x96xf32, #tpu.memory_space<vmem>>, %arg18: memref<8x96xf32, #tpu.memory_space<vmem>>) attributes {dimension_semantics = [#tpu.dimension_semantics<arbitrary>], iteration_bounds = array<i64: 2>, scalar_prefetch = 0 : i64, scratch_operands = 4 : i64, tpu.core_type = #tpu.core_type<tc>, window_params = [{transform_indices = @transform_0, window_bounds = array<i64: 8, 16>}, {transform_indices = @transform_1, window_bounds = array<i64: 8, 16>}, {pipeline_mode = #tpu.pipeline_mode<synchronous>, transform_indices = @transform_2, window_bounds = array<i64: 16, 96>}, {pipeline_mode = #tpu.pipeline_mode<synchronous>, transform_indices = @transform_3, window_bounds = array<i64: 16, 96>}, {pipeline_mode = #tpu.pipeline_mode<synchronous>, transform_indices = @transform_4, window_bounds = array<i64: 32, 96>}, {pipeline_mode = #tpu.pipeline_mode<synchronous>, transform_indices = @transform_5, window_bounds = array<i64: 32, 96>}, {pipeline_mode = #tpu.pipeline_mode<synchronous>, transform_indices = @transform_6, window_bounds = array<i64: 1, 96>}, {pipeline_mode = #tpu.pipeline_mode<synchronous>, transform_indices = @transform_7, window_bounds = array<i64: 1, 96>}, {pipeline_mode = #tpu.pipeline_mode<synchronous>, transform_indices = @transform_8, window_bounds = array<i64: 1, 32>}, {pipeline_mode = #tpu.pipeline_mode<synchronous>, transform_indices = @transform_9, window_bounds = array<i64: 1, 32>}, {transform_indices = @transform_10, window_bounds = array<i64: 8, 32>}, {transform_indices = @transform_11, window_bounds = array<i64: 8, 32>}, {pipeline_mode = #tpu.pipeline_mode<synchronous>, transform_indices = @transform_12, window_bounds = array<i64: 2, 32>}, {pipeline_mode = #tpu.pipeline_mode<synchronous>, transform_indices = @transform_13, window_bounds = array<i64: 2, 32>}]} {
    %c0_i32 = arith.constant 0 : i32
    %0 = arith.cmpi eq, %arg0, %c0_i32 : i32
    %1 = arith.extui %0 : i1 to i32
    %c0_i32_0 = arith.constant 0 : i32
    %2 = arith.cmpi ne, %1, %c0_i32_0 : i32
    scf.if %2 {
      %cst_96 = arith.constant 0.000000e+00 : f32
      %322 = vector.broadcast %cst_96 : f32 to vector<2x32xf32>
      %c0_97 = arith.constant 0 : index
      %c0_98 = arith.constant 0 : index
      %323 = vector.load %arg15[%c0_97, %c0_98] : memref<2x32xf32, #tpu.memory_space<vmem>>, vector<2x32xf32>
      tpu.vector_store %arg15[%c0_97, %c0_98], %322 {strides = array<i32>} : memref<2x32xf32, #tpu.memory_space<vmem>>, vector<2x32xf32>,
      %cst_99 = arith.constant 0.000000e+00 : f32
      %324 = vector.broadcast %cst_99 : f32 to vector<2x32xf32>
      %c0_100 = arith.constant 0 : index
      %c0_101 = arith.constant 0 : index
      %325 = vector.load %arg16[%c0_100, %c0_101] : memref<2x32xf32, #tpu.memory_space<vmem>>, vector<2x32xf32>
      tpu.vector_store %arg16[%c0_100, %c0_101], %324 {strides = array<i32>} : memref<2x32xf32, #tpu.memory_space<vmem>>, vector<2x32xf32>,
    } else {
    }
    %c0 = arith.constant 0 : index
    %c0_1 = arith.constant 0 : index
    %3 = vector.load %arg1[%c0, %c0_1] : memref<8x16xf32, #tpu.memory_space<vmem>>, vector<8x16xf32>
    %4 = arith.truncf %3 : vector<8x16xf32> to vector<8x16xbf16>
    %c0_2 = arith.constant 0 : index
    %c0_3 = arith.constant 0 : index
    %5 = vector.load %arg3[%c0_2, %c0_3] : memref<16x96xbf16, #tpu.memory_space<vmem>>, vector<16x96xbf16>
    %cst = arith.constant dense<0.000000e+00> : vector<8x96xf32>
    %6 = tpu.matmul %4, %5, %cst {dimension_numbers = #tpu.dot_dimension_numbers<[1], [0], [0], [1], [0, 0, 1, 1], [], []>} : vector<8x16xbf16>, vector<16x96xbf16>, vector<8x96xf32> -> vector<8x96xf32>
    %c0_4 = arith.constant 0 : index
    %c0_5 = arith.constant 0 : index
    %7 = vector.load %arg7[%c0_4, %c0_5] : memref<1x96xf32, #tpu.memory_space<vmem>>, vector<1x96xf32>
    %8 = vector.broadcast %7 : vector<1x96xf32> to vector<8x96xf32>
    %9 = arith.addf %6, %8 : vector<8x96xf32>
    %c0_6 = arith.constant 0 : index
    %c0_7 = arith.constant 0 : index
    %10 = vector.load %arg17[%c0_6, %c0_7] : memref<8x96xf32, #tpu.memory_space<vmem>>, vector<8x96xf32>
    tpu.vector_store %arg17[%c0_6, %c0_7], %9 {strides = array<i32>} : memref<8x96xf32, #tpu.memory_space<vmem>>, vector<8x96xf32>,
    %c0_8 = arith.constant 0 : index
    %c0_9 = arith.constant 0 : index
    %11 = vector.load %arg2[%c0_8, %c0_9] : memref<8x16xf32, #tpu.memory_space<vmem>>, vector<8x16xf32>
    %12 = arith.truncf %11 : vector<8x16xf32> to vector<8x16xbf16>
    %c0_10 = arith.constant 0 : index
    %c0_11 = arith.constant 0 : index
    %13 = vector.load %arg4[%c0_10, %c0_11] : memref<16x96xbf16, #tpu.memory_space<vmem>>, vector<16x96xbf16>
    %cst_12 = arith.constant dense<0.000000e+00> : vector<8x96xf32>
    %14 = tpu.matmul %12, %13, %cst_12 {dimension_numbers = #tpu.dot_dimension_numbers<[1], [0], [0], [1], [0, 0, 1, 1], [], []>} : vector<8x16xbf16>, vector<16x96xbf16>, vector<8x96xf32> -> vector<8x96xf32>
    %c0_13 = arith.constant 0 : index
    %c0_14 = arith.constant 0 : index
    %15 = vector.load %arg8[%c0_13, %c0_14] : memref<1x96xf32, #tpu.memory_space<vmem>>, vector<1x96xf32>
    %16 = vector.broadcast %15 : vector<1x96xf32> to vector<8x96xf32>
    %17 = arith.addf %14, %16 : vector<8x96xf32>
    %c0_15 = arith.constant 0 : index
    %c0_16 = arith.constant 0 : index
    %18 = vector.load %arg18[%c0_15, %c0_16] : memref<8x96xf32, #tpu.memory_space<vmem>>, vector<8x96xf32>
    tpu.vector_store %arg18[%c0_15, %c0_16], %17 {strides = array<i32>} : memref<8x96xf32, #tpu.memory_space<vmem>>, vector<8x96xf32>,
    %c0_17 = arith.constant 0 : index
    %c0_18 = arith.constant 0 : index
    %19 = vector.load %arg5[%c0_17, %c0_18] : memref<32x96xbf16, #tpu.memory_space<vmem>>, vector<32x96xbf16>
    %c0_19 = arith.constant 0 : index
    %c0_20 = arith.constant 0 : index
    %20 = vector.load %arg6[%c0_19, %c0_20] : memref<32x96xbf16, #tpu.memory_space<vmem>>, vector<32x96xbf16>
    %c0_21 = arith.constant 0 : index
    %c0_22 = arith.constant 0 : index
    %21 = vector.load %arg9[%c0_21, %c0_22] : memref<1x32xf32, #tpu.memory_space<vmem>>, vector<1x32xf32>
    %c0_23 = arith.constant 0 : index
    %c0_24 = arith.constant 0 : index
    %22 = vector.load %arg10[%c0_23, %c0_24] : memref<1x32xf32, #tpu.memory_space<vmem>>, vector<1x32xf32>
    %c0_25 = arith.constant 0 : index
    %c0_26 = arith.constant 0 : index
    %23 = vector.load %arg15[%c0_25, %c0_26] : memref<2x32xf32, #tpu.memory_space<vmem>>, vector<2x32xf32>
    %c0_27 = arith.constant 0 : index
    %c0_28 = arith.constant 0 : index
    %24 = vector.load %arg16[%c0_27, %c0_28] : memref<2x32xf32, #tpu.memory_space<vmem>>, vector<2x32xf32>
    %c0_i32_29 = arith.constant 0 : i32
    %c3_i32 = arith.constant 3 : i32
    %25 = arith.subi %c3_i32, %c0_i32_29 : i32
    %26 = arith.truncf %23 : vector<2x32xf32> to vector<2x32xbf16>
    %cst_30 = arith.constant dense<0.000000e+00> : vector<2x96xf32>
    %27 = tpu.matmul %26, %19, %cst_30 {dimension_numbers = #tpu.dot_dimension_numbers<[1], [0], [0], [1], [0, 0, 1, 1], [], []>} : vector<2x32xbf16>, vector<32x96xbf16>, vector<2x96xf32> -> vector<2x96xf32>
    %28 = arith.truncf %24 : vector<2x32xf32> to vector<2x32xbf16>
    %cst_31 = arith.constant dense<0.000000e+00> : vector<2x96xf32>
    %29 = tpu.matmul %28, %20, %cst_31 {dimension_numbers = #tpu.dot_dimension_numbers<[1], [0], [0], [1], [0, 0, 1, 1], [], []>} : vector<2x32xbf16>, vector<32x96xbf16>, vector<2x96xf32> -> vector<2x96xf32>
    %c2_i32 = arith.constant 2 : i32
    %30 = arith.muli %c0_i32_29, %c2_i32 : i32
    %31 = tpu.assume_multiple %30, 2 : i32
    %c2_i32_32 = arith.constant 2 : i32
    %32 = arith.muli %25, %c2_i32_32 : i32
    %33 = tpu.assume_multiple %32, 2 : i32
    %34 = arith.index_cast %31 : i32 to index
    %c0_33 = arith.constant 0 : index
    %35 = vector.load %arg17[%34, %c0_33] : memref<8x96xf32, #tpu.memory_space<vmem>>, vector<2x96xf32>
    %36 = vector.extract_strided_slice %35 {offsets = [0, 0], sizes = [2, 32], strides = [1, 1]} : vector<2x96xf32> to vector<2x32xf32>
    %37 = vector.extract_strided_slice %27 {offsets = [0, 0], sizes = [2, 32], strides = [1, 1]} : vector<2x96xf32> to vector<2x32xf32>
    %38 = arith.addf %36, %37 : vector<2x32xf32>
    %39 = arith.negf %38 : vector<2x32xf32>
    %40 = math.exp %39 : vector<2x32xf32>
    %cst_34 = arith.constant 1.000000e+00 : f32
    %41 = vector.broadcast %cst_34 : f32 to vector<2x32xf32>
    %42 = arith.addf %41, %40 : vector<2x32xf32>
    %43 = arith.divf %41, %42 : vector<2x32xf32>
    %44 = vector.extract_strided_slice %35 {offsets = [0, 32], sizes = [2, 32], strides = [1, 1]} : vector<2x96xf32> to vector<2x32xf32>
    %45 = vector.extract_strided_slice %27 {offsets = [0, 32], sizes = [2, 32], strides = [1, 1]} : vector<2x96xf32> to vector<2x32xf32>
    %46 = arith.addf %44, %45 : vector<2x32xf32>
    %47 = arith.negf %46 : vector<2x32xf32>
    %48 = math.exp %47 : vector<2x32xf32>
    %cst_35 = arith.constant 1.000000e+00 : f32
    %49 = vector.broadcast %cst_35 : f32 to vector<2x32xf32>
    %50 = arith.addf %49, %48 : vector<2x32xf32>
    %51 = arith.divf %49, %50 : vector<2x32xf32>
    %52 = vector.extract_strided_slice %35 {offsets = [0, 64], sizes = [2, 32], strides = [1, 1]} : vector<2x96xf32> to vector<2x32xf32>
    %53 = vector.extract_strided_slice %27 {offsets = [0, 64], sizes = [2, 32], strides = [1, 1]} : vector<2x96xf32> to vector<2x32xf32>
    %54 = vector.broadcast %21 : vector<1x32xf32> to vector<2x32xf32>
    %55 = arith.addf %53, %54 : vector<2x32xf32>
    %56 = arith.mulf %43, %55 : vector<2x32xf32>
    %57 = arith.addf %52, %56 : vector<2x32xf32>
    %58 = math.tanh %57 : vector<2x32xf32>
    %cst_36 = arith.constant 1.000000e+00 : f32
    %59 = vector.broadcast %cst_36 : f32 to vector<2x32xf32>
    %60 = arith.subf %59, %51 : vector<2x32xf32>
    %61 = arith.mulf %60, %58 : vector<2x32xf32>
    %62 = arith.mulf %51, %23 : vector<2x32xf32>
    %63 = arith.addf %61, %62 : vector<2x32xf32>
    %64 = arith.index_cast %33 : i32 to index
    %c0_37 = arith.constant 0 : index
    %65 = vector.load %arg18[%64, %c0_37] : memref<8x96xf32, #tpu.memory_space<vmem>>, vector<2x96xf32>
    %66 = vector.extract_strided_slice %65 {offsets = [0, 0], sizes = [2, 32], strides = [1, 1]} : vector<2x96xf32> to vector<2x32xf32>
    %67 = vector.extract_strided_slice %29 {offsets = [0, 0], sizes = [2, 32], strides = [1, 1]} : vector<2x96xf32> to vector<2x32xf32>
    %68 = arith.addf %66, %67 : vector<2x32xf32>
    %69 = arith.negf %68 : vector<2x32xf32>
    %70 = math.exp %69 : vector<2x32xf32>
    %cst_38 = arith.constant 1.000000e+00 : f32
    %71 = vector.broadcast %cst_38 : f32 to vector<2x32xf32>
    %72 = arith.addf %71, %70 : vector<2x32xf32>
    %73 = arith.divf %71, %72 : vector<2x32xf32>
    %74 = vector.extract_strided_slice %65 {offsets = [0, 32], sizes = [2, 32], strides = [1, 1]} : vector<2x96xf32> to vector<2x32xf32>
    %75 = vector.extract_strided_slice %29 {offsets = [0, 32], sizes = [2, 32], strides = [1, 1]} : vector<2x96xf32> to vector<2x32xf32>
    %76 = arith.addf %74, %75 : vector<2x32xf32>
    %77 = arith.negf %76 : vector<2x32xf32>
    %78 = math.exp %77 : vector<2x32xf32>
    %cst_39 = arith.constant 1.000000e+00 : f32
    %79 = vector.broadcast %cst_39 : f32 to vector<2x32xf32>
    %80 = arith.addf %79, %78 : vector<2x32xf32>
    %81 = arith.divf %79, %80 : vector<2x32xf32>
    %82 = vector.extract_strided_slice %65 {offsets = [0, 64], sizes = [2, 32], strides = [1, 1]} : vector<2x96xf32> to vector<2x32xf32>
    %83 = vector.extract_strided_slice %29 {offsets = [0, 64], sizes = [2, 32], strides = [1, 1]} : vector<2x96xf32> to vector<2x32xf32>
    %84 = vector.broadcast %22 : vector<1x32xf32> to vector<2x32xf32>
    %85 = arith.addf %83, %84 : vector<2x32xf32>
    %86 = arith.mulf %73, %85 : vector<2x32xf32>
    %87 = arith.addf %82, %86 : vector<2x32xf32>
    %88 = math.tanh %87 : vector<2x32xf32>
    %cst_40 = arith.constant 1.000000e+00 : f32
    %89 = vector.broadcast %cst_40 : f32 to vector<2x32xf32>
    %90 = arith.subf %89, %81 : vector<2x32xf32>
    %91 = arith.mulf %90, %88 : vector<2x32xf32>
    %92 = arith.mulf %81, %24 : vector<2x32xf32>
    %93 = arith.addf %91, %92 : vector<2x32xf32>
    %94 = arith.index_cast %31 : i32 to index
    %c0_41 = arith.constant 0 : index
    %95 = vector.load %arg11[%94, %c0_41] : memref<8x32xf32, #tpu.memory_space<vmem>>, vector<2x32xf32>
    tpu.vector_store %arg11[%94, %c0_41], %63 {strides = array<i32>} : memref<8x32xf32, #tpu.memory_space<vmem>>, vector<2x32xf32>,
    %96 = arith.index_cast %33 : i32 to index
    %c0_42 = arith.constant 0 : index
    %97 = vector.load %arg12[%96, %c0_42] : memref<8x32xf32, #tpu.memory_space<vmem>>, vector<2x32xf32>
    tpu.vector_store %arg12[%96, %c0_42], %93 {strides = array<i32>} : memref<8x32xf32, #tpu.memory_space<vmem>>, vector<2x32xf32>,
    %c1_i32 = arith.constant 1 : i32
    %c3_i32_43 = arith.constant 3 : i32
    %98 = arith.subi %c3_i32_43, %c1_i32 : i32
    %99 = arith.truncf %63 : vector<2x32xf32> to vector<2x32xbf16>
    %cst_44 = arith.constant dense<0.000000e+00> : vector<2x96xf32>
    %100 = tpu.matmul %99, %19, %cst_44 {dimension_numbers = #tpu.dot_dimension_numbers<[1], [0], [0], [1], [0, 0, 1, 1], [], []>} : vector<2x32xbf16>, vector<32x96xbf16>, vector<2x96xf32> -> vector<2x96xf32>
    %101 = arith.truncf %93 : vector<2x32xf32> to vector<2x32xbf16>
    %cst_45 = arith.constant dense<0.000000e+00> : vector<2x96xf32>
    %102 = tpu.matmul %101, %20, %cst_45 {dimension_numbers = #tpu.dot_dimension_numbers<[1], [0], [0], [1], [0, 0, 1, 1], [], []>} : vector<2x32xbf16>, vector<32x96xbf16>, vector<2x96xf32> -> vector<2x96xf32>
    %c2_i32_46 = arith.constant 2 : i32
    %103 = arith.muli %c1_i32, %c2_i32_46 : i32
    %104 = tpu.assume_multiple %103, 2 : i32
    %c2_i32_47 = arith.constant 2 : i32
    %105 = arith.muli %98, %c2_i32_47 : i32
    %106 = tpu.assume_multiple %105, 2 : i32
    %107 = arith.index_cast %104 : i32 to index
    %c0_48 = arith.constant 0 : index
    %108 = vector.load %arg17[%107, %c0_48] : memref<8x96xf32, #tpu.memory_space<vmem>>, vector<2x96xf32>
    %109 = vector.extract_strided_slice %108 {offsets = [0, 0], sizes = [2, 32], strides = [1, 1]} : vector<2x96xf32> to vector<2x32xf32>
    %110 = vector.extract_strided_slice %100 {offsets = [0, 0], sizes = [2, 32], strides = [1, 1]} : vector<2x96xf32> to vector<2x32xf32>
    %111 = arith.addf %109, %110 : vector<2x32xf32>
    %112 = arith.negf %111 : vector<2x32xf32>
    %113 = math.exp %112 : vector<2x32xf32>
    %cst_49 = arith.constant 1.000000e+00 : f32
    %114 = vector.broadcast %cst_49 : f32 to vector<2x32xf32>
    %115 = arith.addf %114, %113 : vector<2x32xf32>
    %116 = arith.divf %114, %115 : vector<2x32xf32>
    %117 = vector.extract_strided_slice %108 {offsets = [0, 32], sizes = [2, 32], strides = [1, 1]} : vector<2x96xf32> to vector<2x32xf32>
    %118 = vector.extract_strided_slice %100 {offsets = [0, 32], sizes = [2, 32], strides = [1, 1]} : vector<2x96xf32> to vector<2x32xf32>
    %119 = arith.addf %117, %118 : vector<2x32xf32>
    %120 = arith.negf %119 : vector<2x32xf32>
    %121 = math.exp %120 : vector<2x32xf32>
    %cst_50 = arith.constant 1.000000e+00 : f32
    %122 = vector.broadcast %cst_50 : f32 to vector<2x32xf32>
    %123 = arith.addf %122, %121 : vector<2x32xf32>
    %124 = arith.divf %122, %123 : vector<2x32xf32>
    %125 = vector.extract_strided_slice %108 {offsets = [0, 64], sizes = [2, 32], strides = [1, 1]} : vector<2x96xf32> to vector<2x32xf32>
    %126 = vector.extract_strided_slice %100 {offsets = [0, 64], sizes = [2, 32], strides = [1, 1]} : vector<2x96xf32> to vector<2x32xf32>
    %127 = vector.broadcast %21 : vector<1x32xf32> to vector<2x32xf32>
    %128 = arith.addf %126, %127 : vector<2x32xf32>
    %129 = arith.mulf %116, %128 : vector<2x32xf32>
    %130 = arith.addf %125, %129 : vector<2x32xf32>
    %131 = math.tanh %130 : vector<2x32xf32>
    %cst_51 = arith.constant 1.000000e+00 : f32
    %132 = vector.broadcast %cst_51 : f32 to vector<2x32xf32>
    %133 = arith.subf %132, %124 : vector<2x32xf32>
    %134 = arith.mulf %133, %131 : vector<2x32xf32>
    %135 = arith.mulf %124, %63 : vector<2x32xf32>
    %136 = arith.addf %134, %135 : vector<2x32xf32>
    %137 = arith.index_cast %106 : i32 to index
    %c0_52 = arith.constant 0 : index
    %138 = vector.load %arg18[%137, %c0_52] : memref<8x96xf32, #tpu.memory_space<vmem>>, vector<2x96xf32>
    %139 = vector.extract_strided_slice %138 {offsets = [0, 0], sizes = [2, 32], strides = [1, 1]} : vector<2x96xf32> to vector<2x32xf32>
    %140 = vector.extract_strided_slice %102 {offsets = [0, 0], sizes = [2, 32], strides = [1, 1]} : vector<2x96xf32> to vector<2x32xf32>
    %141 = arith.addf %139, %140 : vector<2x32xf32>
    %142 = arith.negf %141 : vector<2x32xf32>
    %143 = math.exp %142 : vector<2x32xf32>
    %cst_53 = arith.constant 1.000000e+00 : f32
    %144 = vector.broadcast %cst_53 : f32 to vector<2x32xf32>
    %145 = arith.addf %144, %143 : vector<2x32xf32>
    %146 = arith.divf %144, %145 : vector<2x32xf32>
    %147 = vector.extract_strided_slice %138 {offsets = [0, 32], sizes = [2, 32], strides = [1, 1]} : vector<2x96xf32> to vector<2x32xf32>
    %148 = vector.extract_strided_slice %102 {offsets = [0, 32], sizes = [2, 32], strides = [1, 1]} : vector<2x96xf32> to vector<2x32xf32>
    %149 = arith.addf %147, %148 : vector<2x32xf32>
    %150 = arith.negf %149 : vector<2x32xf32>
    %151 = math.exp %150 : vector<2x32xf32>
    %cst_54 = arith.constant 1.000000e+00 : f32
    %152 = vector.broadcast %cst_54 : f32 to vector<2x32xf32>
    %153 = arith.addf %152, %151 : vector<2x32xf32>
    %154 = arith.divf %152, %153 : vector<2x32xf32>
    %155 = vector.extract_strided_slice %138 {offsets = [0, 64], sizes = [2, 32], strides = [1, 1]} : vector<2x96xf32> to vector<2x32xf32>
    %156 = vector.extract_strided_slice %102 {offsets = [0, 64], sizes = [2, 32], strides = [1, 1]} : vector<2x96xf32> to vector<2x32xf32>
    %157 = vector.broadcast %22 : vector<1x32xf32> to vector<2x32xf32>
    %158 = arith.addf %156, %157 : vector<2x32xf32>
    %159 = arith.mulf %146, %158 : vector<2x32xf32>
    %160 = arith.addf %155, %159 : vector<2x32xf32>
    %161 = math.tanh %160 : vector<2x32xf32>
    %cst_55 = arith.constant 1.000000e+00 : f32
    %162 = vector.broadcast %cst_55 : f32 to vector<2x32xf32>
    %163 = arith.subf %162, %154 : vector<2x32xf32>
    %164 = arith.mulf %163, %161 : vector<2x32xf32>
    %165 = arith.mulf %154, %93 : vector<2x32xf32>
    %166 = arith.addf %164, %165 : vector<2x32xf32>
    %167 = arith.index_cast %104 : i32 to index
    %c0_56 = arith.constant 0 : index
    %168 = vector.load %arg11[%167, %c0_56] : memref<8x32xf32, #tpu.memory_space<vmem>>, vector<2x32xf32>
    tpu.vector_store %arg11[%167, %c0_56], %136 {strides = array<i32>} : memref<8x32xf32, #tpu.memory_space<vmem>>, vector<2x32xf32>,
    %169 = arith.index_cast %106 : i32 to index
    %c0_57 = arith.constant 0 : index
    %170 = vector.load %arg12[%169, %c0_57] : memref<8x32xf32, #tpu.memory_space<vmem>>, vector<2x32xf32>
    tpu.vector_store %arg12[%169, %c0_57], %166 {strides = array<i32>} : memref<8x32xf32, #tpu.memory_space<vmem>>, vector<2x32xf32>,
    %c2_i32_58 = arith.constant 2 : i32
    %c3_i32_59 = arith.constant 3 : i32
    %171 = arith.subi %c3_i32_59, %c2_i32_58 : i32
    %172 = arith.truncf %136 : vector<2x32xf32> to vector<2x32xbf16>
    %cst_60 = arith.constant dense<0.000000e+00> : vector<2x96xf32>
    %173 = tpu.matmul %172, %19, %cst_60 {dimension_numbers = #tpu.dot_dimension_numbers<[1], [0], [0], [1], [0, 0, 1, 1], [], []>} : vector<2x32xbf16>, vector<32x96xbf16>, vector<2x96xf32> -> vector<2x96xf32>
    %174 = arith.truncf %166 : vector<2x32xf32> to vector<2x32xbf16>
    %cst_61 = arith.constant dense<0.000000e+00> : vector<2x96xf32>
    %175 = tpu.matmul %174, %20, %cst_61 {dimension_numbers = #tpu.dot_dimension_numbers<[1], [0], [0], [1], [0, 0, 1, 1], [], []>} : vector<2x32xbf16>, vector<32x96xbf16>, vector<2x96xf32> -> vector<2x96xf32>
    %c2_i32_62 = arith.constant 2 : i32
    %176 = arith.muli %c2_i32_58, %c2_i32_62 : i32
    %177 = tpu.assume_multiple %176, 2 : i32
    %c2_i32_63 = arith.constant 2 : i32
    %178 = arith.muli %171, %c2_i32_63 : i32
    %179 = tpu.assume_multiple %178, 2 : i32
    %180 = arith.index_cast %177 : i32 to index
    %c0_64 = arith.constant 0 : index
    %181 = vector.load %arg17[%180, %c0_64] : memref<8x96xf32, #tpu.memory_space<vmem>>, vector<2x96xf32>
    %182 = vector.extract_strided_slice %181 {offsets = [0, 0], sizes = [2, 32], strides = [1, 1]} : vector<2x96xf32> to vector<2x32xf32>
    %183 = vector.extract_strided_slice %173 {offsets = [0, 0], sizes = [2, 32], strides = [1, 1]} : vector<2x96xf32> to vector<2x32xf32>
    %184 = arith.addf %182, %183 : vector<2x32xf32>
    %185 = arith.negf %184 : vector<2x32xf32>
    %186 = math.exp %185 : vector<2x32xf32>
    %cst_65 = arith.constant 1.000000e+00 : f32
    %187 = vector.broadcast %cst_65 : f32 to vector<2x32xf32>
    %188 = arith.addf %187, %186 : vector<2x32xf32>
    %189 = arith.divf %187, %188 : vector<2x32xf32>
    %190 = vector.extract_strided_slice %181 {offsets = [0, 32], sizes = [2, 32], strides = [1, 1]} : vector<2x96xf32> to vector<2x32xf32>
    %191 = vector.extract_strided_slice %173 {offsets = [0, 32], sizes = [2, 32], strides = [1, 1]} : vector<2x96xf32> to vector<2x32xf32>
    %192 = arith.addf %190, %191 : vector<2x32xf32>
    %193 = arith.negf %192 : vector<2x32xf32>
    %194 = math.exp %193 : vector<2x32xf32>
    %cst_66 = arith.constant 1.000000e+00 : f32
    %195 = vector.broadcast %cst_66 : f32 to vector<2x32xf32>
    %196 = arith.addf %195, %194 : vector<2x32xf32>
    %197 = arith.divf %195, %196 : vector<2x32xf32>
    %198 = vector.extract_strided_slice %181 {offsets = [0, 64], sizes = [2, 32], strides = [1, 1]} : vector<2x96xf32> to vector<2x32xf32>
    %199 = vector.extract_strided_slice %173 {offsets = [0, 64], sizes = [2, 32], strides = [1, 1]} : vector<2x96xf32> to vector<2x32xf32>
    %200 = vector.broadcast %21 : vector<1x32xf32> to vector<2x32xf32>
    %201 = arith.addf %199, %200 : vector<2x32xf32>
    %202 = arith.mulf %189, %201 : vector<2x32xf32>
    %203 = arith.addf %198, %202 : vector<2x32xf32>
    %204 = math.tanh %203 : vector<2x32xf32>
    %cst_67 = arith.constant 1.000000e+00 : f32
    %205 = vector.broadcast %cst_67 : f32 to vector<2x32xf32>
    %206 = arith.subf %205, %197 : vector<2x32xf32>
    %207 = arith.mulf %206, %204 : vector<2x32xf32>
    %208 = arith.mulf %197, %136 : vector<2x32xf32>
    %209 = arith.addf %207, %208 : vector<2x32xf32>
    %210 = arith.index_cast %179 : i32 to index
    %c0_68 = arith.constant 0 : index
    %211 = vector.load %arg18[%210, %c0_68] : memref<8x96xf32, #tpu.memory_space<vmem>>, vector<2x96xf32>
    %212 = vector.extract_strided_slice %211 {offsets = [0, 0], sizes = [2, 32], strides = [1, 1]} : vector<2x96xf32> to vector<2x32xf32>
    %213 = vector.extract_strided_slice %175 {offsets = [0, 0], sizes = [2, 32], strides = [1, 1]} : vector<2x96xf32> to vector<2x32xf32>
    %214 = arith.addf %212, %213 : vector<2x32xf32>
    %215 = arith.negf %214 : vector<2x32xf32>
    %216 = math.exp %215 : vector<2x32xf32>
    %cst_69 = arith.constant 1.000000e+00 : f32
    %217 = vector.broadcast %cst_69 : f32 to vector<2x32xf32>
    %218 = arith.addf %217, %216 : vector<2x32xf32>
    %219 = arith.divf %217, %218 : vector<2x32xf32>
    %220 = vector.extract_strided_slice %211 {offsets = [0, 32], sizes = [2, 32], strides = [1, 1]} : vector<2x96xf32> to vector<2x32xf32>
    %221 = vector.extract_strided_slice %175 {offsets = [0, 32], sizes = [2, 32], strides = [1, 1]} : vector<2x96xf32> to vector<2x32xf32>
    %222 = arith.addf %220, %221 : vector<2x32xf32>
    %223 = arith.negf %222 : vector<2x32xf32>
    %224 = math.exp %223 : vector<2x32xf32>
    %cst_70 = arith.constant 1.000000e+00 : f32
    %225 = vector.broadcast %cst_70 : f32 to vector<2x32xf32>
    %226 = arith.addf %225, %224 : vector<2x32xf32>
    %227 = arith.divf %225, %226 : vector<2x32xf32>
    %228 = vector.extract_strided_slice %211 {offsets = [0, 64], sizes = [2, 32], strides = [1, 1]} : vector<2x96xf32> to vector<2x32xf32>
    %229 = vector.extract_strided_slice %175 {offsets = [0, 64], sizes = [2, 32], strides = [1, 1]} : vector<2x96xf32> to vector<2x32xf32>
    %230 = vector.broadcast %22 : vector<1x32xf32> to vector<2x32xf32>
    %231 = arith.addf %229, %230 : vector<2x32xf32>
    %232 = arith.mulf %219, %231 : vector<2x32xf32>
    %233 = arith.addf %228, %232 : vector<2x32xf32>
    %234 = math.tanh %233 : vector<2x32xf32>
    %cst_71 = arith.constant 1.000000e+00 : f32
    %235 = vector.broadcast %cst_71 : f32 to vector<2x32xf32>
    %236 = arith.subf %235, %227 : vector<2x32xf32>
    %237 = arith.mulf %236, %234 : vector<2x32xf32>
    %238 = arith.mulf %227, %166 : vector<2x32xf32>
    %239 = arith.addf %237, %238 : vector<2x32xf32>
    %240 = arith.index_cast %177 : i32 to index
    %c0_72 = arith.constant 0 : index
    %241 = vector.load %arg11[%240, %c0_72] : memref<8x32xf32, #tpu.memory_space<vmem>>, vector<2x32xf32>
    tpu.vector_store %arg11[%240, %c0_72], %209 {strides = array<i32>} : memref<8x32xf32, #tpu.memory_space<vmem>>, vector<2x32xf32>,
    %242 = arith.index_cast %179 : i32 to index
    %c0_73 = arith.constant 0 : index
    %243 = vector.load %arg12[%242, %c0_73] : memref<8x32xf32, #tpu.memory_space<vmem>>, vector<2x32xf32>
    tpu.vector_store %arg12[%242, %c0_73], %239 {strides = array<i32>} : memref<8x32xf32, #tpu.memory_space<vmem>>, vector<2x32xf32>,
    %c3_i32_74 = arith.constant 3 : i32
    %c3_i32_75 = arith.constant 3 : i32
    %244 = arith.subi %c3_i32_75, %c3_i32_74 : i32
    %245 = arith.truncf %209 : vector<2x32xf32> to vector<2x32xbf16>
    %cst_76 = arith.constant dense<0.000000e+00> : vector<2x96xf32>
    %246 = tpu.matmul %245, %19, %cst_76 {dimension_numbers = #tpu.dot_dimension_numbers<[1], [0], [0], [1], [0, 0, 1, 1], [], []>} : vector<2x32xbf16>, vector<32x96xbf16>, vector<2x96xf32> -> vector<2x96xf32>
    %247 = arith.truncf %239 : vector<2x32xf32> to vector<2x32xbf16>
    %cst_77 = arith.constant dense<0.000000e+00> : vector<2x96xf32>
    %248 = tpu.matmul %247, %20, %cst_77 {dimension_numbers = #tpu.dot_dimension_numbers<[1], [0], [0], [1], [0, 0, 1, 1], [], []>} : vector<2x32xbf16>, vector<32x96xbf16>, vector<2x96xf32> -> vector<2x96xf32>
    %c2_i32_78 = arith.constant 2 : i32
    %249 = arith.muli %c3_i32_74, %c2_i32_78 : i32
    %250 = tpu.assume_multiple %249, 2 : i32
    %c2_i32_79 = arith.constant 2 : i32
    %251 = arith.muli %244, %c2_i32_79 : i32
    %252 = tpu.assume_multiple %251, 2 : i32
    %253 = arith.index_cast %250 : i32 to index
    %c0_80 = arith.constant 0 : index
    %254 = vector.load %arg17[%253, %c0_80] : memref<8x96xf32, #tpu.memory_space<vmem>>, vector<2x96xf32>
    %255 = vector.extract_strided_slice %254 {offsets = [0, 0], sizes = [2, 32], strides = [1, 1]} : vector<2x96xf32> to vector<2x32xf32>
    %256 = vector.extract_strided_slice %246 {offsets = [0, 0], sizes = [2, 32], strides = [1, 1]} : vector<2x96xf32> to vector<2x32xf32>
    %257 = arith.addf %255, %256 : vector<2x32xf32>
    %258 = arith.negf %257 : vector<2x32xf32>
    %259 = math.exp %258 : vector<2x32xf32>
    %cst_81 = arith.constant 1.000000e+00 : f32
    %260 = vector.broadcast %cst_81 : f32 to vector<2x32xf32>
    %261 = arith.addf %260, %259 : vector<2x32xf32>
    %262 = arith.divf %260, %261 : vector<2x32xf32>
    %263 = vector.extract_strided_slice %254 {offsets = [0, 32], sizes = [2, 32], strides = [1, 1]} : vector<2x96xf32> to vector<2x32xf32>
    %264 = vector.extract_strided_slice %246 {offsets = [0, 32], sizes = [2, 32], strides = [1, 1]} : vector<2x96xf32> to vector<2x32xf32>
    %265 = arith.addf %263, %264 : vector<2x32xf32>
    %266 = arith.negf %265 : vector<2x32xf32>
    %267 = math.exp %266 : vector<2x32xf32>
    %cst_82 = arith.constant 1.000000e+00 : f32
    %268 = vector.broadcast %cst_82 : f32 to vector<2x32xf32>
    %269 = arith.addf %268, %267 : vector<2x32xf32>
    %270 = arith.divf %268, %269 : vector<2x32xf32>
    %271 = vector.extract_strided_slice %254 {offsets = [0, 64], sizes = [2, 32], strides = [1, 1]} : vector<2x96xf32> to vector<2x32xf32>
    %272 = vector.extract_strided_slice %246 {offsets = [0, 64], sizes = [2, 32], strides = [1, 1]} : vector<2x96xf32> to vector<2x32xf32>
    %273 = vector.broadcast %21 : vector<1x32xf32> to vector<2x32xf32>
    %274 = arith.addf %272, %273 : vector<2x32xf32>
    %275 = arith.mulf %262, %274 : vector<2x32xf32>
    %276 = arith.addf %271, %275 : vector<2x32xf32>
    %277 = math.tanh %276 : vector<2x32xf32>
    %cst_83 = arith.constant 1.000000e+00 : f32
    %278 = vector.broadcast %cst_83 : f32 to vector<2x32xf32>
    %279 = arith.subf %278, %270 : vector<2x32xf32>
    %280 = arith.mulf %279, %277 : vector<2x32xf32>
    %281 = arith.mulf %270, %209 : vector<2x32xf32>
    %282 = arith.addf %280, %281 : vector<2x32xf32>
    %283 = arith.index_cast %252 : i32 to index
    %c0_84 = arith.constant 0 : index
    %284 = vector.load %arg18[%283, %c0_84] : memref<8x96xf32, #tpu.memory_space<vmem>>, vector<2x96xf32>
    %285 = vector.extract_strided_slice %284 {offsets = [0, 0], sizes = [2, 32], strides = [1, 1]} : vector<2x96xf32> to vector<2x32xf32>
    %286 = vector.extract_strided_slice %248 {offsets = [0, 0], sizes = [2, 32], strides = [1, 1]} : vector<2x96xf32> to vector<2x32xf32>
    %287 = arith.addf %285, %286 : vector<2x32xf32>
    %288 = arith.negf %287 : vector<2x32xf32>
    %289 = math.exp %288 : vector<2x32xf32>
    %cst_85 = arith.constant 1.000000e+00 : f32
    %290 = vector.broadcast %cst_85 : f32 to vector<2x32xf32>
    %291 = arith.addf %290, %289 : vector<2x32xf32>
    %292 = arith.divf %290, %291 : vector<2x32xf32>
    %293 = vector.extract_strided_slice %284 {offsets = [0, 32], sizes = [2, 32], strides = [1, 1]} : vector<2x96xf32> to vector<2x32xf32>
    %294 = vector.extract_strided_slice %248 {offsets = [0, 32], sizes = [2, 32], strides = [1, 1]} : vector<2x96xf32> to vector<2x32xf32>
    %295 = arith.addf %293, %294 : vector<2x32xf32>
    %296 = arith.negf %295 : vector<2x32xf32>
    %297 = math.exp %296 : vector<2x32xf32>
    %cst_86 = arith.constant 1.000000e+00 : f32
    %298 = vector.broadcast %cst_86 : f32 to vector<2x32xf32>
    %299 = arith.addf %298, %297 : vector<2x32xf32>
    %300 = arith.divf %298, %299 : vector<2x32xf32>
    %301 = vector.extract_strided_slice %284 {offsets = [0, 64], sizes = [2, 32], strides = [1, 1]} : vector<2x96xf32> to vector<2x32xf32>
    %302 = vector.extract_strided_slice %248 {offsets = [0, 64], sizes = [2, 32], strides = [1, 1]} : vector<2x96xf32> to vector<2x32xf32>
    %303 = vector.broadcast %22 : vector<1x32xf32> to vector<2x32xf32>
    %304 = arith.addf %302, %303 : vector<2x32xf32>
    %305 = arith.mulf %292, %304 : vector<2x32xf32>
    %306 = arith.addf %301, %305 : vector<2x32xf32>
    %307 = math.tanh %306 : vector<2x32xf32>
    %cst_87 = arith.constant 1.000000e+00 : f32
    %308 = vector.broadcast %cst_87 : f32 to vector<2x32xf32>
    %309 = arith.subf %308, %300 : vector<2x32xf32>
    %310 = arith.mulf %309, %307 : vector<2x32xf32>
    %311 = arith.mulf %300, %239 : vector<2x32xf32>
    %312 = arith.addf %310, %311 : vector<2x32xf32>
    %313 = arith.index_cast %250 : i32 to index
    %c0_88 = arith.constant 0 : index
    %314 = vector.load %arg11[%313, %c0_88] : memref<8x32xf32, #tpu.memory_space<vmem>>, vector<2x32xf32>
    tpu.vector_store %arg11[%313, %c0_88], %282 {strides = array<i32>} : memref<8x32xf32, #tpu.memory_space<vmem>>, vector<2x32xf32>,
    %315 = arith.index_cast %252 : i32 to index
    %c0_89 = arith.constant 0 : index
    %316 = vector.load %arg12[%315, %c0_89] : memref<8x32xf32, #tpu.memory_space<vmem>>, vector<2x32xf32>
    tpu.vector_store %arg12[%315, %c0_89], %312 {strides = array<i32>} : memref<8x32xf32, #tpu.memory_space<vmem>>, vector<2x32xf32>,
    %c4_i32 = arith.constant 4 : i32
    %c0_90 = arith.constant 0 : index
    %c0_91 = arith.constant 0 : index
    %317 = vector.load %arg15[%c0_90, %c0_91] : memref<2x32xf32, #tpu.memory_space<vmem>>, vector<2x32xf32>
    tpu.vector_store %arg15[%c0_90, %c0_91], %282 {strides = array<i32>} : memref<2x32xf32, #tpu.memory_space<vmem>>, vector<2x32xf32>,
    %c0_92 = arith.constant 0 : index
    %c0_93 = arith.constant 0 : index
    %318 = vector.load %arg16[%c0_92, %c0_93] : memref<2x32xf32, #tpu.memory_space<vmem>>, vector<2x32xf32>
    tpu.vector_store %arg16[%c0_92, %c0_93], %312 {strides = array<i32>} : memref<2x32xf32, #tpu.memory_space<vmem>>, vector<2x32xf32>,
    %c1_i32_94 = arith.constant 1 : i32
    %319 = arith.cmpi eq, %arg0, %c1_i32_94 : i32
    %320 = arith.extui %319 : i1 to i32
    %c0_i32_95 = arith.constant 0 : i32
    %321 = arith.cmpi ne, %320, %c0_i32_95 : i32
    scf.if %321 {
      %c0_96 = arith.constant 0 : index
      %c0_97 = arith.constant 0 : index
      %322 = vector.load %arg13[%c0_96, %c0_97] : memref<2x32xf32, #tpu.memory_space<vmem>>, vector<2x32xf32>
      tpu.vector_store %arg13[%c0_96, %c0_97], %282 {strides = array<i32>} : memref<2x32xf32, #tpu.memory_space<vmem>>, vector<2x32xf32>,
      %c0_98 = arith.constant 0 : index
      %c0_99 = arith.constant 0 : index
      %323 = vector.load %arg14[%c0_98, %c0_99] : memref<2x32xf32, #tpu.memory_space<vmem>>, vector<2x32xf32>
      tpu.vector_store %arg14[%c0_98, %c0_99], %312 {strides = array<i32>} : memref<2x32xf32, #tpu.memory_space<vmem>>, vector<2x32xf32>,
    } else {
    }
    return
  }
  func.func @transform_0(%arg0: i32) -> (i32, i32) {
    %c0_i32 = arith.constant 0 : i32
    %c0_i32_0 = arith.constant 0 : i32
    return %arg0, %c0_i32 : i32, i32
  }
  func.func @transform_1(%arg0: i32) -> (i32, i32) {
    %c1_i32 = arith.constant 1 : i32
    %0 = arith.subi %c1_i32, %arg0 : i32
    %c0_i32 = arith.constant 0 : i32
    %c0_i32_0 = arith.constant 0 : i32
    return %0, %c0_i32 : i32, i32
  }
  func.func @transform_2(%arg0: i32) -> (i32, i32) {
    %c0_i32 = arith.constant 0 : i32
    %c0_i32_0 = arith.constant 0 : i32
    %c0_i32_1 = arith.constant 0 : i32
    return %c0_i32, %c0_i32_0 : i32, i32
  }
  func.func @transform_3(%arg0: i32) -> (i32, i32) {
    %c0_i32 = arith.constant 0 : i32
    %c0_i32_0 = arith.constant 0 : i32
    %c0_i32_1 = arith.constant 0 : i32
    return %c0_i32, %c0_i32_0 : i32, i32
  }
  func.func @transform_4(%arg0: i32) -> (i32, i32) {
    %c0_i32 = arith.constant 0 : i32
    %c0_i32_0 = arith.constant 0 : i32
    %c0_i32_1 = arith.constant 0 : i32
    return %c0_i32, %c0_i32_0 : i32, i32
  }
  func.func @transform_5(%arg0: i32) -> (i32, i32) {
    %c0_i32 = arith.constant 0 : i32
    %c0_i32_0 = arith.constant 0 : i32
    %c0_i32_1 = arith.constant 0 : i32
    return %c0_i32, %c0_i32_0 : i32, i32
  }
  func.func @transform_6(%arg0: i32) -> (i32, i32) {
    %c0_i32 = arith.constant 0 : i32
    %c0_i32_0 = arith.constant 0 : i32
    %c0_i32_1 = arith.constant 0 : i32
    return %c0_i32, %c0_i32_0 : i32, i32
  }
  func.func @transform_7(%arg0: i32) -> (i32, i32) {
    %c0_i32 = arith.constant 0 : i32
    %c0_i32_0 = arith.constant 0 : i32
    %c0_i32_1 = arith.constant 0 : i32
    return %c0_i32, %c0_i32_0 : i32, i32
  }
  func.func @transform_8(%arg0: i32) -> (i32, i32) {
    %c0_i32 = arith.constant 0 : i32
    %c0_i32_0 = arith.constant 0 : i32
    %c0_i32_1 = arith.constant 0 : i32
    return %c0_i32, %c0_i32_0 : i32, i32
  }
  func.func @transform_9(%arg0: i32) -> (i32, i32) {
    %c0_i32 = arith.constant 0 : i32
    %c0_i32_0 = arith.constant 0 : i32
    %c0_i32_1 = arith.constant 0 : i32
    return %c0_i32, %c0_i32_0 : i32, i32
  }
  func.func @transform_10(%arg0: i32) -> (i32, i32) {
    %c0_i32 = arith.constant 0 : i32
    %c0_i32_0 = arith.constant 0 : i32
    return %arg0, %c0_i32 : i32, i32
  }
  func.func @transform_11(%arg0: i32) -> (i32, i32) {
    %c1_i32 = arith.constant 1 : i32
    %0 = arith.subi %c1_i32, %arg0 : i32
    %c0_i32 = arith.constant 0 : i32
    %c0_i32_0 = arith.constant 0 : i32
    return %0, %c0_i32 : i32, i32
  }
  func.func @transform_12(%arg0: i32) -> (i32, i32) {
    %c0_i32 = arith.constant 0 : i32
    %c0_i32_0 = arith.constant 0 : i32
    %c0_i32_1 = arith.constant 0 : i32
    return %c0_i32, %c0_i32_0 : i32, i32
  }
  func.func @transform_13(%arg0: i32) -> (i32, i32) {
    %c0_i32 = arith.constant 0 : i32
    %c0_i32_0 = arith.constant 0 : i32
    %c0_i32_1 = arith.constant 0 : i32
    return %c0_i32, %c0_i32_0 : i32, i32
  }
}

module attributes {stable_mosaic.version = 11 : i64} {
  func.func @_bigru_layer_kernel(%arg0: i32, %arg1: memref<8x32xf32, #tpu.memory_space<vmem>>, %arg2: memref<8x32xf32, #tpu.memory_space<vmem>>, %arg3: memref<8x32xf32, #tpu.memory_space<vmem>>, %arg4: memref<8x32xf32, #tpu.memory_space<vmem>>, %arg5: memref<32x96xbf16, #tpu.memory_space<vmem>>, %arg6: memref<32x96xbf16, #tpu.memory_space<vmem>>, %arg7: memref<32x96xbf16, #tpu.memory_space<vmem>>, %arg8: memref<32x96xbf16, #tpu.memory_space<vmem>>, %arg9: memref<32x96xbf16, #tpu.memory_space<vmem>>, %arg10: memref<32x96xbf16, #tpu.memory_space<vmem>>, %arg11: memref<1x96xf32, #tpu.memory_space<vmem>>, %arg12: memref<1x96xf32, #tpu.memory_space<vmem>>, %arg13: memref<1x32xf32, #tpu.memory_space<vmem>>, %arg14: memref<1x32xf32, #tpu.memory_space<vmem>>, %arg15: memref<2x32xf32, #tpu.memory_space<vmem>>, %arg16: memref<2x32xf32, #tpu.memory_space<vmem>>, %arg17: memref<2x32xf32, #tpu.memory_space<vmem>>, %arg18: memref<2x32xf32, #tpu.memory_space<vmem>>, %arg19: memref<8x96xf32, #tpu.memory_space<vmem>>, %arg20: memref<8x96xf32, #tpu.memory_space<vmem>>) attributes {dimension_semantics = [#tpu.dimension_semantics<arbitrary>], iteration_bounds = array<i64: 2>, scalar_prefetch = 0 : i64, scratch_operands = 4 : i64, tpu.core_type = #tpu.core_type<tc>, window_params = [{transform_indices = @transform_0, window_bounds = array<i64: 8, 32>}, {transform_indices = @transform_1, window_bounds = array<i64: 8, 32>}, {transform_indices = @transform_2, window_bounds = array<i64: 8, 32>}, {transform_indices = @transform_3, window_bounds = array<i64: 8, 32>}, {pipeline_mode = #tpu.pipeline_mode<synchronous>, transform_indices = @transform_4, window_bounds = array<i64: 32, 96>}, {pipeline_mode = #tpu.pipeline_mode<synchronous>, transform_indices = @transform_5, window_bounds = array<i64: 32, 96>}, {pipeline_mode = #tpu.pipeline_mode<synchronous>, transform_indices = @transform_6, window_bounds = array<i64: 32, 96>}, {pipeline_mode = #tpu.pipeline_mode<synchronous>, transform_indices = @transform_7, window_bounds = array<i64: 32, 96>}, {pipeline_mode = #tpu.pipeline_mode<synchronous>, transform_indices = @transform_8, window_bounds = array<i64: 32, 96>}, {pipeline_mode = #tpu.pipeline_mode<synchronous>, transform_indices = @transform_9, window_bounds = array<i64: 32, 96>}, {pipeline_mode = #tpu.pipeline_mode<synchronous>, transform_indices = @transform_10, window_bounds = array<i64: 1, 96>}, {pipeline_mode = #tpu.pipeline_mode<synchronous>, transform_indices = @transform_11, window_bounds = array<i64: 1, 96>}, {pipeline_mode = #tpu.pipeline_mode<synchronous>, transform_indices = @transform_12, window_bounds = array<i64: 1, 32>}, {pipeline_mode = #tpu.pipeline_mode<synchronous>, transform_indices = @transform_13, window_bounds = array<i64: 1, 32>}, {pipeline_mode = #tpu.pipeline_mode<synchronous>, transform_indices = @transform_14, window_bounds = array<i64: 2, 32>}, {pipeline_mode = #tpu.pipeline_mode<synchronous>, transform_indices = @transform_15, window_bounds = array<i64: 2, 32>}]} {
    %c0_i32 = arith.constant 0 : i32
    %0 = arith.cmpi eq, %arg0, %c0_i32 : i32
    %1 = arith.extui %0 : i1 to i32
    %c0_i32_0 = arith.constant 0 : i32
    %2 = arith.cmpi ne, %1, %c0_i32_0 : i32
    scf.if %2 {
      %cst_98 = arith.constant 0.000000e+00 : f32
      %316 = vector.broadcast %cst_98 : f32 to vector<2x32xf32>
      %c0_99 = arith.constant 0 : index
      %c0_100 = arith.constant 0 : index
      %317 = vector.load %arg17[%c0_99, %c0_100] : memref<2x32xf32, #tpu.memory_space<vmem>>, vector<2x32xf32>
      tpu.vector_store %arg17[%c0_99, %c0_100], %316 {strides = array<i32>} : memref<2x32xf32, #tpu.memory_space<vmem>>, vector<2x32xf32>,
      %cst_101 = arith.constant 0.000000e+00 : f32
      %318 = vector.broadcast %cst_101 : f32 to vector<2x32xf32>
      %c0_102 = arith.constant 0 : index
      %c0_103 = arith.constant 0 : index
      %319 = vector.load %arg18[%c0_102, %c0_103] : memref<2x32xf32, #tpu.memory_space<vmem>>, vector<2x32xf32>
      tpu.vector_store %arg18[%c0_102, %c0_103], %318 {strides = array<i32>} : memref<2x32xf32, #tpu.memory_space<vmem>>, vector<2x32xf32>,
    } else {
    }
    %c0 = arith.constant 0 : index
    %c0_1 = arith.constant 0 : index
    %3 = vector.load %arg1[%c0, %c0_1] : memref<8x32xf32, #tpu.memory_space<vmem>>, vector<8x32xf32>
    %4 = arith.truncf %3 : vector<8x32xf32> to vector<8x32xbf16>
    %c0_2 = arith.constant 0 : index
    %c0_3 = arith.constant 0 : index
    %5 = vector.load %arg5[%c0_2, %c0_3] : memref<32x96xbf16, #tpu.memory_space<vmem>>, vector<32x96xbf16>
    %cst = arith.constant dense<0.000000e+00> : vector<8x96xf32>
    %6 = tpu.matmul %4, %5, %cst {dimension_numbers = #tpu.dot_dimension_numbers<[1], [0], [0], [1], [0, 0, 1, 1], [], []>} : vector<8x32xbf16>, vector<32x96xbf16>, vector<8x96xf32> -> vector<8x96xf32>
    %c0_4 = arith.constant 0 : index
    %c0_5 = arith.constant 0 : index
    %7 = vector.load %arg2[%c0_4, %c0_5] : memref<8x32xf32, #tpu.memory_space<vmem>>, vector<8x32xf32>
    %8 = arith.truncf %7 : vector<8x32xf32> to vector<8x32xbf16>
    %c0_6 = arith.constant 0 : index
    %c0_7 = arith.constant 0 : index
    %9 = vector.load %arg6[%c0_6, %c0_7] : memref<32x96xbf16, #tpu.memory_space<vmem>>, vector<32x96xbf16>
    %cst_8 = arith.constant dense<0.000000e+00> : vector<8x96xf32>
    %10 = tpu.matmul %8, %9, %cst_8 {dimension_numbers = #tpu.dot_dimension_numbers<[1], [0], [0], [1], [0, 0, 1, 1], [], []>} : vector<8x32xbf16>, vector<32x96xbf16>, vector<8x96xf32> -> vector<8x96xf32>
    %11 = arith.addf %6, %10 : vector<8x96xf32>
    %c0_9 = arith.constant 0 : index
    %c0_10 = arith.constant 0 : index
    %12 = vector.load %arg11[%c0_9, %c0_10] : memref<1x96xf32, #tpu.memory_space<vmem>>, vector<1x96xf32>
    %13 = vector.broadcast %12 : vector<1x96xf32> to vector<8x96xf32>
    %14 = arith.addf %11, %13 : vector<8x96xf32>
    %c0_11 = arith.constant 0 : index
    %c0_12 = arith.constant 0 : index
    %15 = vector.load %arg19[%c0_11, %c0_12] : memref<8x96xf32, #tpu.memory_space<vmem>>, vector<8x96xf32>
    tpu.vector_store %arg19[%c0_11, %c0_12], %14 {strides = array<i32>} : memref<8x96xf32, #tpu.memory_space<vmem>>, vector<8x96xf32>,
    %c0_13 = arith.constant 0 : index
    %c0_14 = arith.constant 0 : index
    %16 = vector.load %arg3[%c0_13, %c0_14] : memref<8x32xf32, #tpu.memory_space<vmem>>, vector<8x32xf32>
    %17 = arith.truncf %16 : vector<8x32xf32> to vector<8x32xbf16>
    %c0_15 = arith.constant 0 : index
    %c0_16 = arith.constant 0 : index
    %18 = vector.load %arg7[%c0_15, %c0_16] : memref<32x96xbf16, #tpu.memory_space<vmem>>, vector<32x96xbf16>
    %cst_17 = arith.constant dense<0.000000e+00> : vector<8x96xf32>
    %19 = tpu.matmul %17, %18, %cst_17 {dimension_numbers = #tpu.dot_dimension_numbers<[1], [0], [0], [1], [0, 0, 1, 1], [], []>} : vector<8x32xbf16>, vector<32x96xbf16>, vector<8x96xf32> -> vector<8x96xf32>
    %c0_18 = arith.constant 0 : index
    %c0_19 = arith.constant 0 : index
    %20 = vector.load %arg4[%c0_18, %c0_19] : memref<8x32xf32, #tpu.memory_space<vmem>>, vector<8x32xf32>
    %21 = arith.truncf %20 : vector<8x32xf32> to vector<8x32xbf16>
    %c0_20 = arith.constant 0 : index
    %c0_21 = arith.constant 0 : index
    %22 = vector.load %arg8[%c0_20, %c0_21] : memref<32x96xbf16, #tpu.memory_space<vmem>>, vector<32x96xbf16>
    %cst_22 = arith.constant dense<0.000000e+00> : vector<8x96xf32>
    %23 = tpu.matmul %21, %22, %cst_22 {dimension_numbers = #tpu.dot_dimension_numbers<[1], [0], [0], [1], [0, 0, 1, 1], [], []>} : vector<8x32xbf16>, vector<32x96xbf16>, vector<8x96xf32> -> vector<8x96xf32>
    %24 = arith.addf %19, %23 : vector<8x96xf32>
    %c0_23 = arith.constant 0 : index
    %c0_24 = arith.constant 0 : index
    %25 = vector.load %arg12[%c0_23, %c0_24] : memref<1x96xf32, #tpu.memory_space<vmem>>, vector<1x96xf32>
    %26 = vector.broadcast %25 : vector<1x96xf32> to vector<8x96xf32>
    %27 = arith.addf %24, %26 : vector<8x96xf32>
    %c0_25 = arith.constant 0 : index
    %c0_26 = arith.constant 0 : index
    %28 = vector.load %arg20[%c0_25, %c0_26] : memref<8x96xf32, #tpu.memory_space<vmem>>, vector<8x96xf32>
    tpu.vector_store %arg20[%c0_25, %c0_26], %27 {strides = array<i32>} : memref<8x96xf32, #tpu.memory_space<vmem>>, vector<8x96xf32>,
    %c0_27 = arith.constant 0 : index
    %c0_28 = arith.constant 0 : index
    %29 = vector.load %arg9[%c0_27, %c0_28] : memref<32x96xbf16, #tpu.memory_space<vmem>>, vector<32x96xbf16>
    %c0_29 = arith.constant 0 : index
    %c0_30 = arith.constant 0 : index
    %30 = vector.load %arg10[%c0_29, %c0_30] : memref<32x96xbf16, #tpu.memory_space<vmem>>, vector<32x96xbf16>
    %c0_31 = arith.constant 0 : index
    %c0_32 = arith.constant 0 : index
    %31 = vector.load %arg13[%c0_31, %c0_32] : memref<1x32xf32, #tpu.memory_space<vmem>>, vector<1x32xf32>
    %c0_33 = arith.constant 0 : index
    %c0_34 = arith.constant 0 : index
    %32 = vector.load %arg14[%c0_33, %c0_34] : memref<1x32xf32, #tpu.memory_space<vmem>>, vector<1x32xf32>
    %c0_35 = arith.constant 0 : index
    %c0_36 = arith.constant 0 : index
    %33 = vector.load %arg17[%c0_35, %c0_36] : memref<2x32xf32, #tpu.memory_space<vmem>>, vector<2x32xf32>
    %c0_37 = arith.constant 0 : index
    %c0_38 = arith.constant 0 : index
    %34 = vector.load %arg18[%c0_37, %c0_38] : memref<2x32xf32, #tpu.memory_space<vmem>>, vector<2x32xf32>
    %c0_i32_39 = arith.constant 0 : i32
    %c3_i32 = arith.constant 3 : i32
    %35 = arith.subi %c3_i32, %c0_i32_39 : i32
    %36 = arith.truncf %33 : vector<2x32xf32> to vector<2x32xbf16>
    %cst_40 = arith.constant dense<0.000000e+00> : vector<2x96xf32>
    %37 = tpu.matmul %36, %29, %cst_40 {dimension_numbers = #tpu.dot_dimension_numbers<[1], [0], [0], [1], [0, 0, 1, 1], [], []>} : vector<2x32xbf16>, vector<32x96xbf16>, vector<2x96xf32> -> vector<2x96xf32>
    %38 = arith.truncf %34 : vector<2x32xf32> to vector<2x32xbf16>
    %cst_41 = arith.constant dense<0.000000e+00> : vector<2x96xf32>
    %39 = tpu.matmul %38, %30, %cst_41 {dimension_numbers = #tpu.dot_dimension_numbers<[1], [0], [0], [1], [0, 0, 1, 1], [], []>} : vector<2x32xbf16>, vector<32x96xbf16>, vector<2x96xf32> -> vector<2x96xf32>
    %c2_i32 = arith.constant 2 : i32
    %40 = arith.muli %c0_i32_39, %c2_i32 : i32
    %41 = tpu.assume_multiple %40, 2 : i32
    %c2_i32_42 = arith.constant 2 : i32
    %42 = arith.muli %35, %c2_i32_42 : i32
    %43 = tpu.assume_multiple %42, 2 : i32
    %44 = arith.index_cast %41 : i32 to index
    %c0_43 = arith.constant 0 : index
    %45 = vector.load %arg19[%44, %c0_43] : memref<8x96xf32, #tpu.memory_space<vmem>>, vector<2x96xf32>
    %46 = vector.extract_strided_slice %45 {offsets = [0, 0], sizes = [2, 32], strides = [1, 1]} : vector<2x96xf32> to vector<2x32xf32>
    %47 = vector.extract_strided_slice %37 {offsets = [0, 0], sizes = [2, 32], strides = [1, 1]} : vector<2x96xf32> to vector<2x32xf32>
    %48 = arith.addf %46, %47 : vector<2x32xf32>
    %49 = arith.negf %48 : vector<2x32xf32>
    %50 = math.exp %49 : vector<2x32xf32>
    %cst_44 = arith.constant 1.000000e+00 : f32
    %51 = vector.broadcast %cst_44 : f32 to vector<2x32xf32>
    %52 = arith.addf %51, %50 : vector<2x32xf32>
    %53 = arith.divf %51, %52 : vector<2x32xf32>
    %54 = vector.extract_strided_slice %45 {offsets = [0, 32], sizes = [2, 32], strides = [1, 1]} : vector<2x96xf32> to vector<2x32xf32>
    %55 = vector.extract_strided_slice %37 {offsets = [0, 32], sizes = [2, 32], strides = [1, 1]} : vector<2x96xf32> to vector<2x32xf32>
    %56 = arith.addf %54, %55 : vector<2x32xf32>
    %57 = arith.negf %56 : vector<2x32xf32>
    %58 = math.exp %57 : vector<2x32xf32>
    %cst_45 = arith.constant 1.000000e+00 : f32
    %59 = vector.broadcast %cst_45 : f32 to vector<2x32xf32>
    %60 = arith.addf %59, %58 : vector<2x32xf32>
    %61 = arith.divf %59, %60 : vector<2x32xf32>
    %62 = vector.extract_strided_slice %45 {offsets = [0, 64], sizes = [2, 32], strides = [1, 1]} : vector<2x96xf32> to vector<2x32xf32>
    %63 = vector.extract_strided_slice %37 {offsets = [0, 64], sizes = [2, 32], strides = [1, 1]} : vector<2x96xf32> to vector<2x32xf32>
    %64 = vector.broadcast %31 : vector<1x32xf32> to vector<2x32xf32>
    %65 = arith.addf %63, %64 : vector<2x32xf32>
    %66 = arith.mulf %53, %65 : vector<2x32xf32>
    %67 = arith.addf %62, %66 : vector<2x32xf32>
    %68 = math.tanh %67 : vector<2x32xf32>
    %cst_46 = arith.constant 1.000000e+00 : f32
    %69 = vector.broadcast %cst_46 : f32 to vector<2x32xf32>
    %70 = arith.subf %69, %61 : vector<2x32xf32>
    %71 = arith.mulf %70, %68 : vector<2x32xf32>
    %72 = arith.mulf %61, %33 : vector<2x32xf32>
    %73 = arith.addf %71, %72 : vector<2x32xf32>
    %74 = arith.index_cast %43 : i32 to index
    %c0_47 = arith.constant 0 : index
    %75 = vector.load %arg20[%74, %c0_47] : memref<8x96xf32, #tpu.memory_space<vmem>>, vector<2x96xf32>
    %76 = vector.extract_strided_slice %75 {offsets = [0, 0], sizes = [2, 32], strides = [1, 1]} : vector<2x96xf32> to vector<2x32xf32>
    %77 = vector.extract_strided_slice %39 {offsets = [0, 0], sizes = [2, 32], strides = [1, 1]} : vector<2x96xf32> to vector<2x32xf32>
    %78 = arith.addf %76, %77 : vector<2x32xf32>
    %79 = arith.negf %78 : vector<2x32xf32>
    %80 = math.exp %79 : vector<2x32xf32>
    %cst_48 = arith.constant 1.000000e+00 : f32
    %81 = vector.broadcast %cst_48 : f32 to vector<2x32xf32>
    %82 = arith.addf %81, %80 : vector<2x32xf32>
    %83 = arith.divf %81, %82 : vector<2x32xf32>
    %84 = vector.extract_strided_slice %75 {offsets = [0, 32], sizes = [2, 32], strides = [1, 1]} : vector<2x96xf32> to vector<2x32xf32>
    %85 = vector.extract_strided_slice %39 {offsets = [0, 32], sizes = [2, 32], strides = [1, 1]} : vector<2x96xf32> to vector<2x32xf32>
    %86 = arith.addf %84, %85 : vector<2x32xf32>
    %87 = arith.negf %86 : vector<2x32xf32>
    %88 = math.exp %87 : vector<2x32xf32>
    %cst_49 = arith.constant 1.000000e+00 : f32
    %89 = vector.broadcast %cst_49 : f32 to vector<2x32xf32>
    %90 = arith.addf %89, %88 : vector<2x32xf32>
    %91 = arith.divf %89, %90 : vector<2x32xf32>
    %92 = vector.extract_strided_slice %75 {offsets = [0, 64], sizes = [2, 32], strides = [1, 1]} : vector<2x96xf32> to vector<2x32xf32>
    %93 = vector.extract_strided_slice %39 {offsets = [0, 64], sizes = [2, 32], strides = [1, 1]} : vector<2x96xf32> to vector<2x32xf32>
    %94 = vector.broadcast %32 : vector<1x32xf32> to vector<2x32xf32>
    %95 = arith.addf %93, %94 : vector<2x32xf32>
    %96 = arith.mulf %83, %95 : vector<2x32xf32>
    %97 = arith.addf %92, %96 : vector<2x32xf32>
    %98 = math.tanh %97 : vector<2x32xf32>
    %cst_50 = arith.constant 1.000000e+00 : f32
    %99 = vector.broadcast %cst_50 : f32 to vector<2x32xf32>
    %100 = arith.subf %99, %91 : vector<2x32xf32>
    %101 = arith.mulf %100, %98 : vector<2x32xf32>
    %102 = arith.mulf %91, %34 : vector<2x32xf32>
    %103 = arith.addf %101, %102 : vector<2x32xf32>
    %c1_i32 = arith.constant 1 : i32
    %c3_i32_51 = arith.constant 3 : i32
    %104 = arith.subi %c3_i32_51, %c1_i32 : i32
    %105 = arith.truncf %73 : vector<2x32xf32> to vector<2x32xbf16>
    %cst_52 = arith.constant dense<0.000000e+00> : vector<2x96xf32>
    %106 = tpu.matmul %105, %29, %cst_52 {dimension_numbers = #tpu.dot_dimension_numbers<[1], [0], [0], [1], [0, 0, 1, 1], [], []>} : vector<2x32xbf16>, vector<32x96xbf16>, vector<2x96xf32> -> vector<2x96xf32>
    %107 = arith.truncf %103 : vector<2x32xf32> to vector<2x32xbf16>
    %cst_53 = arith.constant dense<0.000000e+00> : vector<2x96xf32>
    %108 = tpu.matmul %107, %30, %cst_53 {dimension_numbers = #tpu.dot_dimension_numbers<[1], [0], [0], [1], [0, 0, 1, 1], [], []>} : vector<2x32xbf16>, vector<32x96xbf16>, vector<2x96xf32> -> vector<2x96xf32>
    %c2_i32_54 = arith.constant 2 : i32
    %109 = arith.muli %c1_i32, %c2_i32_54 : i32
    %110 = tpu.assume_multiple %109, 2 : i32
    %c2_i32_55 = arith.constant 2 : i32
    %111 = arith.muli %104, %c2_i32_55 : i32
    %112 = tpu.assume_multiple %111, 2 : i32
    %113 = arith.index_cast %110 : i32 to index
    %c0_56 = arith.constant 0 : index
    %114 = vector.load %arg19[%113, %c0_56] : memref<8x96xf32, #tpu.memory_space<vmem>>, vector<2x96xf32>
    %115 = vector.extract_strided_slice %114 {offsets = [0, 0], sizes = [2, 32], strides = [1, 1]} : vector<2x96xf32> to vector<2x32xf32>
    %116 = vector.extract_strided_slice %106 {offsets = [0, 0], sizes = [2, 32], strides = [1, 1]} : vector<2x96xf32> to vector<2x32xf32>
    %117 = arith.addf %115, %116 : vector<2x32xf32>
    %118 = arith.negf %117 : vector<2x32xf32>
    %119 = math.exp %118 : vector<2x32xf32>
    %cst_57 = arith.constant 1.000000e+00 : f32
    %120 = vector.broadcast %cst_57 : f32 to vector<2x32xf32>
    %121 = arith.addf %120, %119 : vector<2x32xf32>
    %122 = arith.divf %120, %121 : vector<2x32xf32>
    %123 = vector.extract_strided_slice %114 {offsets = [0, 32], sizes = [2, 32], strides = [1, 1]} : vector<2x96xf32> to vector<2x32xf32>
    %124 = vector.extract_strided_slice %106 {offsets = [0, 32], sizes = [2, 32], strides = [1, 1]} : vector<2x96xf32> to vector<2x32xf32>
    %125 = arith.addf %123, %124 : vector<2x32xf32>
    %126 = arith.negf %125 : vector<2x32xf32>
    %127 = math.exp %126 : vector<2x32xf32>
    %cst_58 = arith.constant 1.000000e+00 : f32
    %128 = vector.broadcast %cst_58 : f32 to vector<2x32xf32>
    %129 = arith.addf %128, %127 : vector<2x32xf32>
    %130 = arith.divf %128, %129 : vector<2x32xf32>
    %131 = vector.extract_strided_slice %114 {offsets = [0, 64], sizes = [2, 32], strides = [1, 1]} : vector<2x96xf32> to vector<2x32xf32>
    %132 = vector.extract_strided_slice %106 {offsets = [0, 64], sizes = [2, 32], strides = [1, 1]} : vector<2x96xf32> to vector<2x32xf32>
    %133 = vector.broadcast %31 : vector<1x32xf32> to vector<2x32xf32>
    %134 = arith.addf %132, %133 : vector<2x32xf32>
    %135 = arith.mulf %122, %134 : vector<2x32xf32>
    %136 = arith.addf %131, %135 : vector<2x32xf32>
    %137 = math.tanh %136 : vector<2x32xf32>
    %cst_59 = arith.constant 1.000000e+00 : f32
    %138 = vector.broadcast %cst_59 : f32 to vector<2x32xf32>
    %139 = arith.subf %138, %130 : vector<2x32xf32>
    %140 = arith.mulf %139, %137 : vector<2x32xf32>
    %141 = arith.mulf %130, %73 : vector<2x32xf32>
    %142 = arith.addf %140, %141 : vector<2x32xf32>
    %143 = arith.index_cast %112 : i32 to index
    %c0_60 = arith.constant 0 : index
    %144 = vector.load %arg20[%143, %c0_60] : memref<8x96xf32, #tpu.memory_space<vmem>>, vector<2x96xf32>
    %145 = vector.extract_strided_slice %144 {offsets = [0, 0], sizes = [2, 32], strides = [1, 1]} : vector<2x96xf32> to vector<2x32xf32>
    %146 = vector.extract_strided_slice %108 {offsets = [0, 0], sizes = [2, 32], strides = [1, 1]} : vector<2x96xf32> to vector<2x32xf32>
    %147 = arith.addf %145, %146 : vector<2x32xf32>
    %148 = arith.negf %147 : vector<2x32xf32>
    %149 = math.exp %148 : vector<2x32xf32>
    %cst_61 = arith.constant 1.000000e+00 : f32
    %150 = vector.broadcast %cst_61 : f32 to vector<2x32xf32>
    %151 = arith.addf %150, %149 : vector<2x32xf32>
    %152 = arith.divf %150, %151 : vector<2x32xf32>
    %153 = vector.extract_strided_slice %144 {offsets = [0, 32], sizes = [2, 32], strides = [1, 1]} : vector<2x96xf32> to vector<2x32xf32>
    %154 = vector.extract_strided_slice %108 {offsets = [0, 32], sizes = [2, 32], strides = [1, 1]} : vector<2x96xf32> to vector<2x32xf32>
    %155 = arith.addf %153, %154 : vector<2x32xf32>
    %156 = arith.negf %155 : vector<2x32xf32>
    %157 = math.exp %156 : vector<2x32xf32>
    %cst_62 = arith.constant 1.000000e+00 : f32
    %158 = vector.broadcast %cst_62 : f32 to vector<2x32xf32>
    %159 = arith.addf %158, %157 : vector<2x32xf32>
    %160 = arith.divf %158, %159 : vector<2x32xf32>
    %161 = vector.extract_strided_slice %144 {offsets = [0, 64], sizes = [2, 32], strides = [1, 1]} : vector<2x96xf32> to vector<2x32xf32>
    %162 = vector.extract_strided_slice %108 {offsets = [0, 64], sizes = [2, 32], strides = [1, 1]} : vector<2x96xf32> to vector<2x32xf32>
    %163 = vector.broadcast %32 : vector<1x32xf32> to vector<2x32xf32>
    %164 = arith.addf %162, %163 : vector<2x32xf32>
    %165 = arith.mulf %152, %164 : vector<2x32xf32>
    %166 = arith.addf %161, %165 : vector<2x32xf32>
    %167 = math.tanh %166 : vector<2x32xf32>
    %cst_63 = arith.constant 1.000000e+00 : f32
    %168 = vector.broadcast %cst_63 : f32 to vector<2x32xf32>
    %169 = arith.subf %168, %160 : vector<2x32xf32>
    %170 = arith.mulf %169, %167 : vector<2x32xf32>
    %171 = arith.mulf %160, %103 : vector<2x32xf32>
    %172 = arith.addf %170, %171 : vector<2x32xf32>
    %c2_i32_64 = arith.constant 2 : i32
    %c3_i32_65 = arith.constant 3 : i32
    %173 = arith.subi %c3_i32_65, %c2_i32_64 : i32
    %174 = arith.truncf %142 : vector<2x32xf32> to vector<2x32xbf16>
    %cst_66 = arith.constant dense<0.000000e+00> : vector<2x96xf32>
    %175 = tpu.matmul %174, %29, %cst_66 {dimension_numbers = #tpu.dot_dimension_numbers<[1], [0], [0], [1], [0, 0, 1, 1], [], []>} : vector<2x32xbf16>, vector<32x96xbf16>, vector<2x96xf32> -> vector<2x96xf32>
    %176 = arith.truncf %172 : vector<2x32xf32> to vector<2x32xbf16>
    %cst_67 = arith.constant dense<0.000000e+00> : vector<2x96xf32>
    %177 = tpu.matmul %176, %30, %cst_67 {dimension_numbers = #tpu.dot_dimension_numbers<[1], [0], [0], [1], [0, 0, 1, 1], [], []>} : vector<2x32xbf16>, vector<32x96xbf16>, vector<2x96xf32> -> vector<2x96xf32>
    %c2_i32_68 = arith.constant 2 : i32
    %178 = arith.muli %c2_i32_64, %c2_i32_68 : i32
    %179 = tpu.assume_multiple %178, 2 : i32
    %c2_i32_69 = arith.constant 2 : i32
    %180 = arith.muli %173, %c2_i32_69 : i32
    %181 = tpu.assume_multiple %180, 2 : i32
    %182 = arith.index_cast %179 : i32 to index
    %c0_70 = arith.constant 0 : index
    %183 = vector.load %arg19[%182, %c0_70] : memref<8x96xf32, #tpu.memory_space<vmem>>, vector<2x96xf32>
    %184 = vector.extract_strided_slice %183 {offsets = [0, 0], sizes = [2, 32], strides = [1, 1]} : vector<2x96xf32> to vector<2x32xf32>
    %185 = vector.extract_strided_slice %175 {offsets = [0, 0], sizes = [2, 32], strides = [1, 1]} : vector<2x96xf32> to vector<2x32xf32>
    %186 = arith.addf %184, %185 : vector<2x32xf32>
    %187 = arith.negf %186 : vector<2x32xf32>
    %188 = math.exp %187 : vector<2x32xf32>
    %cst_71 = arith.constant 1.000000e+00 : f32
    %189 = vector.broadcast %cst_71 : f32 to vector<2x32xf32>
    %190 = arith.addf %189, %188 : vector<2x32xf32>
    %191 = arith.divf %189, %190 : vector<2x32xf32>
    %192 = vector.extract_strided_slice %183 {offsets = [0, 32], sizes = [2, 32], strides = [1, 1]} : vector<2x96xf32> to vector<2x32xf32>
    %193 = vector.extract_strided_slice %175 {offsets = [0, 32], sizes = [2, 32], strides = [1, 1]} : vector<2x96xf32> to vector<2x32xf32>
    %194 = arith.addf %192, %193 : vector<2x32xf32>
    %195 = arith.negf %194 : vector<2x32xf32>
    %196 = math.exp %195 : vector<2x32xf32>
    %cst_72 = arith.constant 1.000000e+00 : f32
    %197 = vector.broadcast %cst_72 : f32 to vector<2x32xf32>
    %198 = arith.addf %197, %196 : vector<2x32xf32>
    %199 = arith.divf %197, %198 : vector<2x32xf32>
    %200 = vector.extract_strided_slice %183 {offsets = [0, 64], sizes = [2, 32], strides = [1, 1]} : vector<2x96xf32> to vector<2x32xf32>
    %201 = vector.extract_strided_slice %175 {offsets = [0, 64], sizes = [2, 32], strides = [1, 1]} : vector<2x96xf32> to vector<2x32xf32>
    %202 = vector.broadcast %31 : vector<1x32xf32> to vector<2x32xf32>
    %203 = arith.addf %201, %202 : vector<2x32xf32>
    %204 = arith.mulf %191, %203 : vector<2x32xf32>
    %205 = arith.addf %200, %204 : vector<2x32xf32>
    %206 = math.tanh %205 : vector<2x32xf32>
    %cst_73 = arith.constant 1.000000e+00 : f32
    %207 = vector.broadcast %cst_73 : f32 to vector<2x32xf32>
    %208 = arith.subf %207, %199 : vector<2x32xf32>
    %209 = arith.mulf %208, %206 : vector<2x32xf32>
    %210 = arith.mulf %199, %142 : vector<2x32xf32>
    %211 = arith.addf %209, %210 : vector<2x32xf32>
    %212 = arith.index_cast %181 : i32 to index
    %c0_74 = arith.constant 0 : index
    %213 = vector.load %arg20[%212, %c0_74] : memref<8x96xf32, #tpu.memory_space<vmem>>, vector<2x96xf32>
    %214 = vector.extract_strided_slice %213 {offsets = [0, 0], sizes = [2, 32], strides = [1, 1]} : vector<2x96xf32> to vector<2x32xf32>
    %215 = vector.extract_strided_slice %177 {offsets = [0, 0], sizes = [2, 32], strides = [1, 1]} : vector<2x96xf32> to vector<2x32xf32>
    %216 = arith.addf %214, %215 : vector<2x32xf32>
    %217 = arith.negf %216 : vector<2x32xf32>
    %218 = math.exp %217 : vector<2x32xf32>
    %cst_75 = arith.constant 1.000000e+00 : f32
    %219 = vector.broadcast %cst_75 : f32 to vector<2x32xf32>
    %220 = arith.addf %219, %218 : vector<2x32xf32>
    %221 = arith.divf %219, %220 : vector<2x32xf32>
    %222 = vector.extract_strided_slice %213 {offsets = [0, 32], sizes = [2, 32], strides = [1, 1]} : vector<2x96xf32> to vector<2x32xf32>
    %223 = vector.extract_strided_slice %177 {offsets = [0, 32], sizes = [2, 32], strides = [1, 1]} : vector<2x96xf32> to vector<2x32xf32>
    %224 = arith.addf %222, %223 : vector<2x32xf32>
    %225 = arith.negf %224 : vector<2x32xf32>
    %226 = math.exp %225 : vector<2x32xf32>
    %cst_76 = arith.constant 1.000000e+00 : f32
    %227 = vector.broadcast %cst_76 : f32 to vector<2x32xf32>
    %228 = arith.addf %227, %226 : vector<2x32xf32>
    %229 = arith.divf %227, %228 : vector<2x32xf32>
    %230 = vector.extract_strided_slice %213 {offsets = [0, 64], sizes = [2, 32], strides = [1, 1]} : vector<2x96xf32> to vector<2x32xf32>
    %231 = vector.extract_strided_slice %177 {offsets = [0, 64], sizes = [2, 32], strides = [1, 1]} : vector<2x96xf32> to vector<2x32xf32>
    %232 = vector.broadcast %32 : vector<1x32xf32> to vector<2x32xf32>
    %233 = arith.addf %231, %232 : vector<2x32xf32>
    %234 = arith.mulf %221, %233 : vector<2x32xf32>
    %235 = arith.addf %230, %234 : vector<2x32xf32>
    %236 = math.tanh %235 : vector<2x32xf32>
    %cst_77 = arith.constant 1.000000e+00 : f32
    %237 = vector.broadcast %cst_77 : f32 to vector<2x32xf32>
    %238 = arith.subf %237, %229 : vector<2x32xf32>
    %239 = arith.mulf %238, %236 : vector<2x32xf32>
    %240 = arith.mulf %229, %172 : vector<2x32xf32>
    %241 = arith.addf %239, %240 : vector<2x32xf32>
    %c3_i32_78 = arith.constant 3 : i32
    %c3_i32_79 = arith.constant 3 : i32
    %242 = arith.subi %c3_i32_79, %c3_i32_78 : i32
    %243 = arith.truncf %211 : vector<2x32xf32> to vector<2x32xbf16>
    %cst_80 = arith.constant dense<0.000000e+00> : vector<2x96xf32>
    %244 = tpu.matmul %243, %29, %cst_80 {dimension_numbers = #tpu.dot_dimension_numbers<[1], [0], [0], [1], [0, 0, 1, 1], [], []>} : vector<2x32xbf16>, vector<32x96xbf16>, vector<2x96xf32> -> vector<2x96xf32>
    %245 = arith.truncf %241 : vector<2x32xf32> to vector<2x32xbf16>
    %cst_81 = arith.constant dense<0.000000e+00> : vector<2x96xf32>
    %246 = tpu.matmul %245, %30, %cst_81 {dimension_numbers = #tpu.dot_dimension_numbers<[1], [0], [0], [1], [0, 0, 1, 1], [], []>} : vector<2x32xbf16>, vector<32x96xbf16>, vector<2x96xf32> -> vector<2x96xf32>
    %c2_i32_82 = arith.constant 2 : i32
    %247 = arith.muli %c3_i32_78, %c2_i32_82 : i32
    %248 = tpu.assume_multiple %247, 2 : i32
    %c2_i32_83 = arith.constant 2 : i32
    %249 = arith.muli %242, %c2_i32_83 : i32
    %250 = tpu.assume_multiple %249, 2 : i32
    %251 = arith.index_cast %248 : i32 to index
    %c0_84 = arith.constant 0 : index
    %252 = vector.load %arg19[%251, %c0_84] : memref<8x96xf32, #tpu.memory_space<vmem>>, vector<2x96xf32>
    %253 = vector.extract_strided_slice %252 {offsets = [0, 0], sizes = [2, 32], strides = [1, 1]} : vector<2x96xf32> to vector<2x32xf32>
    %254 = vector.extract_strided_slice %244 {offsets = [0, 0], sizes = [2, 32], strides = [1, 1]} : vector<2x96xf32> to vector<2x32xf32>
    %255 = arith.addf %253, %254 : vector<2x32xf32>
    %256 = arith.negf %255 : vector<2x32xf32>
    %257 = math.exp %256 : vector<2x32xf32>
    %cst_85 = arith.constant 1.000000e+00 : f32
    %258 = vector.broadcast %cst_85 : f32 to vector<2x32xf32>
    %259 = arith.addf %258, %257 : vector<2x32xf32>
    %260 = arith.divf %258, %259 : vector<2x32xf32>
    %261 = vector.extract_strided_slice %252 {offsets = [0, 32], sizes = [2, 32], strides = [1, 1]} : vector<2x96xf32> to vector<2x32xf32>
    %262 = vector.extract_strided_slice %244 {offsets = [0, 32], sizes = [2, 32], strides = [1, 1]} : vector<2x96xf32> to vector<2x32xf32>
    %263 = arith.addf %261, %262 : vector<2x32xf32>
    %264 = arith.negf %263 : vector<2x32xf32>
    %265 = math.exp %264 : vector<2x32xf32>
    %cst_86 = arith.constant 1.000000e+00 : f32
    %266 = vector.broadcast %cst_86 : f32 to vector<2x32xf32>
    %267 = arith.addf %266, %265 : vector<2x32xf32>
    %268 = arith.divf %266, %267 : vector<2x32xf32>
    %269 = vector.extract_strided_slice %252 {offsets = [0, 64], sizes = [2, 32], strides = [1, 1]} : vector<2x96xf32> to vector<2x32xf32>
    %270 = vector.extract_strided_slice %244 {offsets = [0, 64], sizes = [2, 32], strides = [1, 1]} : vector<2x96xf32> to vector<2x32xf32>
    %271 = vector.broadcast %31 : vector<1x32xf32> to vector<2x32xf32>
    %272 = arith.addf %270, %271 : vector<2x32xf32>
    %273 = arith.mulf %260, %272 : vector<2x32xf32>
    %274 = arith.addf %269, %273 : vector<2x32xf32>
    %275 = math.tanh %274 : vector<2x32xf32>
    %cst_87 = arith.constant 1.000000e+00 : f32
    %276 = vector.broadcast %cst_87 : f32 to vector<2x32xf32>
    %277 = arith.subf %276, %268 : vector<2x32xf32>
    %278 = arith.mulf %277, %275 : vector<2x32xf32>
    %279 = arith.mulf %268, %211 : vector<2x32xf32>
    %280 = arith.addf %278, %279 : vector<2x32xf32>
    %281 = arith.index_cast %250 : i32 to index
    %c0_88 = arith.constant 0 : index
    %282 = vector.load %arg20[%281, %c0_88] : memref<8x96xf32, #tpu.memory_space<vmem>>, vector<2x96xf32>
    %283 = vector.extract_strided_slice %282 {offsets = [0, 0], sizes = [2, 32], strides = [1, 1]} : vector<2x96xf32> to vector<2x32xf32>
    %284 = vector.extract_strided_slice %246 {offsets = [0, 0], sizes = [2, 32], strides = [1, 1]} : vector<2x96xf32> to vector<2x32xf32>
    %285 = arith.addf %283, %284 : vector<2x32xf32>
    %286 = arith.negf %285 : vector<2x32xf32>
    %287 = math.exp %286 : vector<2x32xf32>
    %cst_89 = arith.constant 1.000000e+00 : f32
    %288 = vector.broadcast %cst_89 : f32 to vector<2x32xf32>
    %289 = arith.addf %288, %287 : vector<2x32xf32>
    %290 = arith.divf %288, %289 : vector<2x32xf32>
    %291 = vector.extract_strided_slice %282 {offsets = [0, 32], sizes = [2, 32], strides = [1, 1]} : vector<2x96xf32> to vector<2x32xf32>
    %292 = vector.extract_strided_slice %246 {offsets = [0, 32], sizes = [2, 32], strides = [1, 1]} : vector<2x96xf32> to vector<2x32xf32>
    %293 = arith.addf %291, %292 : vector<2x32xf32>
    %294 = arith.negf %293 : vector<2x32xf32>
    %295 = math.exp %294 : vector<2x32xf32>
    %cst_90 = arith.constant 1.000000e+00 : f32
    %296 = vector.broadcast %cst_90 : f32 to vector<2x32xf32>
    %297 = arith.addf %296, %295 : vector<2x32xf32>
    %298 = arith.divf %296, %297 : vector<2x32xf32>
    %299 = vector.extract_strided_slice %282 {offsets = [0, 64], sizes = [2, 32], strides = [1, 1]} : vector<2x96xf32> to vector<2x32xf32>
    %300 = vector.extract_strided_slice %246 {offsets = [0, 64], sizes = [2, 32], strides = [1, 1]} : vector<2x96xf32> to vector<2x32xf32>
    %301 = vector.broadcast %32 : vector<1x32xf32> to vector<2x32xf32>
    %302 = arith.addf %300, %301 : vector<2x32xf32>
    %303 = arith.mulf %290, %302 : vector<2x32xf32>
    %304 = arith.addf %299, %303 : vector<2x32xf32>
    %305 = math.tanh %304 : vector<2x32xf32>
    %cst_91 = arith.constant 1.000000e+00 : f32
    %306 = vector.broadcast %cst_91 : f32 to vector<2x32xf32>
    %307 = arith.subf %306, %298 : vector<2x32xf32>
    %308 = arith.mulf %307, %305 : vector<2x32xf32>
    %309 = arith.mulf %298, %241 : vector<2x32xf32>
    %310 = arith.addf %308, %309 : vector<2x32xf32>
    %c4_i32 = arith.constant 4 : i32
    %c0_92 = arith.constant 0 : index
    %c0_93 = arith.constant 0 : index
    %311 = vector.load %arg17[%c0_92, %c0_93] : memref<2x32xf32, #tpu.memory_space<vmem>>, vector<2x32xf32>
    tpu.vector_store %arg17[%c0_92, %c0_93], %280 {strides = array<i32>} : memref<2x32xf32, #tpu.memory_space<vmem>>, vector<2x32xf32>,
    %c0_94 = arith.constant 0 : index
    %c0_95 = arith.constant 0 : index
    %312 = vector.load %arg18[%c0_94, %c0_95] : memref<2x32xf32, #tpu.memory_space<vmem>>, vector<2x32xf32>
    tpu.vector_store %arg18[%c0_94, %c0_95], %310 {strides = array<i32>} : memref<2x32xf32, #tpu.memory_space<vmem>>, vector<2x32xf32>,
    %c1_i32_96 = arith.constant 1 : i32
    %313 = arith.cmpi eq, %arg0, %c1_i32_96 : i32
    %314 = arith.extui %313 : i1 to i32
    %c0_i32_97 = arith.constant 0 : i32
    %315 = arith.cmpi ne, %314, %c0_i32_97 : i32
    scf.if %315 {
      %c0_98 = arith.constant 0 : index
      %c0_99 = arith.constant 0 : index
      %316 = vector.load %arg15[%c0_98, %c0_99] : memref<2x32xf32, #tpu.memory_space<vmem>>, vector<2x32xf32>
      tpu.vector_store %arg15[%c0_98, %c0_99], %280 {strides = array<i32>} : memref<2x32xf32, #tpu.memory_space<vmem>>, vector<2x32xf32>,
      %c0_100 = arith.constant 0 : index
      %c0_101 = arith.constant 0 : index
      %317 = vector.load %arg16[%c0_100, %c0_101] : memref<2x32xf32, #tpu.memory_space<vmem>>, vector<2x32xf32>
      tpu.vector_store %arg16[%c0_100, %c0_101], %310 {strides = array<i32>} : memref<2x32xf32, #tpu.memory_space<vmem>>, vector<2x32xf32>,
    } else {
    }
    return
  }
  func.func @transform_0(%arg0: i32) -> (i32, i32) {
    %c0_i32 = arith.constant 0 : i32
    %c0_i32_0 = arith.constant 0 : i32
    return %arg0, %c0_i32 : i32, i32
  }
  func.func @transform_1(%arg0: i32) -> (i32, i32) {
    %c0_i32 = arith.constant 0 : i32
    %c0_i32_0 = arith.constant 0 : i32
    return %arg0, %c0_i32 : i32, i32
  }
  func.func @transform_2(%arg0: i32) -> (i32, i32) {
    %c1_i32 = arith.constant 1 : i32
    %0 = arith.subi %c1_i32, %arg0 : i32
    %c0_i32 = arith.constant 0 : i32
    %c0_i32_0 = arith.constant 0 : i32
    return %0, %c0_i32 : i32, i32
  }
  func.func @transform_3(%arg0: i32) -> (i32, i32) {
    %c1_i32 = arith.constant 1 : i32
    %0 = arith.subi %c1_i32, %arg0 : i32
    %c0_i32 = arith.constant 0 : i32
    %c0_i32_0 = arith.constant 0 : i32
    return %0, %c0_i32 : i32, i32
  }
  func.func @transform_4(%arg0: i32) -> (i32, i32) {
    %c0_i32 = arith.constant 0 : i32
    %c0_i32_0 = arith.constant 0 : i32
    %c0_i32_1 = arith.constant 0 : i32
    return %c0_i32, %c0_i32_0 : i32, i32
  }
  func.func @transform_5(%arg0: i32) -> (i32, i32) {
    %c0_i32 = arith.constant 0 : i32
    %c0_i32_0 = arith.constant 0 : i32
    %c0_i32_1 = arith.constant 0 : i32
    return %c0_i32, %c0_i32_0 : i32, i32
  }
  func.func @transform_6(%arg0: i32) -> (i32, i32) {
    %c0_i32 = arith.constant 0 : i32
    %c0_i32_0 = arith.constant 0 : i32
    %c0_i32_1 = arith.constant 0 : i32
    return %c0_i32, %c0_i32_0 : i32, i32
  }
  func.func @transform_7(%arg0: i32) -> (i32, i32) {
    %c0_i32 = arith.constant 0 : i32
    %c0_i32_0 = arith.constant 0 : i32
    %c0_i32_1 = arith.constant 0 : i32
    return %c0_i32, %c0_i32_0 : i32, i32
  }
  func.func @transform_8(%arg0: i32) -> (i32, i32) {
    %c0_i32 = arith.constant 0 : i32
    %c0_i32_0 = arith.constant 0 : i32
    %c0_i32_1 = arith.constant 0 : i32
    return %c0_i32, %c0_i32_0 : i32, i32
  }
  func.func @transform_9(%arg0: i32) -> (i32, i32) {
    %c0_i32 = arith.constant 0 : i32
    %c0_i32_0 = arith.constant 0 : i32
    %c0_i32_1 = arith.constant 0 : i32
    return %c0_i32, %c0_i32_0 : i32, i32
  }
  func.func @transform_10(%arg0: i32) -> (i32, i32) {
    %c0_i32 = arith.constant 0 : i32
    %c0_i32_0 = arith.constant 0 : i32
    %c0_i32_1 = arith.constant 0 : i32
    return %c0_i32, %c0_i32_0 : i32, i32
  }
  func.func @transform_11(%arg0: i32) -> (i32, i32) {
    %c0_i32 = arith.constant 0 : i32
    %c0_i32_0 = arith.constant 0 : i32
    %c0_i32_1 = arith.constant 0 : i32
    return %c0_i32, %c0_i32_0 : i32, i32
  }
  func.func @transform_12(%arg0: i32) -> (i32, i32) {
    %c0_i32 = arith.constant 0 : i32
    %c0_i32_0 = arith.constant 0 : i32
    %c0_i32_1 = arith.constant 0 : i32
    return %c0_i32, %c0_i32_0 : i32, i32
  }
  func.func @transform_13(%arg0: i32) -> (i32, i32) {
    %c0_i32 = arith.constant 0 : i32
    %c0_i32_0 = arith.constant 0 : i32
    %c0_i32_1 = arith.constant 0 : i32
    return %c0_i32, %c0_i32_0 : i32, i32
  }
  func.func @transform_14(%arg0: i32) -> (i32, i32) {
    %c0_i32 = arith.constant 0 : i32
    %c0_i32_0 = arith.constant 0 : i32
    %c0_i32_1 = arith.constant 0 : i32
    return %c0_i32, %c0_i32_0 : i32, i32
  }
  func.func @transform_15(%arg0: i32) -> (i32, i32) {
    %c0_i32 = arith.constant 0 : i32
    %c0_i32_0 = arith.constant 0 : i32
    %c0_i32_1 = arith.constant 0 : i32
    return %c0_i32, %c0_i32_0 : i32, i32
  }
}

</mosaic_0001>

<bundles_post_ra>
// kernel: _lambda_.3
= control target key start
LH: loop header
LB: loop body
LE: loop exit
PB: predicated region body
PF: predicated region fallthrough
CT: control target
= control target key end

     0   :  { %s2296_s0 = inlined_call_operand.vmem [shape: f32[16,32], index: 0, kind: input, shape index: {}, may-alias: {0,2}]   ;;  %s2297_s1 = inlined_call_operand.vmem [shape: f32[16,32], index: 1, kind: input, shape index: {}, may-alias: {1,3}]   ;;  %s2298_s2 = inlined_call_operand.vmem [shape: f32[16,32], index: 2, kind: input, shape index: {}, may-alias: {0,2}]   ;;  %s2299_s3 = inlined_call_operand.vmem [shape: f32[16,32], index: 3, kind: input, shape index: {}, may-alias: {1,3}]   ;;  %s2300_s4 = inlined_call_operand.hbm [shape: bf16[32,96], index: 4, kind: input, shape index: {}]   ;;  %s2301_s5 = inlined_call_operand.hbm [shape: bf16[32,96], index: 5, kind: input, shape index: {}]   ;;  %s2302_s6 = inlined_call_operand.hbm [shape: bf16[32,96], index: 6, kind: input, shape index: {}]   ;;  %s2303_s7 = inlined_call_operand.hbm [shape: bf16[32,96], index: 7, kind: input, shape index: {}]   ;;  %s2304_s8 = inlined_call_operand.vmem [shape: bf16[32,96], index: 8, kind: input, shape index: {}]   ;;  %s2305_s9 = inlined_call_operand.vmem [shape: bf16[32,96], index: 9, kind: input, shape index: {}]   ;;  %s2306_s10 = inlined_call_operand.hbm [shape: f32[1,96], index: 10, kind: input, shape index: {}]   ;;  %s2307_s11 = inlined_call_operand.hbm [shape: f32[1,96], index: 11, kind: input, shape index: {}]   ;;  %s2308_s12 = inlined_call_operand.hbm [shape: f32[1,32], index: 12, kind: input, shape index: {}]   ;;  %s2309_s13 = inlined_call_operand.vmem [shape: f32[1,32], index: 13, kind: input, shape index: {}]   ;;  %s2310_s14 = inlined_call_operand.vmem [shape: f32[2,32], index: 14, kind: output, shape index: {0}]   ;;  %s2311_s15 = inlined_call_operand.vmem [shape: f32[2,32], index: 15, kind: output, shape index: {1}]  }
   0x1   :  { %2313 = sst [smem:[#allocation22_spill]] %s2301_s5 }
   0x2   :  { %2314 = sst [smem:[#allocation23_spill]] %s2303_s7 }
   0x3   :  { %2315 = sst [smem:[#allocation24_spill]] %s2307_s11 }
   0x4   :  { %2316 = sst [smem:[#allocation25_spill]] %s2311_s15 }
   0x5   :  { %21 = vsyncpa [#allocation7], 0 }
   0x6   :  { %22 = vsyncpa [#allocation9], 0 }
   0x7   :  { %23 = vsyncpa [#allocation12], 0 }
   0x8   :  { %24 = vsyncpa [#allocation15], 0  ;;  %s2076_s18 = smov 0  }
   0x9 LB: > { %2317 = sst [smem:[#allocation21_spill]] %s1981_s18  ;;  %s2082_s19 = sadd.s32 4294967295, %s1981_s18   ;;  %s1981_s18 = sphi %s2076_s18, %s30_s18  }
   0xa   : > { %p1507_p0 = scmp.ge.s32.totalorder %s1981_s18, 1  ;;  %p395_p1 = scmp.lt.s32.totalorder %s1981_s18, 3 }
   0xb   : > { %p1508_p2 = scmp.ne.s32.totalorder %s2082_s19, 0  ;;  %p1662_p3 = scmp.eq.s32.totalorder %s2082_s19, 0 }
   0xc   : > { %s2318_s5 = sld [smem:[#allocation22_spill]]  ;;  %p2091_p4 = pnand %p1507_p0, %p395_p1 }
   0xd   : > { %s2320_s7 = sld [smem:[#allocation23_spill]]  ;;  %s1983_s27 = smov [#allocation8]  }
   0xe   : > { %p1640_p5 = pneg %p2091_p4  ;;  %s422_s28 = sshll.u32 %s1983_s27, 4  ;;  %s423_s28 = int_to_ptr.vmem [resolvable:$true] %s422_s28 }
   0xf   : > { %s1984_s30 = smov [#allocation11]   ;;  %s2322_s11 = sld [smem:[#allocation24_spill]] }
  0x10   : > { %p2102_p6 = pnand %p1662_p3, %p1640_p5  ;;  %s450_s16 = sshll.u32 %s1984_s30, 4  ;;  %s451_s16 = int_to_ptr.vmem [resolvable:$true] %s450_s16 }
  0x11   : > { %s1985_s24 = smov 64   ;;  %s1986_s25 = smov 4  }
  0x12   : > { %s420_s22 = sshll.u32 %s2318_s5, 4  ;;  %s1987_s27 = smov [#allocation14]   ;;  %s421_s22 = int_to_ptr.hbm [resolvable:$true] %s420_s22 }
  0x13   : > { %s448_s26 = sshll.u32 %s2320_s7, 4  ;;  %s483_s5 = sshll.u32 %s1987_s27, 4  ;;  %s449_s26 = int_to_ptr.hbm [resolvable:$true] %s448_s26  ;;  %s484_s5 = int_to_ptr.vmem [resolvable:$true] %s483_s5 }
  0x14   : > { %1646 = dma.hbm_to_vmem [thread:$0]  (!%p2102_p6), %s421_s22, 256, %s423_s28, [#allocation9], %s1985_s24, %s1985_s24, %s1986_s25  }
  0x15   : > { %s481_s21 = sshll.u32 %s2322_s11, 4  ;;  %s406_s30 = sshll.u32 %s2300_s4, 4  ;;  %s482_s21 = int_to_ptr.hbm [resolvable:$true] %s481_s21  ;;  %s407_s30 = int_to_ptr.hbm [resolvable:$true] %s406_s30 }
  0x16   : > { %1652 = dma.hbm_to_vmem [thread:$0]  (!%p2102_p6), %s449_s26, 256, %s451_s16, [#allocation12], %s1985_s24, %s1985_s24, %s1986_s25  }
  0x17   : > { %1658 = dma.hbm_to_vmem [thread:$0]  (!%p2102_p6), %s482_s21, 16, %s484_s5, [#allocation15]  }
  0x18   : > { %s434_s11 = sshll.u32 %s2302_s6, 4  ;;  %s1988_s15 = smov [#allocation6]   ;;  %s435_s11 = int_to_ptr.hbm [resolvable:$true] %s434_s11 }
  0x19   : > { %s408_s22 = sshll.u32 %s1988_s15, 4  ;;  %s1989_s26 = smov [#allocation10]   ;;  %s409_s22 = int_to_ptr.vmem [resolvable:$true] %s408_s22 }
  0x1a   : > { %1643 = dma.hbm_to_vmem [thread:$0]  (!%p2102_p6), %s407_s30, 256, %s409_s22, [#allocation7], %s1985_s24, %s1985_s24, %s1986_s25  }
  0x1b   : > { %s436_s7 = sshll.u32 %s1989_s26, 4  ;;  %s469_s16 = sshll.u32 %s2306_s10, 4  ;;  %s437_s7 = int_to_ptr.vmem [resolvable:$true] %s436_s7  ;;  %s470_s16 = int_to_ptr.hbm [resolvable:$true] %s469_s16 }
  0x1c   : > { %1649 = dma.hbm_to_vmem [thread:$0]  (!%p2102_p6), %s435_s11, 256, %s437_s7, [#allocation9], %s1985_s24, %s1985_s24, %s1986_s25  }
  0x1d   : > { %s493_s27 = sshll.u32 %s2308_s12, 4  ;;  %s1990_s15 = smov [#allocation13]   ;;  %s494_s27 = int_to_ptr.hbm [resolvable:$true] %s493_s27 }
  0x1e   : > { %s471_s17 = sshll.u32 %s1990_s15, 4  ;;  %s1991_s30 = smov [#allocation16]   ;;  %s472_s17 = int_to_ptr.vmem [resolvable:$true] %s471_s17 }
  0x1f   : > { %1655 = dma.hbm_to_vmem [thread:$0]  (!%p2102_p6), %s470_s16, 16, %s472_s17, [#allocation12]  }
  0x20   : > { %s495_s20 = sshll.u32 %s1991_s30, 4  ;;  %543 = sbr.rel (%p2091_p4) target bundleno = 2392 (0x958), region = 76  ;;  %s496_s20 = int_to_ptr.vmem [resolvable:$true] %s495_s20 }
  0x21   : > { %1661 = dma.hbm_to_vmem [thread:$0]  (!%p2102_p6), %s494_s27, 16, %s496_s20, [#allocation15]  }
  0x25   : > { %1964 = dma.done.wait (%p1662_p3), [#allocation7], 256  }
  0x26   : > { %1966 = vsyncadd (%p1662_p3), [#allocation7], 4294967040 }
  0x27   : > { %1968 = dma.done.wait (%p1662_p3), [#allocation9], 512  }
  0x28   : > { %1970 = vsyncadd (%p1662_p3), [#allocation9], 4294966784 }
  0x29   : > { %1972 = dma.done.wait (%p1662_p3), [#allocation12], 272  }
  0x2a   : > { %1974 = vsyncadd (%p1662_p3), [#allocation12], 4294967024 }
  0x2b   : > { %1976 = dma.done.wait (%p1662_p3), [#allocation15], 32  }
  0x2c   : > { %1978 = vsyncadd (%p1662_p3), [#allocation15], 4294967264  ;;  %p630_p7 = scmp.lt.s32.totalorder %s2082_s19, 1  ;;  %s638_s11 = ssub.s32 1, %s2082_s19 }
  0x2d   : > { %p639_p8 = scmp.lt.s32.totalorder %s638_s11, 1 }
  0x2e   : > { %s631_s23 = scalar_select %p630_p7, %s2082_s19, 1 }
  0x2f   : > { %s2326_s11 = smov (!%p639_p8, %s638_s11), 1  ;;  %654 = sbr.rel (%p1508_p2) target bundleno = 55 (0x37), region = 108 }
  0x30   : > { %s1524_s29 = sshll.u32 %s631_s23, 3  ;;  %s1526_s28 = sshll.u32 %s2326_s11, 3 }
  0x31   : > { %s633_s22 = scalar_lea.vmem %s2296_s0, %s1524_s29  ;;  %s637_s18 = scalar_lea.vmem %s2297_s1, %s1524_s29 }
  0x32   : > { %s2165_s21 = scalar_lea.vmem %s2298_s2, %s1526_s28  ;;  %s2170_s17 = scalar_lea.vmem %s2299_s3, %s1526_s28 }
  0x34   : > { %vm655_vm0 = vcmask 254976   ;;  %v1992_v0 = vmov 0.0  }
  0x35   : > { %656 = vst.msk [vmem:[#allocation2] sm:$0x3] %vm655_vm0, %v1992_v0 }
  0x36   : > { %657 = vst.msk [vmem:[#allocation3] sm:$0x3] %vm655_vm0, %v1992_v0 }
  0x37 PF: > { %v1603_v1 = vld [vmem:[#allocation8 + $0x8] sm:$0xff]  ;;  %v1601_v2 = vld [vmem:[#allocation6 + $0x8] sm:$0xff]  ;;  %v1602_v3 = vld [vmem:[#allocation8] sm:$0xff]  ;;  %vm682_vm1 = vcmask 261120   ;;  %s1993_s26 = smov 64   ;;  %vm732_vm2 = vcmask 785408  }
  0x38   : > { %692 = vmatpush.bf16.msra.mxu0 %v1603_v1  ;;  %720 = vmatpush.bf16.msra.mxu1 %v1601_v2  ;;  %v1600_v4 = vld [vmem:[#allocation6] sm:$0xff]  ;;  %v664_v5 = vld [vmem:[%s637_s18] sm:$0xff]  ;;  %v1609_v7 = vld [vmem:[%s2304_s8 + $0x8] sm:$0xff]  ;;  %s1994_s28 = smov 32   ;;  %s1995_s16 = smov 96  }
  0x39   : > { %v658_v6 = vld [vmem:[%s633_s22] sm:$0xff]  ;;  %v1611_v8 = vld [vmem:[%s2305_s9 + $0x8] sm:$0xff]  ;;  %v665_v11 = vpack.c.bf16 %v664_v5, %v664_v5  ;;  %v1697_v15 = vld [vmem:[#allocation16] ss:$0 sm:$0xff]  ;;  %p1597_p9 = scmp.ne.s32.totalorder %s2082_s19, 1 }
  0x3a   : > { %v1607_v9 = vld [vmem:[#allocation11 + $0x8] sm:$0xff]  ;;  %v1605_v10 = vld [vmem:[#allocation10 + $0x8] sm:$0xff]  ;;  %v659_v12 = vpack.c.bf16 %v658_v6, %v658_v6  ;;  %v1606_v16 = vld [vmem:[#allocation11] sm:$0xff]  ;;  %901 = vrot.lane.b32.xlu0 %v1697_v15, %s1993_s26 }
  0x3b   : > { %v1608_v13 = vld [vmem:[%s2304_s8] sm:$0xff]  ;;  %767 = vmatpush.bf16.msra.mxu2 %v1607_v9  ;;  %795 = vmatpush.bf16.msra.mxu3 %v1605_v10  ;;  %v1604_v17 = vld [vmem:[#allocation10] sm:$0xff] }
  0x3c   : > { %693 = vmatpush.bf16.msra.mxu0 %v1602_v3  ;;  %721 = vmatpush.bf16.msra.mxu1 %v1600_v4  ;;  %v1610_v14 = vld [vmem:[%s2305_s9] sm:$0xff]  ;;  %v1699_v27 = vld [vmem:[#allocation13] ss:$0 sm:$0xff]  ;;  %v1700_v35 = vld [vmem:[#allocation14] ss:$0 sm:$0xff] }
  0x3d   : > { %v740_v18 = vld [vmem:[%s2170_s17] sm:$0xff]  ;;  %s2323_s17 = sld [smem:[#allocation25_spill]] (!%p1597_p9) }
  0x3e   : > { %v734_v19 = vld [vmem:[%s2165_s21] sm:$0xff]  ;;  %v741_v20 = vpack.c.bf16 %v740_v18, %v740_v18 }
  0x3f   : > { %1537 = vmatmul.msk.bf16.vlgmr.msra.gmra.mxu0 %vm682_vm1, %v665_v11  ;;  %1546 = vmatmul.msk.bf16.vlgmr.msra.gmra.mxu1 %vm682_vm1, %v659_v12  ;;  %v735_v21 = vpack.c.bf16 %v734_v19, %v734_v19  ;;  %v1698_v22 = vld [vmem:[%s2309_s13] ss:$0 sm:$0xff]  ;;  %v2196_v24 = vld [vmem:[#allocation3] sm:$0x3] }
  0x40   : > { %842 = vmatpush.bf16.msrb.mxu0 %v1609_v7  ;;  %871 = vmatpush.bf16.msrb.mxu1 %v1611_v8  ;;  %v818_v23 = vld [vmem:[#allocation2] sm:$0x3]  ;;  %v849_v26 = vpack.c.bf16 %v2196_v24, %v2196_v24 }
  0x41   : > { %768 = vmatpush.bf16.msra.mxu2 %v1606_v16  ;;  %796 = vmatpush.bf16.msra.mxu3 %v1604_v17  ;;  %v820_v25 = vpack.c.bf16 %v818_v23, %v818_v23 }
  0x42   : > { %952 = vrot.lane.b32.xlu0 %v1698_v22, %s1993_s26 }
  0x44   : > { %843 = vmatpush.bf16.msrb.mxu0 %v1608_v13  ;;  %872 = vmatpush.bf16.msrb.mxu1 %v1610_v14 }
  0x45   : > { %1012 = vmatpush.bf16.msrb.mxu3 %v1611_v8  ;;  %992 = vmatpush.bf16.msrb.mxu2 %v1609_v7 }
  0x46   : > { %1555 = vmatmul.msk.bf16.vlgmr.msra.gmra.mxu2 %vm682_vm1, %v741_v20  ;;  %1564 = vmatmul.msk.bf16.vlgmr.msra.gmra.mxu3 %vm682_vm1, %v735_v21 }
  0x48   : > { %1136 = vmatpush.bf16.msra.mxu1 %v1611_v8  ;;  %1116 = vmatpush.bf16.msra.mxu0 %v1609_v7 }
  0x49   : > { %1013 = vmatpush.bf16.msrb.mxu3 %v1610_v14  ;;  %993 = vmatpush.bf16.msrb.mxu2 %v1608_v13 }
  0x4c   : > { %1137 = vmatpush.bf16.msra.mxu1 %v1610_v14  ;;  %1117 = vmatpush.bf16.msra.mxu0 %v1608_v13 }
  0x4d   : > { %1240 = vmatpush.bf16.msra.mxu2 %v1609_v7  ;;  %1260 = vmatpush.bf16.msra.mxu3 %v1611_v8 }
  0x4f   : > { %1573 = vmatmul.msk.bf16.vlgmr.msrb.gmra.mxu0 %vm682_vm1, %v820_v25  ;;  %1582 = vmatmul.msk.bf16.vlgmr.msrb.gmra.mxu1 %vm682_vm1, %v849_v26 }
  0x51   : > { %1241 = vmatpush.bf16.msra.mxu2 %v1608_v13  ;;  %1261 = vmatpush.bf16.msra.mxu3 %v1610_v14 }
  0xac   : > { %v2203_v34 = vpop.permute.xlu0 %901 }
  0xb4   : > { %v2207_v43 = vpop.permute.xlu0 %952 }
  0xbc   : > { %v695_v28 = vpop.f32.mrf.mxu0  ;;  %v723_v29 = vpop.f32.mrf.mxu1 }
  0xbd   : > { %v724_v30 = vadd.f32 %v723_v29, %v695_v28 }
  0xbf   : > { %v731_v31 = vadd.f32 %v1699_v27, %v724_v30 }
  0xc1   : > { %733 = vst.msk [vmem:[#allocation4] sm:$0xff] %vm732_vm2, %v731_v31 }
  0xc4   : > { %v697_v32 = vpop.f32.mrf.mxu0  ;;  %v725_v33 = vpop.f32.mrf.mxu1 }
  0xc8   : > { %v878_v49 = vld [vmem:[#allocation4] sm:$0x3] }
  0xc9   : > { %v770_v36 = vpop.f32.mrf.mxu2  ;;  %v798_v37 = vpop.f32.mrf.mxu3 }
  0xca   : > { %v799_v38 = vadd.f32 %v798_v37, %v770_v36 }
  0xcc   : > { %v806_v39 = vadd.f32 %v1700_v35, %v799_v38  ;;  %v845_v40 = vpop.f32.mrf.mxu0  ;;  %v874_v41 = vpop.f32.mrf.mxu1 }
  0xcd   : > { %v904_v42 = vadd.f32 %v2203_v34, %v845_v40  ;;  %v955_v46 = vadd.f32 %v2207_v43, %v874_v41  ;;  %v879_v50 = vadd.f32 %v878_v49, %v845_v40 }
  0xce   : > { %807 = vst.msk [vmem:[#allocation5] sm:$0xff] %vm732_vm2, %v806_v39 }
  0xcf   : > { %906 = vrot.lane.b32.xlu1 %v904_v42, %s1993_s26  ;;  %v1583_v51 = vmul.f32 -1.442695, %v879_v50 }
  0xd1   : > { %v772_v44 = vpop.f32.mrf.mxu2  ;;  %v800_v45 = vpop.f32.mrf.mxu3  ;;  %1701 = vpow2.f32 %v1583_v51 }
  0xd4   : > { %v847_v47 = vpop.f32.mrf.mxu0  ;;  %v876_v48 = vpop.f32.mrf.mxu1 }
  0xd5   : > { %v929_v52 = vld [vmem:[#allocation5 + $0x6] sm:$0x3] }
  0xd6   : > { %v930_v53 = vadd.f32 %v929_v52, %v874_v41 }
  0xd7   : > { %957 = vrot.lane.b32.xlu1 %v955_v46, %s1993_s26  ;;  %v1702_v55 = vpop.eup %1701 }
  0xd8   : > { %v1584_v54 = vmul.f32 -1.442695, %v930_v53  ;;  %v883_v56 = vadd.f32 1.0, %v1702_v55  ;;  %v1020_v53 = vld [vmem:[#allocation4 + $0x2] sm:$0x3] }
  0xda   : > { %1703 = vpow2.f32 %v1584_v54  ;;  %v895_v3 = vand.u32 2147483648, %v883_v56  ;;  %vm889_vm4 = vweird.f32 %v883_v56  ;;  %v893_v4 = vand.u32 2147483647, %v883_v56 }
  0xdb   : > { %1705 = vrcp.f32 %v883_v56 }
  0xdc   : > { %v896_v7 = vor.u32 1.1754944e-38, %v895_v3  ;;  %vm894_vm6 = vcmp.eq.f32.partialorder %v893_v4, 8.507059e+37 }
  0xdf   : > { %923 = vrot.lane.b32.xlu1 %v818_v23, %s1994_s28 }
  0xe0   : > { %v1704_v57 = vpop.eup %1703 }
  0xe1   : > { %v934_v58 = vadd.f32 1.0, %v1704_v57  ;;  %v1706_v59 = vpop.eup %1705 }
  0xe2   : > { %v885_v60 = vmul.f32 %v1706_v59, %v883_v56  ;;  %vm890_vm3 = vweird.f32 %v1706_v59 }
  0xe3   : > { %1707 = vrcp.f32 %v934_v58  ;;  %vm891_vm5 = vmor %vm889_vm4, %vm890_vm3  ;;  %vm940_vm7 = vweird.f32 %v934_v58  ;;  %v946_v10 = vand.u32 2147483648, %v934_v58  ;;  %v944_v13 = vand.u32 2147483647, %v934_v58 }
  0xe4   : > { %v886_v61 = vsub.f32 1.0, %v885_v60 }
  0xe5   : > { %v947_v14 = vor.u32 1.1754944e-38, %v946_v10  ;;  %vm945_vm10 = vcmp.eq.f32.partialorder %v944_v13, 8.507059e+37 }
  0xe6   : > { %v887_v63 = vmul.f32 %v1706_v59, %v886_v61 }
  0xe8   : > { %v888_v1 = vadd.f32 %v1706_v59, %v887_v63 }
  0xe9   : > { %v1708_v62 = vpop.eup %1707 }
  0xea   : > { %v936_v0 = vmul.f32 %v1708_v62, %v934_v58  ;;  %v892_v5 = vsel %vm891_vm5, %v1706_v59, %v888_v1  ;;  %vm941_vm8 = vweird.f32 %v1708_v62 }
  0xeb   : > { %v897_v9 = vsel %vm894_vm6, %v896_v7, %v892_v5  ;;  %vm942_vm9 = vmor %vm940_vm7, %vm941_vm8 }
  0xec   : > { %v937_v2 = vsub.f32 1.0, %v936_v0  ;;  %v916_v27 = vsub.f32 1.0, %v897_v9 }
  0xee   : > { %v938_v6 = vmul.f32 %v1708_v62, %v937_v2 }
  0xf0   : > { %v939_v12 = vadd.f32 %v1708_v62, %v938_v6 }
  0xf2   : > { %v943_v15 = vsel %vm942_vm9, %v1708_v62, %v939_v12 }
  0xf3   : > { %v948_v17 = vsel %vm945_vm10, %v947_v14, %v943_v15 }
  0xf4   : > { %v967_v35 = vsub.f32 1.0, %v948_v17 }
 0x141   : > { %v907_v8 = vpop.permute.xlu1 %906 }
 0x142   : > { %v909_v11 = vmul.f32 %v907_v8, %v897_v9 }
 0x144   : > { %911 = vrot.lane.b32.xlu2 %v909_v11, %s1993_s26 }
 0x149   : > { %v958_v16 = vpop.permute.xlu1 %957 }
 0x14a   : > { %v960_v18 = vmul.f32 %v958_v16, %v948_v17 }
 0x14c   : > { %962 = vrot.lane.b32.xlu2 %v960_v18, %s1993_s26 }
 0x151   : > { %v924_v26 = vpop.permute.xlu1 %923 }
 0x152   : > { %v926_v29 = vmul.f32 %v924_v26, %v897_v9 }
 0x19e   : > { %v912_v19 = vpop.permute.xlu2 %911 }
 0x19f   : > { %v914_v20 = vadd.f32 %v912_v19, %v878_v49  ;;  %v1062_v49 = vld [vmem:[#allocation5 + $0x4] sm:$0x3] }
 0x1a1   : > { %1709 = vtanh.f32 %v914_v20 }
 0x1a6   : > { %v963_v21 = vpop.permute.xlu2 %962 }
 0x1a7   : > { %v1710_v22 = vpop.eup %1709  ;;  %v965_v23 = vadd.f32 %v963_v21, %v929_v52 }
 0x1a8   : > { %918 = vrot.lane.b32.xlu0 %v1710_v22, %s1995_s16 }
 0x1a9   : > { %1711 = vtanh.f32 %v965_v23 }
 0x1af   : > { %v1712_v25 = vpop.eup %1711 }
 0x1b0   : > { %974 = vrot.lane.b32.xlu0 %v2196_v24, %s1994_s28  ;;  %969 = vrot.lane.b32.xlu2 %v1712_v25, %s1995_s16 }
 0x20a   : > { %v970_v33 = vpop.permute.xlu2 %969 }
 0x20b   : > { %v972_v37 = vmul.f32 %v970_v33, %v967_v35 }
 0x21a   : > { %v919_v28 = vpop.permute.xlu0 %918 }
 0x21b   : > { %v921_v30 = vmul.f32 %v919_v28, %v916_v27 }
 0x21d   : > { %v2218_v31 = vadd.f32 %v926_v29, %v921_v30 }
 0x21f   : > { %v979_v32 = vpack.c.bf16 %v2218_v31, %v2218_v31 }
 0x221   : > { %981 = vrot.lane.b32.xlu1 %v979_v32, %s1995_s16 }
 0x222   : > { %v975_v36 = vpop.permute.xlu0 %974 }
 0x223   : > { %v977_v38 = vmul.f32 %v975_v36, %v948_v17 }
 0x225   : > { %v2223_v24 = vadd.f32 %v977_v38, %v972_v37 }
 0x227   : > { %v999_v39 = vpack.c.bf16 %v2223_v24, %v2223_v24 }
 0x229   : > { %1001 = vrot.lane.b32.xlu2 %v999_v39, %s1995_s16 }
 0x283   : > { %v1002_v40 = vpop.permute.xlu2 %1001 }
 0x284   : > { %1586 = vmatmul.msk.bf16.vlgmr.msrb.gmra.mxu3 %vm682_vm1, %v1002_v40 }
 0x293   : > { %v982_v41 = vpop.permute.xlu1 %981 }
 0x294   : > { %1585 = vmatmul.msk.bf16.vlgmr.msrb.gmra.mxu2 %vm682_vm1, %v982_v41 }
 0x307   : > { %v1015_v42 = vpop.f32.mrf.mxu3 }
 0x308   : > { %v1083_v44 = vadd.f32 %v1015_v42, %v2207_v43  ;;  %v1063_v50 = vadd.f32 %v1062_v49, %v1015_v42 }
 0x30a   : > { %1085 = vrot.lane.b32.xlu1 %v1083_v44, %s1993_s26  ;;  %v1588_v51 = vmul.f32 -1.442695, %v1063_v50  ;;  %v1186_v50 = vld [vmem:[#allocation5 + $0x2] sm:$0x3] }
 0x30c   : > { %1713 = vpow2.f32 %v1588_v51 }
 0x30f   : > { %v1017_v45 = vpop.f32.mrf.mxu3 }
 0x312   : > { %v1714_v52 = vpop.eup %1713 }
 0x313   : > { %v1067_v55 = vadd.f32 1.0, %v1714_v52 }
 0x315   : > { %1715 = vrcp.f32 %v1067_v55  ;;  %v1079_v1 = vand.u32 2147483648, %v1067_v55  ;;  %vm1073_vm12 = vweird.f32 %v1067_v55  ;;  %v1077_v2 = vand.u32 2147483647, %v1067_v55 }
 0x317   : > { %v995_v46 = vpop.f32.mrf.mxu2  ;;  %v1080_v5 = vor.u32 1.1754944e-38, %v1079_v1  ;;  %vm1078_vm14 = vcmp.eq.f32.partialorder %v1077_v2, 8.507059e+37 }
 0x318   : > { %v1041_v47 = vadd.f32 %v995_v46, %v2203_v34  ;;  %v1021_v54 = vadd.f32 %v1020_v53, %v995_v46 }
 0x31a   : > { %1043 = vrot.lane.b32.xlu0 %v1041_v47, %s1993_s26  ;;  %v1587_v56 = vmul.f32 -1.442695, %v1021_v54  ;;  %v1144_v47 = vld [vmem:[#allocation4 + $0x4] sm:$0x3] }
 0x31b   : > { %v1716_v57 = vpop.eup %1715 }
 0x31c   : > { %1717 = vpow2.f32 %v1587_v56  ;;  %v1069_v59 = vmul.f32 %v1716_v57, %v1067_v55  ;;  %vm1074_vm11 = vweird.f32 %v1716_v57 }
 0x31d   : > { %vm1075_vm13 = vmor %vm1073_vm12, %vm1074_vm11 }
 0x31e   : > { %v1070_v61 = vsub.f32 1.0, %v1069_v59 }
 0x31f   : > { %v997_v48 = vpop.f32.mrf.mxu2 }
 0x320   : > { %v1071_v62 = vmul.f32 %v1716_v57, %v1070_v61 }
 0x322   : > { %v1718_v58 = vpop.eup %1717  ;;  %v1072_v63 = vadd.f32 %v1716_v57, %v1071_v62 }
 0x323   : > { %v1025_v60 = vadd.f32 1.0, %v1718_v58 }
 0x324   : > { %v1076_v3 = vsel %vm1075_vm13, %v1716_v57, %v1072_v63 }
 0x325   : > { %1719 = vrcp.f32 %v1025_v60  ;;  %v1081_v7 = vsel %vm1078_vm14, %v1080_v5, %v1076_v3  ;;  %v1037_v12 = vand.u32 2147483648, %v1025_v60  ;;  %vm1031_vm0 = vweird.f32 %v1025_v60 }
 0x326   : > { %v1035_v13 = vand.u32 2147483647, %v1025_v60  ;;  %v1095_v26 = vsub.f32 1.0, %v1081_v7  ;;  %v1101_v28 = vmul.f32 %v1081_v7, %v2223_v24 }
 0x327   : > { %v1038_v15 = vor.u32 1.1754944e-38, %v1037_v12 }
 0x328   : > { %vm1036_vm3 = vcmp.eq.f32.partialorder %v1035_v13, 8.507059e+37 }
 0x32b   : > { %v1720_v0 = vpop.eup %1719 }
 0x32c   : > { %v1027_v4 = vmul.f32 %v1720_v0, %v1025_v60  ;;  %vm1032_vm15 = vweird.f32 %v1720_v0 }
 0x32d   : > { %vm1033_vm2 = vmor %vm1031_vm0, %vm1032_vm15 }
 0x32e   : > { %v1028_v9 = vsub.f32 1.0, %v1027_v4 }
 0x330   : > { %v1029_v10 = vmul.f32 %v1720_v0, %v1028_v9 }
 0x332   : > { %v1030_v11 = vadd.f32 %v1720_v0, %v1029_v10 }
 0x334   : > { %v1034_v14 = vsel %vm1033_vm2, %v1720_v0, %v1030_v11 }
 0x335   : > { %v1039_v16 = vsel %vm1036_vm3, %v1038_v15, %v1034_v14 }
 0x336   : > { %v1053_v33 = vsub.f32 1.0, %v1039_v16  ;;  %v1059_v36 = vmul.f32 %v1039_v16, %v2218_v31 }
 0x37c   : > { %v1086_v6 = vpop.permute.xlu1 %1085 }
 0x37d   : > { %v1088_v8 = vmul.f32 %v1086_v6, %v1081_v7 }
 0x37f   : > { %1090 = vrot.lane.b32.xlu0 %v1088_v8, %s1993_s26 }
 0x38c   : > { %v1044_v17 = vpop.permute.xlu0 %1043 }
 0x38d   : > { %v1046_v18 = vmul.f32 %v1044_v17, %v1039_v16 }
 0x38f   : > { %1048 = vrot.lane.b32.xlu2 %v1046_v18, %s1993_s26 }
 0x3e9   : > { %v1049_v19 = vpop.permute.xlu2 %1048 }
 0x3ea   : > { %v1051_v20 = vadd.f32 %v1049_v19, %v1020_v53 }
 0x3ec   : > { %1721 = vtanh.f32 %v1051_v20 }
 0x3f1   : > { %v1091_v21 = vpop.permute.xlu0 %1090 }
 0x3f2   : > { %v1722_v22 = vpop.eup %1721  ;;  %v1093_v23 = vadd.f32 %v1091_v21, %v1062_v49 }
 0x3f3   : > { %1055 = vrot.lane.b32.xlu1 %v1722_v22, %s1995_s16 }
 0x3f4   : > { %1723 = vtanh.f32 %v1093_v23 }
 0x3fa   : > { %v1724_v25 = vpop.eup %1723 }
 0x3fb   : > { %1097 = vrot.lane.b32.xlu2 %v1724_v25, %s1995_s16 }
 0x455   : > { %v1098_v27 = vpop.permute.xlu2 %1097 }
 0x456   : > { %v1100_v29 = vmul.f32 %v1098_v27, %v1095_v26 }
 0x458   : > { %v2239_v30 = vadd.f32 %v1101_v28, %v1100_v29 }
 0x45a   : > { %v1123_v32 = vpack.c.bf16 %v2239_v30, %v2239_v30 }
 0x45c   : > { %1125 = vrot.lane.b32.xlu1 %v1123_v32, %s1995_s16 }
 0x465   : > { %v1056_v35 = vpop.permute.xlu1 %1055 }
 0x466   : > { %v1058_v37 = vmul.f32 %v1056_v35, %v1053_v33 }
 0x468   : > { %v2245_v38 = vadd.f32 %v1059_v36, %v1058_v37 }
 0x46a   : > { %v1103_v39 = vpack.c.bf16 %v2245_v38, %v2245_v38 }
 0x46c   : > { %1105 = vrot.lane.b32.xlu0 %v1103_v39, %s1995_s16 }
 0x4ce   : > { %v1126_v24 = vpop.permute.xlu1 %1125 }
 0x4cf   : > { %1590 = vmatmul.msk.bf16.vlgmr.msra.gmra.mxu1 %vm682_vm1, %v1126_v24 }
 0x4de   : > { %v1106_v40 = vpop.permute.xlu0 %1105 }
 0x4df   : > { %1589 = vmatmul.msk.bf16.vlgmr.msra.gmra.mxu0 %vm682_vm1, %v1106_v40 }
 0x54c   : > { %v1139_v41 = vpop.f32.mrf.mxu1 }
 0x54d   : > { %v1207_v42 = vadd.f32 %v1139_v41, %v2207_v43  ;;  %v1187_v51 = vadd.f32 %v1186_v50, %v1139_v41 }
 0x54f   : > { %1209 = vrot.lane.b32.xlu0 %v1207_v42, %s1993_s26  ;;  %v1592_v52 = vmul.f32 -1.442695, %v1187_v51 }
 0x554   : > { %v1141_v31 = vpop.f32.mrf.mxu1 }
 0x55c   : > { %v1119_v44 = vpop.f32.mrf.mxu0 }
 0x55d   : > { %v1165_v45 = vadd.f32 %v1119_v44, %v2203_v34  ;;  %v1145_v48 = vadd.f32 %v1144_v47, %v1119_v44 }
 0x55f   : > { %1167 = vrot.lane.b32.xlu2 %v1165_v45, %s1993_s26  ;;  %v1591_v49 = vmul.f32 -1.442695, %v1145_v48  ;;  %v1309_v45 = vld [vmem:[#allocation5] sm:$0x3] }
 0x561   : > { %1725 = vpow2.f32 %v1591_v49  ;;  %v1268_v49 = vld [vmem:[#allocation4 + $0x6] sm:$0x3] }
 0x562   : > { %1727 = vpow2.f32 %v1592_v52 }
 0x564   : > { %v1121_v46 = vpop.f32.mrf.mxu0 }
 0x567   : > { %v1726_v53 = vpop.eup %1725 }
 0x568   : > { %v1149_v54 = vadd.f32 1.0, %v1726_v53  ;;  %v1728_v55 = vpop.eup %1727 }
 0x569   : > { %v1191_v56 = vadd.f32 1.0, %v1728_v55 }
 0x56a   : > { %1729 = vrcp.f32 %v1149_v54  ;;  %v1161_v1 = vand.u32 2147483648, %v1149_v54  ;;  %vm1155_vm5 = vweird.f32 %v1149_v54  ;;  %v1159_v2 = vand.u32 2147483647, %v1149_v54 }
 0x56b   : > { %1731 = vrcp.f32 %v1191_v56  ;;  %v1203_v10 = vand.u32 2147483648, %v1191_v56  ;;  %vm1197_vm9 = vweird.f32 %v1191_v56  ;;  %v1201_v11 = vand.u32 2147483647, %v1191_v56 }
 0x56c   : > { %v1162_v5 = vor.u32 1.1754944e-38, %v1161_v1  ;;  %vm1160_vm7 = vcmp.eq.f32.partialorder %v1159_v2, 8.507059e+37 }
 0x56d   : > { %v1204_v13 = vor.u32 1.1754944e-38, %v1203_v10  ;;  %vm1202_vm11 = vcmp.eq.f32.partialorder %v1201_v11, 8.507059e+37 }
 0x570   : > { %v1730_v57 = vpop.eup %1729 }
 0x571   : > { %v1151_v58 = vmul.f32 %v1730_v57, %v1149_v54  ;;  %v1732_v60 = vpop.eup %1731  ;;  %vm1156_vm4 = vweird.f32 %v1730_v57 }
 0x572   : > { %v1193_v62 = vmul.f32 %v1732_v60, %v1191_v56  ;;  %vm1157_vm6 = vmor %vm1155_vm5, %vm1156_vm4  ;;  %vm1198_vm8 = vweird.f32 %v1732_v60  ;;  %vm1354_vm4 = vcmask 254976  }
 0x573   : > { %v1152_v59 = vsub.f32 1.0, %v1151_v58  ;;  %vm1199_vm10 = vmor %vm1197_vm9, %vm1198_vm8 }
 0x574   : > { %v1194_v0 = vsub.f32 1.0, %v1193_v62 }
 0x575   : > { %v1153_v61 = vmul.f32 %v1730_v57, %v1152_v59 }
 0x576   : > { %v1195_v4 = vmul.f32 %v1732_v60, %v1194_v0 }
 0x577   : > { %v1154_v63 = vadd.f32 %v1730_v57, %v1153_v61 }
 0x578   : > { %v1196_v9 = vadd.f32 %v1732_v60, %v1195_v4 }
 0x579   : > { %v1158_v3 = vsel %vm1157_vm6, %v1730_v57, %v1154_v63 }
 0x57a   : > { %v1163_v6 = vsel %vm1160_vm7, %v1162_v5, %v1158_v3  ;;  %v1200_v12 = vsel %vm1199_vm10, %v1732_v60, %v1196_v9 }
 0x57b   : > { %v1205_v15 = vsel %vm1202_vm11, %v1204_v13, %v1200_v12  ;;  %v1177_v32 = vsub.f32 1.0, %v1163_v6  ;;  %v1183_v35 = vmul.f32 %v1163_v6, %v2245_v38 }
 0x57c   : > { %v1219_v23 = vsub.f32 1.0, %v1205_v15  ;;  %v1225_v26 = vmul.f32 %v1205_v15, %v2239_v30 }
 0x5b9   : > { %v1168_v7 = vpop.permute.xlu2 %1167 }
 0x5ba   : > { %v1170_v8 = vmul.f32 %v1168_v7, %v1163_v6 }
 0x5bc   : > { %1172 = vrot.lane.b32.xlu1 %v1170_v8, %s1993_s26 }
 0x5c1   : > { %v1210_v14 = vpop.permute.xlu0 %1209 }
 0x5c2   : > { %v1212_v16 = vmul.f32 %v1210_v14, %v1205_v15 }
 0x5c4   : > { %1214 = vrot.lane.b32.xlu2 %v1212_v16, %s1993_s26 }
 0x61e   : > { %v1215_v17 = vpop.permute.xlu2 %1214 }
 0x61f   : > { %v1217_v18 = vadd.f32 %v1215_v17, %v1186_v50 }
 0x621   : > { %1733 = vtanh.f32 %v1217_v18 }
 0x627   : > { %v1734_v19 = vpop.eup %1733 }
 0x628   : > { %1221 = vrot.lane.b32.xlu1 %v1734_v19, %s1995_s16 }
 0x62e   : > { %v1173_v20 = vpop.permute.xlu1 %1172 }
 0x62f   : > { %v1175_v21 = vadd.f32 %v1173_v20, %v1144_v47 }
 0x631   : > { %1735 = vtanh.f32 %v1175_v21 }
 0x637   : > { %v1736_v22 = vpop.eup %1735 }
 0x638   : > { %1179 = vrot.lane.b32.xlu0 %v1736_v22, %s1995_s16 }
 0x69a   : > { %v1222_v25 = vpop.permute.xlu1 %1221 }
 0x69b   : > { %v1224_v27 = vmul.f32 %v1222_v25, %v1219_v23 }
 0x69d   : > { %v2261_v28 = vadd.f32 %v1225_v26, %v1224_v27 }
 0x69f   : > { %v1247_v29 = vpack.c.bf16 %v2261_v28, %v2261_v28 }
 0x6a1   : > { %1249 = vrot.lane.b32.xlu0 %v1247_v29, %s1995_s16 }
 0x6aa   : > { %v1180_v33 = vpop.permute.xlu0 %1179 }
 0x6ab   : > { %v1182_v36 = vmul.f32 %v1180_v33, %v1177_v32 }
 0x6ad   : > { %v2267_v37 = vadd.f32 %v1183_v35, %v1182_v36 }
 0x6af   : > { %v1227_v39 = vpack.c.bf16 %v2267_v37, %v2267_v37 }
 0x6b1   : > { %1229 = vrot.lane.b32.xlu2 %v1227_v39, %s1995_s16 }
 0x70b   : > { %v1230_v30 = vpop.permute.xlu2 %1229 }
 0x70c   : > { %1593 = vmatmul.msk.bf16.vlgmr.msra.gmra.mxu2 %vm682_vm1, %v1230_v30 }
 0x713   : > { %v1250_v24 = vpop.permute.xlu0 %1249 }
 0x714   : > { %1594 = vmatmul.msk.bf16.vlgmr.msra.gmra.mxu3 %vm682_vm1, %v1250_v24 }
 0x78f   : > { %v1243_v40 = vpop.f32.mrf.mxu2 }
 0x790   : > { %v1289_v41 = vadd.f32 %v1243_v40, %v2203_v34  ;;  %v1269_v50 = vadd.f32 %v1268_v49, %v1243_v40 }
 0x792   : > { %1291 = vrot.lane.b32.xlu1 %v1289_v41, %s1993_s26  ;;  %v1595_v52 = vmul.f32 -1.442695, %v1269_v50 }
 0x797   : > { %v1245_v38 = vpop.f32.mrf.mxu2  ;;  %v1263_v42 = vpop.f32.mrf.mxu3 }
 0x798   : > { %v1330_v31 = vadd.f32 %v1263_v42, %v2207_v43  ;;  %v1310_v46 = vadd.f32 %v1309_v45, %v1263_v42 }
 0x79a   : > { %1332 = vrot.lane.b32.xlu2 %v1330_v31, %s1993_s26  ;;  %v1596_v47 = vmul.f32 -1.442695, %v1310_v46 }
 0x79c   : > { %1737 = vpow2.f32 %v1596_v47 }
 0x79f   : > { %v1265_v44 = vpop.f32.mrf.mxu3 }
 0x7a2   : > { %v1738_v48 = vpop.eup %1737 }
 0x7a3   : > { %v1314_v51 = vadd.f32 1.0, %v1738_v48 }
 0x7a5   : > { %1739 = vrcp.f32 %v1314_v51  ;;  %v1326_v59 = vand.u32 2147483648, %v1314_v51  ;;  %vm1320_vm12 = vweird.f32 %v1314_v51  ;;  %v1324_v60 = vand.u32 2147483647, %v1314_v51 }
 0x7a6   : > { %1741 = vpow2.f32 %v1595_v52 }
 0x7a7   : > { %v1327_v63 = vor.u32 1.1754944e-38, %v1326_v59  ;;  %vm1325_vm14 = vcmp.eq.f32.partialorder %v1324_v60, 8.507059e+37 }
 0x7ab   : > { %v1740_v34 = vpop.eup %1739 }
 0x7ac   : > { %v1742_v53 = vpop.eup %1741  ;;  %v1316_v54 = vmul.f32 %v1740_v34, %v1314_v51  ;;  %vm1321_vm1 = vweird.f32 %v1740_v34 }
 0x7ad   : > { %v1273_v55 = vadd.f32 1.0, %v1742_v53  ;;  %vm1322_vm13 = vmor %vm1320_vm12, %vm1321_vm1 }
 0x7ae   : > { %v1317_v56 = vsub.f32 1.0, %v1316_v54 }
 0x7af   : > { %1743 = vrcp.f32 %v1273_v55  ;;  %v1285_v6 = vand.u32 2147483648, %v1273_v55  ;;  %vm1279_vm0 = vweird.f32 %v1273_v55  ;;  %v1283_v7 = vand.u32 2147483647, %v1273_v55 }
 0x7b0   : > { %v1318_v43 = vmul.f32 %v1740_v34, %v1317_v56 }
 0x7b1   : > { %v1286_v9 = vor.u32 1.1754944e-38, %v1285_v6  ;;  %vm1284_vm3 = vcmp.eq.f32.partialorder %v1283_v7, 8.507059e+37 }
 0x7b2   : > { %v1319_v57 = vadd.f32 %v1740_v34, %v1318_v43 }
 0x7b4   : > { %v1323_v61 = vsel %vm1322_vm13, %v1740_v34, %v1319_v57 }
 0x7b5   : > { %v1744_v58 = vpop.eup %1743  ;;  %v1328_v0 = vsel %vm1325_vm14, %v1327_v63, %v1323_v61 }
 0x7b6   : > { %v1275_v62 = vmul.f32 %v1744_v58, %v1273_v55  ;;  %vm1280_vm15 = vweird.f32 %v1744_v58  ;;  %v1342_v25 = vsub.f32 1.0, %v1328_v0  ;;  %v1348_v27 = vmul.f32 %v1328_v0, %v2261_v28 }
 0x7b7   : > { %vm1281_vm2 = vmor %vm1279_vm0, %vm1280_vm15 }
 0x7b8   : > { %v1276_v3 = vsub.f32 1.0, %v1275_v62 }
 0x7ba   : > { %v1277_v4 = vmul.f32 %v1744_v58, %v1276_v3 }
 0x7bc   : > { %v1278_v5 = vadd.f32 %v1744_v58, %v1277_v4 }
 0x7be   : > { %v1282_v8 = vsel %vm1281_vm2, %v1744_v58, %v1278_v5 }
 0x7bf   : > { %v1287_v11 = vsel %vm1284_vm3, %v1286_v9, %v1282_v8 }
 0x7c0   : > { %v1301_v19 = vsub.f32 1.0, %v1287_v11  ;;  %v1307_v21 = vmul.f32 %v1287_v11, %v2267_v37 }
 0x7f4   : > { %v1333_v1 = vpop.permute.xlu2 %1332 }
 0x7f5   : > { %v1335_v2 = vmul.f32 %v1333_v1, %v1328_v0 }
 0x7f7   : > { %1337 = vrot.lane.b32.xlu1 %v1335_v2, %s1993_s26 }
 0x804   : > { %v1292_v10 = vpop.permute.xlu1 %1291 }
 0x805   : > { %v1294_v12 = vmul.f32 %v1292_v10, %v1287_v11 }
 0x807   : > { %1296 = vrot.lane.b32.xlu0 %v1294_v12, %s1993_s26 }
 0x869   : > { %v1338_v13 = vpop.permute.xlu1 %1337 }
 0x86a   : > { %v1340_v14 = vadd.f32 %v1338_v13, %v1309_v45 }
 0x86c   : > { %1745 = vtanh.f32 %v1340_v14 }
 0x872   : > { %v1746_v15 = vpop.eup %1745 }
 0x873   : > { %1344 = vrot.lane.b32.xlu0 %v1746_v15, %s1995_s16 }
 0x879   : > { %v1297_v16 = vpop.permute.xlu0 %1296 }
 0x87a   : > { %v1299_v17 = vadd.f32 %v1297_v16, %v1268_v49 }
 0x87c   : > { %1747 = vtanh.f32 %v1299_v17 }
 0x882   : > { %v1748_v18 = vpop.eup %1747 }
 0x883   : > { %1303 = vrot.lane.b32.xlu2 %v1748_v18, %s1995_s16 }
 0x8dd   : > { %v1304_v20 = vpop.permute.xlu2 %1303 }
 0x8de   : > { %v1306_v22 = vmul.f32 %v1304_v20, %v1301_v19 }
 0x8e0   : > { %v1308_v23 = vadd.f32 %v1307_v21, %v1306_v22 }
 0x8e2   : > { %1351 = vrot.lane.b32.xlu1 %v1308_v23, %s1995_s16 }
 0x8e5   : > { %v1345_v26 = vpop.permute.xlu0 %1344 }
 0x8e6   : > { %v1347_v29 = vmul.f32 %v1345_v26, %v1342_v25 }
 0x8e8   : > { %v1349_v32 = vadd.f32 %v1348_v27, %v1347_v29 }
 0x8ea   : > { %1357 = vrot.lane.b32.xlu2 %v1349_v32, %s1995_s16 }
 0x944   : > { %v1358_v33 = vpop.permute.xlu2 %1357 }
 0x945   : > { %1360 = vst.msk [vmem:[#allocation3] sm:$0x3] %vm1354_vm4, %v1358_v33 }
 0x951   : > { %1364 = sbr.rel (%p1597_p9) target bundleno = 2392 (0x958), region = 112 }
 0x954   : > { %v1352_v35 = vpop.permute.xlu1 %1351 }
 0x955   : > { %1355 = vst.msk [vmem:[#allocation2] sm:$0x3] %vm1354_vm4, %v1352_v35 }
 0x956   : > { %1365 = vst.msk [vmem:[%s2310_s14] sm:$0x3] %vm1354_vm4, %v1352_v35 }
 0x957   : > { %1366 = vst.msk [vmem:[%s2323_s17] sm:$0x3] %vm1354_vm4, %v1358_v33 }
 0x958 PF: > { %s2324_s30 = sld [smem:[#allocation21_spill]] }
 0x95e   : > { %s30_s18 = sadd.s32 1, %s2324_s30  }
 0x95f   : > { %p27_p10 = scmp.ge.s32.totalorder %s30_s18, 4  }
 0x961   :  { %29 = sbr.rel (!%p27_p10) target bundleno = 9 (0x9), region = 162 }
 0x966   :  { %1384 = vsyncpa [#allocation7], 1 }
 0x967   :  { %1386 = vsyncpa [#allocation7 + $0x1], 1 }
 0x968   :  { %1387 = vsyncpa [#allocation9], 1 }
 0x969   :  { %1388 = vsyncpa [#allocation12], 1 }
 0x96a   :  { %1389 = vsyncpa [#allocation15], 1 }

// kernel: _lambda_.2
= control target key start
LH: loop header
LB: loop body
LE: loop exit
PB: predicated region body
PF: predicated region fallthrough
CT: control target
= control target key end

     0   :  { %s1900_s0 = inlined_call_operand.vmem [shape: f32[16,16], index: 0, kind: input, shape index: {}, may-alias: {0,1}]   ;;  %s1901_s1 = inlined_call_operand.vmem [shape: f32[16,16], index: 1, kind: input, shape index: {}, may-alias: {0,1}]   ;;  %s1902_s2 = inlined_call_operand.hbm [shape: bf16[16,96], index: 2, kind: input, shape index: {}]   ;;  %s1903_s3 = inlined_call_operand.hbm [shape: bf16[16,96], index: 3, kind: input, shape index: {}]   ;;  %s1904_s4 = inlined_call_operand.hbm [shape: bf16[32,96], index: 4, kind: input, shape index: {}]   ;;  %s1905_s5 = inlined_call_operand.vmem [shape: bf16[32,96], index: 5, kind: input, shape index: {}]   ;;  %s1906_s6 = inlined_call_operand.vmem [shape: f32[1,96], index: 6, kind: input, shape index: {}]   ;;  %s1907_s7 = inlined_call_operand.vmem [shape: f32[1,96], index: 7, kind: input, shape index: {}]   ;;  %s1908_s8 = inlined_call_operand.vmem [shape: f32[1,32], index: 8, kind: input, shape index: {}]   ;;  %s1909_s9 = inlined_call_operand.vmem [shape: f32[1,32], index: 9, kind: input, shape index: {}]   ;;  %s1910_s10 = inlined_call_operand.vmem [shape: f32[16,32], index: 10, kind: output, shape index: {0}]   ;;  %s1911_s11 = inlined_call_operand.vmem [shape: f32[16,32], index: 11, kind: output, shape index: {1}]   ;;  %s1912_s12 = inlined_call_operand.vmem [shape: f32[2,32], index: 12, kind: output, shape index: {2}]   ;;  %s1913_s13 = inlined_call_operand.vmem [shape: f32[2,32], index: 13, kind: output, shape index: {3}]  }
   0x1   :  { %1914 = sst [smem:[#allocation13_spill]] %s1902_s2 }
   0x2   :  { %19 = vsyncpa [#allocation7], 0 }
   0x3   :  { %20 = vsyncpa [#allocation9], 0  ;;  %s1687_s25 = smov 0  }
   0x4 LB: > { %s1693_s26 = sadd.s32 4294967295, %s1606_s25   ;;  %p1334_p0 = scmp.ge.s32.totalorder %s1606_s25, 1  ;;  %s1606_s25 = sphi %s1687_s25, %s26_s25  }
   0x5   : > { %p349_p1 = scmp.lt.s32.totalorder %s1606_s25, 3  ;;  %p1335_p2 = scmp.ne.s32.totalorder %s1693_s26, 0 }
   0x6   : > { %p1427_p3 = scmp.eq.s32.totalorder %s1693_s26, 0  ;;  %s374_s29 = sshll.u32 %s1903_s3, 4  ;;  %s375_s29 = int_to_ptr.hbm [resolvable:$true] %s374_s29 }
   0x7   : > { %p1702_p4 = pnand %p1334_p0, %p349_p1  ;;  %s1916_s2 = sld [smem:[#allocation13_spill]] }
   0x8   : > { %s1608_s17 = smov [#allocation8]   ;;  %s1609_s19 = smov [#allocation6]  }
   0x9   : > { %p1417_p5 = pneg %p1702_p4  ;;  %s376_s18 = sshll.u32 %s1608_s17, 4  ;;  %s377_s18 = int_to_ptr.vmem [resolvable:$true] %s376_s18 }
   0xa   : > { %s362_s20 = sshll.u32 %s1609_s19, 4  ;;  %s388_s23 = sshll.u32 %s1904_s4, 4  ;;  %s363_s20 = int_to_ptr.vmem [resolvable:$true] %s362_s20  ;;  %s389_s23 = int_to_ptr.hbm [resolvable:$true] %s388_s23 }
   0xb   : > { %p1418_p6 = pnand %p1427_p3, %p1417_p5  ;;  %s1610_s24 = smov 64  }
   0xc   : > { %s1611_s27 = smov 4   ;;  %s1612_s28 = smov [#allocation10]  }
   0xd   : > { %s360_s16 = sshll.u32 %s1916_s2, 4  ;;  %s390_s14 = sshll.u32 %s1612_s28, 4  ;;  %s361_s16 = int_to_ptr.hbm [resolvable:$true] %s360_s16  ;;  %s391_s14 = int_to_ptr.vmem [resolvable:$true] %s390_s14 }
   0xe   : > { %1423 = dma.hbm_to_vmem [thread:$0]  (!%p1418_p6), %s375_s29, 128, %s377_s18, [#allocation9], %s1610_s24, %s1610_s24, %s1611_s27  }
   0xf   : > { %1420 = dma.hbm_to_vmem [thread:$0]  (!%p1418_p6), %s361_s16, 128, %s363_s20, [#allocation7], %s1610_s24, %s1610_s24, %s1611_s27  }
  0x10   : > { %1426 = dma.hbm_to_vmem [thread:$0]  (!%p1418_p6), %s389_s23, 256, %s391_s14, [#allocation9], %s1610_s24, %s1610_s24, %s1611_s27  }
  0x11   : > { %437 = sbr.rel (%p1702_p4) target bundleno = 2358 (0x936), region = 60 }
  0x16   : > { %1597 = dma.done.wait (%p1427_p3), [#allocation7], 128  }
  0x17   : > { %1599 = vsyncadd (%p1427_p3), [#allocation7], 4294967168 }
  0x18   : > { %1601 = dma.done.wait (%p1427_p3), [#allocation9], 384  }
  0x19   : > { %1603 = vsyncadd (%p1427_p3), [#allocation9], 4294966912  ;;  %p500_p7 = scmp.lt.s32.totalorder %s1693_s26, 1  ;;  %s504_s29 = ssub.s32 1, %s1693_s26 }
  0x1a   : > { %p505_p8 = scmp.lt.s32.totalorder %s504_s29, 1 }
  0x1b   : > { %s501_s30 = scalar_select %p500_p7, %s1693_s26, 1 }
  0x1c   : > { %s1918_s29 = smov (!%p505_p8, %s504_s29), 1  ;;  %524 = sbr.rel (%p1335_p2) target bundleno = 36 (0x24), region = 76 }
  0x1d   : > { %s1343_s15 = sshll.u32 %s501_s30, 3  ;;  %s1344_s19 = sshll.u32 %s1918_s29, 3 }
  0x1e   : > { %s503_s18 = scalar_lea.vmem %s1900_s0, %s1343_s15  ;;  %s508_s22 = scalar_lea.vmem %s1901_s1, %s1344_s19 }
  0x1f   : > { %s1738_s27 = scalar_lea.vmem %s1910_s10, %s1343_s15  ;;  %s1743_s2 = scalar_lea.vmem %s1911_s11, %s1344_s19 }
  0x21   : > { %vm525_vm0 = vcmask 254976   ;;  %v1613_v0 = vmov 0.0  }
  0x22   : > { %526 = vst.msk [vmem:[#allocation2] sm:$0x3] %vm525_vm0, %v1613_v0 }
  0x23   : > { %527 = vst.msk [vmem:[#allocation3] sm:$0x3] %vm525_vm0, %v1613_v0 }
  0x24 PF: > { %v1399_v1 = vld [vmem:[#allocation6] sm:$0xff]  ;;  %v1402_v2 = vld [vmem:[#allocation10 + $0x8] sm:$0xff]  ;;  %v528_v3 = vld [vmem:[%s503_s18] sm:$0xff]  ;;  %vm542_vm1 = vcmask 130048   ;;  %s1614_s18 = smov 64   ;;  %vm617_vm2 = vcmask 261120  }
  0x25   : > { %v529_v4 = vpack.c.bf16 %v528_v3, %v528_v3  ;;  %v1401_v5 = vld [vmem:[#allocation10] sm:$0xff]  ;;  %553 = vmatpush.bf16.msra.mxu0 %v1399_v1  ;;  %627 = vmatpush.bf16.msra.mxu2 %v1402_v2  ;;  %v1450_v10 = vld [vmem:[%s1908_s8] ss:$0 sm:$0xff]  ;;  %vm559_vm3 = vcmask 785408   ;;  %s1615_s14 = smov 32   ;;  %s1616_s29 = smov 96  }
  0x26   : > { %v1404_v6 = vld [vmem:[%s1905_s5 + $0x8] sm:$0xff]  ;;  %v1403_v8 = vld [vmem:[%s1905_s5] sm:$0xff]  ;;  %686 = vrot.lane.b32.xlu0 %v1450_v10, %s1614_s18  ;;  %p1396_p9 = scmp.ne.s32.totalorder %s1693_s26, 1 }
  0x27   : > { %656 = vmatpush.bf16.msra.mxu3 %v1404_v6  ;;  %v1400_v11 = vld [vmem:[#allocation8] sm:$0xff] }
  0x28   : > { %v561_v12 = vld [vmem:[%s508_s22] sm:$0xff]  ;;  %1352 = vmatmul.msk.bf16.vlgmr.msra.gmra.mxu0 %vm542_vm1, %v529_v4  ;;  %585 = vmatpush.bf16.msra.mxu1 %v1400_v11 }
  0x29   : > { %v602_v7 = vld [vmem:[#allocation2] sm:$0x3]  ;;  %789 = vmatpush.bf16.msrb.mxu0 %v1402_v2  ;;  %v562_v14 = vpack.c.bf16 %v561_v12, %v561_v12  ;;  %628 = vmatpush.bf16.msra.mxu2 %v1401_v5 }
  0x2a   : > { %v1753_v9 = vld [vmem:[#allocation3] sm:$0x3]  ;;  %v604_v13 = vpack.c.bf16 %v602_v7, %v602_v7  ;;  %v1451_v16 = vld [vmem:[%s1909_s9] ss:$0 sm:$0xff] }
  0x2b   : > { %v634_v15 = vpack.c.bf16 %v1753_v9, %v1753_v9  ;;  %657 = vmatpush.bf16.msra.mxu3 %v1403_v8  ;;  %1357 = vmatmul.msk.bf16.vlgmr.msra.gmra.mxu1 %vm542_vm1, %v562_v14  ;;  %v1452_v17 = vld [vmem:[%s1906_s6] ss:$0 sm:$0xff] }
  0x2c   : > { %809 = vmatpush.bf16.msrb.mxu1 %v1404_v6  ;;  %1366 = vmatmul.msk.bf16.vlgmr.msra.gmra.mxu2 %vm617_vm2, %v604_v13  ;;  %v1453_v20 = vld [vmem:[%s1907_s7] ss:$0 sm:$0xff] }
  0x2d   : > { %790 = vmatpush.bf16.msrb.mxu0 %v1401_v5  ;;  %925 = vmatpush.bf16.msrb.mxu2 %v1402_v2 }
  0x2e   : > { %1375 = vmatmul.msk.bf16.vlgmr.msra.gmra.mxu3 %vm617_vm2, %v634_v15  ;;  %737 = vrot.lane.b32.xlu0 %v1451_v16, %s1614_s18 }
  0x2f   : > { %945 = vmatpush.bf16.msrb.mxu3 %v1404_v6 }
  0x30   : > { %810 = vmatpush.bf16.msrb.mxu1 %v1403_v8 }
  0x31   : > { %1061 = vmatpush.bf16.msra.mxu0 %v1402_v2  ;;  %926 = vmatpush.bf16.msrb.mxu2 %v1401_v5 }
  0x33   : > { %946 = vmatpush.bf16.msrb.mxu3 %v1403_v8 }
  0x34   : > { %1081 = vmatpush.bf16.msra.mxu1 %v1404_v6 }
  0x35   : > { %1062 = vmatpush.bf16.msra.mxu0 %v1401_v5 }
  0x38   : > { %1082 = vmatpush.bf16.msra.mxu1 %v1403_v8 }
  0x98   : > { %v1775_v21 = vpop.permute.xlu0 %686 }
  0xa0   : > { %v1779_v29 = vpop.permute.xlu0 %737 }
  0xa5   : > { %v555_v18 = vpop.f32.mrf.mxu0 }
  0xa6   : > { %v556_v19 = vadd.f32 %v1452_v17, %v555_v18 }
  0xa8   : > { %560 = vst.msk [vmem:[#allocation4] sm:$0xff] %vm559_vm3, %v556_v19  ;;  %v587_v22 = vpop.f32.mrf.mxu1 }
  0xa9   : > { %v588_v23 = vadd.f32 %v1453_v20, %v587_v22 }
  0xab   : > { %591 = vst.msk [vmem:[#allocation5] sm:$0xff] %vm559_vm3, %v588_v23 }
  0xad   : > { %v557_v24 = vpop.f32.mrf.mxu0 }
  0xaf   : > { %v630_v25 = vpop.f32.mrf.mxu2  ;;  %v663_v33 = vld [vmem:[#allocation4] sm:$0x3] }
  0xb0   : > { %v689_v26 = vadd.f32 %v1775_v21, %v630_v25  ;;  %v589_v28 = vpop.f32.mrf.mxu1  ;;  %v664_v34 = vadd.f32 %v663_v33, %v630_v25 }
  0xb1   : > { %v659_v27 = vpop.f32.mrf.mxu3 }
  0xb2   : > { %691 = vrot.lane.b32.xlu1 %v689_v26, %s1614_s18  ;;  %v740_v30 = vadd.f32 %v1779_v29, %v659_v27  ;;  %v1376_v35 = vmul.f32 -1.442695, %v664_v34  ;;  %v714_v36 = vld [vmem:[#allocation5 + $0x6] sm:$0x3] }
  0xb3   : > { %v715_v37 = vadd.f32 %v714_v36, %v659_v27 }
  0xb4   : > { %1454 = vpow2.f32 %v1376_v35 }
  0xb5   : > { %v1377_v38 = vmul.f32 -1.442695, %v715_v37  ;;  %v817_v37 = vld [vmem:[#allocation4 + $0x2] sm:$0x3] }
  0xb7   : > { %v632_v31 = vpop.f32.mrf.mxu2  ;;  %1456 = vpow2.f32 %v1377_v38 }
  0xb9   : > { %v661_v32 = vpop.f32.mrf.mxu3 }
  0xba   : > { %742 = vrot.lane.b32.xlu1 %v740_v30, %s1614_s18  ;;  %v1455_v39 = vpop.eup %1454 }
  0xbb   : > { %v668_v40 = vadd.f32 1.0, %v1455_v39 }
  0xbd   : > { %1458 = vrcp.f32 %v668_v40  ;;  %v1457_v41 = vpop.eup %1456  ;;  %v680_v51 = vand.u32 2147483648, %v668_v40  ;;  %vm674_vm5 = vweird.f32 %v668_v40  ;;  %v678_v52 = vand.u32 2147483647, %v668_v40 }
  0xbe   : > { %v719_v42 = vadd.f32 1.0, %v1457_v41 }
  0xbf   : > { %v681_v55 = vor.u32 1.1754944e-38, %v680_v51  ;;  %vm679_vm7 = vcmp.eq.f32.partialorder %v678_v52, 8.507059e+37 }
  0xc0   : > { %1460 = vrcp.f32 %v719_v42  ;;  %vm725_vm8 = vweird.f32 %v719_v42  ;;  %v731_v58 = vand.u32 2147483648, %v719_v42  ;;  %v729_v61 = vand.u32 2147483647, %v719_v42 }
  0xc2   : > { %708 = vrot.lane.b32.xlu1 %v602_v7, %s1615_s14  ;;  %v732_v62 = vor.u32 1.1754944e-38, %v731_v58  ;;  %vm730_vm11 = vcmp.eq.f32.partialorder %v729_v61, 8.507059e+37 }
  0xc3   : > { %v1459_v43 = vpop.eup %1458 }
  0xc4   : > { %v670_v44 = vmul.f32 %v1459_v43, %v668_v40  ;;  %vm675_vm4 = vweird.f32 %v1459_v43 }
  0xc5   : > { %vm676_vm6 = vmor %vm674_vm5, %vm675_vm4 }
  0xc6   : > { %v671_v45 = vsub.f32 1.0, %v670_v44  ;;  %v1461_v46 = vpop.eup %1460 }
  0xc7   : > { %v721_v48 = vmul.f32 %v1461_v46, %v719_v42  ;;  %vm726_vm9 = vweird.f32 %v1461_v46 }
  0xc8   : > { %v672_v47 = vmul.f32 %v1459_v43, %v671_v45  ;;  %vm727_vm10 = vmor %vm725_vm8, %vm726_vm9 }
  0xc9   : > { %v722_v50 = vsub.f32 1.0, %v721_v48 }
  0xca   : > { %v673_v49 = vadd.f32 %v1459_v43, %v672_v47 }
  0xcb   : > { %v723_v54 = vmul.f32 %v1461_v46, %v722_v50 }
  0xcc   : > { %v677_v53 = vsel %vm676_vm6, %v1459_v43, %v673_v49 }
  0xcd   : > { %v682_v57 = vsel %vm679_vm7, %v681_v55, %v677_v53  ;;  %v724_v60 = vadd.f32 %v1461_v46, %v723_v54 }
  0xce   : > { %v701_v11 = vsub.f32 1.0, %v682_v57 }
  0xcf   : > { %v728_v63 = vsel %vm727_vm10, %v1461_v46, %v724_v60 }
  0xd0   : > { %v733_v1 = vsel %vm730_vm11, %v732_v62, %v728_v63 }
  0xd1   : > { %v752_v18 = vsub.f32 1.0, %v733_v1 }
 0x124   : > { %v692_v56 = vpop.permute.xlu1 %691 }
 0x125   : > { %v694_v59 = vmul.f32 %v692_v56, %v682_v57 }
 0x127   : > { %696 = vrot.lane.b32.xlu2 %v694_v59, %s1614_s18 }
 0x12c   : > { %v743_v0 = vpop.permute.xlu1 %742 }
 0x12d   : > { %v745_v2 = vmul.f32 %v743_v0, %v733_v1 }
 0x12f   : > { %747 = vrot.lane.b32.xlu2 %v745_v2, %s1614_s18 }
 0x134   : > { %v709_v10 = vpop.permute.xlu1 %708 }
 0x135   : > { %v711_v13 = vmul.f32 %v709_v10, %v682_v57 }
 0x181   : > { %v697_v3 = vpop.permute.xlu2 %696 }
 0x182   : > { %v699_v4 = vadd.f32 %v697_v3, %v663_v33  ;;  %v859_v33 = vld [vmem:[#allocation5 + $0x4] sm:$0x3] }
 0x184   : > { %1462 = vtanh.f32 %v699_v4 }
 0x189   : > { %v748_v5 = vpop.permute.xlu2 %747 }
 0x18a   : > { %v1463_v6 = vpop.eup %1462  ;;  %v750_v7 = vadd.f32 %v748_v5, %v714_v36 }
 0x18b   : > { %703 = vrot.lane.b32.xlu0 %v1463_v6, %s1616_s29 }
 0x18c   : > { %1464 = vtanh.f32 %v750_v7 }
 0x192   : > { %v1465_v8 = vpop.eup %1464 }
 0x193   : > { %759 = vrot.lane.b32.xlu0 %v1753_v9, %s1615_s14  ;;  %754 = vrot.lane.b32.xlu2 %v1465_v8, %s1616_s29 }
 0x1ed   : > { %v755_v17 = vpop.permute.xlu2 %754 }
 0x1ee   : > { %v757_v20 = vmul.f32 %v755_v17, %v752_v18 }
 0x1fd   : > { %v704_v12 = vpop.permute.xlu0 %703 }
 0x1fe   : > { %v706_v14 = vmul.f32 %v704_v12, %v701_v11 }
 0x200   : > { %v1790_v15 = vadd.f32 %v711_v13, %v706_v14 }
 0x202   : > { %v776_v16 = vpack.c.bf16 %v1790_v15, %v1790_v15 }
 0x204   : > { %778 = vrot.lane.b32.xlu1 %v776_v16, %s1616_s29 }
 0x205   : > { %v760_v19 = vpop.permute.xlu0 %759 }
 0x206   : > { %v762_v22 = vmul.f32 %v760_v19, %v733_v1 }
 0x208   : > { %v1795_v9 = vadd.f32 %v762_v22, %v757_v20 }
 0x20a   : > { %v796_v23 = vpack.c.bf16 %v1795_v9, %v1795_v9 }
 0x20c   : > { %798 = vrot.lane.b32.xlu2 %v796_v23, %s1616_s29 }
 0x266   : > { %v799_v24 = vpop.permute.xlu2 %798 }
 0x267   : > { %1380 = vmatmul.msk.bf16.vlgmr.msrb.gmra.mxu1 %vm617_vm2, %v799_v24 }
 0x276   : > { %v779_v25 = vpop.permute.xlu1 %778 }
 0x277   : > { %1379 = vmatmul.msk.bf16.vlgmr.msrb.gmra.mxu0 %vm617_vm2, %v779_v25 }
 0x2e4   : > { %v812_v26 = vpop.f32.mrf.mxu1 }
 0x2e5   : > { %v880_v27 = vadd.f32 %v812_v26, %v1779_v29  ;;  %v860_v34 = vadd.f32 %v859_v33, %v812_v26 }
 0x2e7   : > { %882 = vrot.lane.b32.xlu1 %v880_v27, %s1614_s18  ;;  %v1382_v35 = vmul.f32 -1.442695, %v860_v34 }
 0x2e9   : > { %1466 = vpow2.f32 %v1382_v35 }
 0x2ec   : > { %v814_v28 = vpop.f32.mrf.mxu1 }
 0x2ef   : > { %v1467_v36 = vpop.eup %1466 }
 0x2f0   : > { %v864_v39 = vadd.f32 1.0, %v1467_v36  ;;  %v995_v36 = vld [vmem:[#allocation5 + $0x2] sm:$0x3] }
 0x2f2   : > { %1468 = vrcp.f32 %v864_v39  ;;  %v876_v49 = vand.u32 2147483648, %v864_v39  ;;  %vm870_vm13 = vweird.f32 %v864_v39  ;;  %v874_v50 = vand.u32 2147483647, %v864_v39 }
 0x2f4   : > { %v792_v30 = vpop.f32.mrf.mxu0  ;;  %v877_v53 = vor.u32 1.1754944e-38, %v876_v49  ;;  %vm875_vm15 = vcmp.eq.f32.partialorder %v874_v50, 8.507059e+37 }
 0x2f5   : > { %v838_v31 = vadd.f32 %v792_v30, %v1775_v21  ;;  %v818_v38 = vadd.f32 %v817_v37, %v792_v30 }
 0x2f7   : > { %840 = vrot.lane.b32.xlu0 %v838_v31, %s1614_s18  ;;  %v1381_v40 = vmul.f32 -1.442695, %v818_v38 }
 0x2f8   : > { %v1469_v41 = vpop.eup %1468 }
 0x2f9   : > { %1470 = vpow2.f32 %v1381_v40  ;;  %v866_v43 = vmul.f32 %v1469_v41, %v864_v39  ;;  %vm871_vm12 = vweird.f32 %v1469_v41 }
 0x2fa   : > { %vm872_vm14 = vmor %vm870_vm13, %vm871_vm12 }
 0x2fb   : > { %v867_v45 = vsub.f32 1.0, %v866_v43 }
 0x2fc   : > { %v794_v32 = vpop.f32.mrf.mxu0 }
 0x2fd   : > { %v868_v46 = vmul.f32 %v1469_v41, %v867_v45 }
 0x2ff   : > { %v1471_v42 = vpop.eup %1470  ;;  %v869_v47 = vadd.f32 %v1469_v41, %v868_v46 }
 0x300   : > { %v822_v44 = vadd.f32 1.0, %v1471_v42 }
 0x301   : > { %v873_v51 = vsel %vm872_vm14, %v1469_v41, %v869_v47 }
 0x302   : > { %1472 = vrcp.f32 %v822_v44  ;;  %v878_v55 = vsel %vm875_vm15, %v877_v53, %v873_v51  ;;  %v834_v60 = vand.u32 2147483648, %v822_v44  ;;  %vm828_vm1 = vweird.f32 %v822_v44 }
 0x303   : > { %v832_v61 = vand.u32 2147483647, %v822_v44  ;;  %v892_v10 = vsub.f32 1.0, %v878_v55  ;;  %v898_v12 = vmul.f32 %v878_v55, %v1795_v9 }
 0x304   : > { %v835_v63 = vor.u32 1.1754944e-38, %v834_v60 }
 0x305   : > { %vm833_vm4 = vcmp.eq.f32.partialorder %v832_v61, 8.507059e+37 }
 0x308   : > { %v1473_v48 = vpop.eup %1472 }
 0x309   : > { %v824_v52 = vmul.f32 %v1473_v48, %v822_v44  ;;  %vm829_vm0 = vweird.f32 %v1473_v48 }
 0x30a   : > { %vm830_vm3 = vmor %vm828_vm1, %vm829_vm0 }
 0x30b   : > { %v825_v57 = vsub.f32 1.0, %v824_v52 }
 0x30d   : > { %v826_v58 = vmul.f32 %v1473_v48, %v825_v57 }
 0x30f   : > { %v827_v59 = vadd.f32 %v1473_v48, %v826_v58 }
 0x311   : > { %v831_v62 = vsel %vm830_vm3, %v1473_v48, %v827_v59 }
 0x312   : > { %v836_v0 = vsel %vm833_vm4, %v835_v63, %v831_v62 }
 0x313   : > { %v850_v17 = vsub.f32 1.0, %v836_v0  ;;  %v856_v19 = vmul.f32 %v836_v0, %v1790_v15 }
 0x359   : > { %v883_v54 = vpop.permute.xlu1 %882 }
 0x35a   : > { %v885_v56 = vmul.f32 %v883_v54, %v878_v55 }
 0x35c   : > { %887 = vrot.lane.b32.xlu0 %v885_v56, %s1614_s18 }
 0x369   : > { %v841_v1 = vpop.permute.xlu0 %840 }
 0x36a   : > { %v843_v2 = vmul.f32 %v841_v1, %v836_v0 }
 0x36c   : > { %845 = vrot.lane.b32.xlu2 %v843_v2, %s1614_s18 }
 0x3c6   : > { %v846_v3 = vpop.permute.xlu2 %845 }
 0x3c7   : > { %v848_v4 = vadd.f32 %v846_v3, %v817_v37 }
 0x3c9   : > { %1474 = vtanh.f32 %v848_v4 }
 0x3ce   : > { %v888_v5 = vpop.permute.xlu0 %887 }
 0x3cf   : > { %v1475_v6 = vpop.eup %1474  ;;  %v890_v7 = vadd.f32 %v888_v5, %v859_v33  ;;  %v953_v33 = vld [vmem:[#allocation4 + $0x4] sm:$0x3] }
 0x3d0   : > { %852 = vrot.lane.b32.xlu1 %v1475_v6, %s1616_s29 }
 0x3d1   : > { %1476 = vtanh.f32 %v890_v7 }
 0x3d7   : > { %v1477_v8 = vpop.eup %1476 }
 0x3d8   : > { %894 = vrot.lane.b32.xlu2 %v1477_v8, %s1616_s29 }
 0x432   : > { %v895_v11 = vpop.permute.xlu2 %894 }
 0x433   : > { %v897_v13 = vmul.f32 %v895_v11, %v892_v10 }
 0x435   : > { %v1811_v14 = vadd.f32 %v898_v12, %v897_v13 }
 0x437   : > { %v932_v16 = vpack.c.bf16 %v1811_v14, %v1811_v14 }
 0x439   : > { %934 = vrot.lane.b32.xlu1 %v932_v16, %s1616_s29 }
 0x442   : > { %v853_v18 = vpop.permute.xlu1 %852 }
 0x443   : > { %v855_v20 = vmul.f32 %v853_v18, %v850_v17 }
 0x445   : > { %v1817_v22 = vadd.f32 %v856_v19, %v855_v20 }
 0x447   : > { %v912_v23 = vpack.c.bf16 %v1817_v22, %v1817_v22 }
 0x449   : > { %914 = vrot.lane.b32.xlu0 %v912_v23, %s1616_s29 }
 0x4ab   : > { %v935_v24 = vpop.permute.xlu1 %934 }
 0x4ac   : > { %1386 = vmatmul.msk.bf16.vlgmr.msrb.gmra.mxu3 %vm617_vm2, %v935_v24 }
 0x4bb   : > { %v915_v25 = vpop.permute.xlu0 %914 }
 0x4bc   : > { %1385 = vmatmul.msk.bf16.vlgmr.msrb.gmra.mxu2 %vm617_vm2, %v915_v25 }
 0x52f   : > { %v948_v26 = vpop.f32.mrf.mxu3 }
 0x530   : > { %v1016_v27 = vadd.f32 %v948_v26, %v1779_v29  ;;  %v996_v37 = vadd.f32 %v995_v36, %v948_v26 }
 0x532   : > { %1018 = vrot.lane.b32.xlu0 %v1016_v27, %s1614_s18  ;;  %v1388_v38 = vmul.f32 -1.442695, %v996_v37 }
 0x537   : > { %v950_v28 = vpop.f32.mrf.mxu3 }
 0x53f   : > { %v928_v30 = vpop.f32.mrf.mxu2 }
 0x540   : > { %v974_v31 = vadd.f32 %v928_v30, %v1775_v21  ;;  %v954_v34 = vadd.f32 %v953_v33, %v928_v30 }
 0x542   : > { %976 = vrot.lane.b32.xlu2 %v974_v31, %s1614_s18  ;;  %v1387_v35 = vmul.f32 -1.442695, %v954_v34 }
 0x544   : > { %1478 = vpow2.f32 %v1387_v35  ;;  %v1130_v35 = vld [vmem:[#allocation5] sm:$0x3] }
 0x545   : > { %1480 = vpow2.f32 %v1388_v38 }
 0x547   : > { %v930_v32 = vpop.f32.mrf.mxu2 }
 0x54a   : > { %v1479_v39 = vpop.eup %1478 }
 0x54b   : > { %v958_v40 = vadd.f32 1.0, %v1479_v39  ;;  %v1481_v41 = vpop.eup %1480  ;;  %v1089_v39 = vld [vmem:[#allocation4 + $0x6] sm:$0x3] }
 0x54c   : > { %v1000_v42 = vadd.f32 1.0, %v1481_v41 }
 0x54d   : > { %1482 = vrcp.f32 %v958_v40  ;;  %v970_v51 = vand.u32 2147483648, %v958_v40  ;;  %vm964_vm6 = vweird.f32 %v958_v40  ;;  %v968_v52 = vand.u32 2147483647, %v958_v40 }
 0x54e   : > { %1484 = vrcp.f32 %v1000_v42  ;;  %v1012_v60 = vand.u32 2147483648, %v1000_v42  ;;  %vm1006_vm10 = vweird.f32 %v1000_v42  ;;  %v1010_v61 = vand.u32 2147483647, %v1000_v42 }
 0x54f   : > { %v971_v55 = vor.u32 1.1754944e-38, %v970_v51  ;;  %vm969_vm8 = vcmp.eq.f32.partialorder %v968_v52, 8.507059e+37 }
 0x550   : > { %v1013_v63 = vor.u32 1.1754944e-38, %v1012_v60  ;;  %vm1011_vm12 = vcmp.eq.f32.partialorder %v1010_v61, 8.507059e+37 }
 0x553   : > { %v1483_v43 = vpop.eup %1482 }
 0x554   : > { %v960_v44 = vmul.f32 %v1483_v43, %v958_v40  ;;  %v1485_v46 = vpop.eup %1484  ;;  %vm965_vm5 = vweird.f32 %v1483_v43 }
 0x555   : > { %v1002_v48 = vmul.f32 %v1485_v46, %v1000_v42  ;;  %vm966_vm7 = vmor %vm964_vm6, %vm965_vm5  ;;  %vm1007_vm9 = vweird.f32 %v1485_v46  ;;  %vm768_vm5 = vcmask 254976  }
 0x556   : > { %v961_v45 = vsub.f32 1.0, %v960_v44  ;;  %vm1008_vm11 = vmor %vm1006_vm10, %vm1007_vm9 }
 0x557   : > { %v1003_v50 = vsub.f32 1.0, %v1002_v48 }
 0x558   : > { %v962_v47 = vmul.f32 %v1483_v43, %v961_v45 }
 0x559   : > { %v1004_v54 = vmul.f32 %v1485_v46, %v1003_v50 }
 0x55a   : > { %v963_v49 = vadd.f32 %v1483_v43, %v962_v47 }
 0x55b   : > { %v1005_v59 = vadd.f32 %v1485_v46, %v1004_v54 }
 0x55c   : > { %v967_v53 = vsel %vm966_vm7, %v1483_v43, %v963_v49 }
 0x55d   : > { %v972_v56 = vsel %vm969_vm8, %v971_v55, %v967_v53  ;;  %v1009_v62 = vsel %vm1008_vm11, %v1485_v46, %v1005_v59 }
 0x55e   : > { %v1014_v1 = vsel %vm1011_vm12, %v1013_v63, %v1009_v62  ;;  %v986_v18 = vsub.f32 1.0, %v972_v56  ;;  %v992_v20 = vmul.f32 %v972_v56, %v1817_v22 }
 0x55f   : > { %v1028_v10 = vsub.f32 1.0, %v1014_v1  ;;  %v1034_v12 = vmul.f32 %v1014_v1, %v1811_v14 }
 0x59c   : > { %v977_v57 = vpop.permute.xlu2 %976 }
 0x59d   : > { %v979_v58 = vmul.f32 %v977_v57, %v972_v56 }
 0x59f   : > { %981 = vrot.lane.b32.xlu1 %v979_v58, %s1614_s18 }
 0x5a4   : > { %v1019_v0 = vpop.permute.xlu0 %1018 }
 0x5a5   : > { %v1021_v2 = vmul.f32 %v1019_v0, %v1014_v1 }
 0x5a7   : > { %1023 = vrot.lane.b32.xlu2 %v1021_v2, %s1614_s18 }
 0x601   : > { %v1024_v3 = vpop.permute.xlu2 %1023 }
 0x602   : > { %v1026_v4 = vadd.f32 %v1024_v3, %v995_v36 }
 0x604   : > { %1486 = vtanh.f32 %v1026_v4 }
 0x60a   : > { %v1487_v5 = vpop.eup %1486 }
 0x60b   : > { %1030 = vrot.lane.b32.xlu1 %v1487_v5, %s1616_s29 }
 0x611   : > { %v982_v6 = vpop.permute.xlu1 %981 }
 0x612   : > { %v984_v7 = vadd.f32 %v982_v6, %v953_v33 }
 0x614   : > { %1488 = vtanh.f32 %v984_v7 }
 0x61a   : > { %v1489_v8 = vpop.eup %1488 }
 0x61b   : > { %988 = vrot.lane.b32.xlu0 %v1489_v8, %s1616_s29 }
 0x67d   : > { %v1031_v11 = vpop.permute.xlu1 %1030 }
 0x67e   : > { %v1033_v13 = vmul.f32 %v1031_v11, %v1028_v10 }
 0x680   : > { %v1833_v16 = vadd.f32 %v1034_v12, %v1033_v13 }
 0x682   : > { %v1068_v17 = vpack.c.bf16 %v1833_v16, %v1833_v16 }
 0x684   : > { %1070 = vrot.lane.b32.xlu0 %v1068_v17, %s1616_s29 }
 0x68d   : > { %v989_v19 = vpop.permute.xlu0 %988 }
 0x68e   : > { %v991_v23 = vmul.f32 %v989_v19, %v986_v18 }
 0x690   : > { %v1839_v24 = vadd.f32 %v992_v20, %v991_v23 }
 0x692   : > { %v1048_v25 = vpack.c.bf16 %v1839_v24, %v1839_v24 }
 0x694   : > { %1050 = vrot.lane.b32.xlu2 %v1048_v25, %s1616_s29 }
 0x6ee   : > { %v1051_v26 = vpop.permute.xlu2 %1050 }
 0x6ef   : > { %1391 = vmatmul.msk.bf16.vlgmr.msra.gmra.mxu0 %vm617_vm2, %v1051_v26 }
 0x6f6   : > { %v1071_v27 = vpop.permute.xlu0 %1070 }
 0x6f7   : > { %1392 = vmatmul.msk.bf16.vlgmr.msra.gmra.mxu1 %vm617_vm2, %v1071_v27 }
 0x76c   : > { %v1064_v28 = vpop.f32.mrf.mxu0 }
 0x76d   : > { %v1110_v30 = vadd.f32 %v1064_v28, %v1775_v21  ;;  %v1090_v40 = vadd.f32 %v1089_v39, %v1064_v28 }
 0x76f   : > { %1112 = vrot.lane.b32.xlu1 %v1110_v30, %s1614_s18  ;;  %v1393_v42 = vmul.f32 -1.442695, %v1090_v40 }
 0x774   : > { %v1066_v31 = vpop.f32.mrf.mxu0  ;;  %v1084_v32 = vpop.f32.mrf.mxu1 }
 0x775   : > { %v1151_v33 = vadd.f32 %v1084_v32, %v1779_v29  ;;  %v1131_v36 = vadd.f32 %v1130_v35, %v1084_v32 }
 0x777   : > { %1153 = vrot.lane.b32.xlu2 %v1151_v33, %s1614_s18  ;;  %v1394_v37 = vmul.f32 -1.442695, %v1131_v36 }
 0x779   : > { %1490 = vpow2.f32 %v1394_v37 }
 0x77c   : > { %v1086_v34 = vpop.f32.mrf.mxu1 }
 0x77f   : > { %v1491_v38 = vpop.eup %1490 }
 0x780   : > { %v1135_v41 = vadd.f32 1.0, %v1491_v38 }
 0x782   : > { %1492 = vrcp.f32 %v1135_v41  ;;  %v1147_v49 = vand.u32 2147483648, %v1135_v41  ;;  %vm1141_vm13 = vweird.f32 %v1135_v41  ;;  %v1145_v50 = vand.u32 2147483647, %v1135_v41 }
 0x783   : > { %1494 = vpow2.f32 %v1393_v42 }
 0x784   : > { %v1148_v53 = vor.u32 1.1754944e-38, %v1147_v49  ;;  %vm1146_vm15 = vcmp.eq.f32.partialorder %v1145_v50, 8.507059e+37 }
 0x788   : > { %v1493_v21 = vpop.eup %1492 }
 0x789   : > { %v1495_v43 = vpop.eup %1494  ;;  %v1137_v44 = vmul.f32 %v1493_v21, %v1135_v41  ;;  %vm1142_vm2 = vweird.f32 %v1493_v21 }
 0x78a   : > { %v1094_v45 = vadd.f32 1.0, %v1495_v43  ;;  %vm1143_vm14 = vmor %vm1141_vm13, %vm1142_vm2 }
 0x78b   : > { %v1138_v46 = vsub.f32 1.0, %v1137_v44 }
 0x78c   : > { %1496 = vrcp.f32 %v1094_v45  ;;  %v1106_v60 = vand.u32 2147483648, %v1094_v45  ;;  %vm1100_vm1 = vweird.f32 %v1094_v45  ;;  %v1104_v61 = vand.u32 2147483647, %v1094_v45 }
 0x78d   : > { %v1139_v29 = vmul.f32 %v1493_v21, %v1138_v46 }
 0x78e   : > { %v1107_v63 = vor.u32 1.1754944e-38, %v1106_v60  ;;  %vm1105_vm4 = vcmp.eq.f32.partialorder %v1104_v61, 8.507059e+37 }
 0x78f   : > { %v1140_v47 = vadd.f32 %v1493_v21, %v1139_v29 }
 0x791   : > { %v1144_v51 = vsel %vm1143_vm14, %v1493_v21, %v1140_v47 }
 0x792   : > { %v1497_v48 = vpop.eup %1496  ;;  %v1149_v54 = vsel %vm1146_vm15, %v1148_v53, %v1144_v51 }
 0x793   : > { %v1096_v52 = vmul.f32 %v1497_v48, %v1094_v45  ;;  %vm1101_vm0 = vweird.f32 %v1497_v48  ;;  %v1163_v17 = vsub.f32 1.0, %v1149_v54 }
 0x794   : > { %vm1102_vm3 = vmor %vm1100_vm1, %vm1101_vm0 }
 0x795   : > { %v1097_v57 = vsub.f32 1.0, %v1096_v52 }
 0x797   : > { %v1098_v58 = vmul.f32 %v1497_v48, %v1097_v57 }
 0x799   : > { %v1099_v59 = vadd.f32 %v1497_v48, %v1098_v58 }
 0x79b   : > { %v1103_v62 = vsel %vm1102_vm3, %v1497_v48, %v1099_v59 }
 0x79c   : > { %v1108_v1 = vsel %vm1105_vm4, %v1107_v63, %v1103_v62 }
 0x79d   : > { %v1122_v10 = vsub.f32 1.0, %v1108_v1 }
 0x7d1   : > { %v1154_v55 = vpop.permute.xlu2 %1153 }
 0x7d2   : > { %v1156_v56 = vmul.f32 %v1154_v55, %v1149_v54 }
 0x7d4   : > { %1158 = vrot.lane.b32.xlu1 %v1156_v56, %s1614_s18 }
 0x7dc   : > { %765 = vrot.lane.b32.xlu1 %v1790_v15, %s1616_s29 }
 0x7e1   : > { %v1113_v0 = vpop.permute.xlu1 %1112 }
 0x7e2   : > { %v1115_v2 = vmul.f32 %v1113_v0, %v1108_v1 }
 0x7e4   : > { %1117 = vrot.lane.b32.xlu0 %v1115_v2, %s1614_s18  ;;  %907 = vrot.lane.b32.xlu1 %v1811_v14, %s1616_s29 }
 0x846   : > { %v1159_v3 = vpop.permute.xlu1 %1158 }
 0x847   : > { %v1161_v4 = vadd.f32 %v1159_v3, %v1130_v35 }
 0x849   : > { %1498 = vtanh.f32 %v1161_v4 }
 0x84e   : > { %v766_v15 = vpop.permute.xlu1 %765 }
 0x84f   : > { %v1499_v5 = vpop.eup %1498  ;;  %769 = vst.msk [vmem:[%s1738_s27] sm:$0x3] %vm768_vm5, %v766_v15 }
 0x850   : > { %1165 = vrot.lane.b32.xlu0 %v1499_v5, %s1616_s29 }
 0x856   : > { %v1118_v6 = vpop.permute.xlu0 %1117  ;;  %v908_v7 = vpop.permute.xlu1 %907 }
 0x857   : > { %v1120_v8 = vadd.f32 %v1118_v6, %v1089_v39  ;;  %1384 = vst.msk [vmem:[%s1743_s2 + $0x4] sm:$0x3] %vm768_vm5, %v908_v7 }
 0x858   : > { %901 = vrot.lane.b32.xlu0 %v1817_v22, %s1616_s29  ;;  %v1128_v22 = vmul.f32 %v1108_v1, %v1839_v24 }
 0x859   : > { %1500 = vtanh.f32 %v1120_v8 }
 0x85f   : > { %v1501_v14 = vpop.eup %1500 }
 0x860   : > { %1124 = vrot.lane.b32.xlu2 %v1501_v14, %s1616_s29  ;;  %1043 = vrot.lane.b32.xlu0 %v1833_v16, %s1616_s29 }
 0x868   : > { %771 = vrot.lane.b32.xlu2 %v1795_v9, %s1616_s29  ;;  %v1169_v9 = vmul.f32 %v1149_v54, %v1833_v16 }
 0x870   : > { %1037 = vrot.lane.b32.xlu2 %v1839_v24, %s1616_s29 }
 0x8ba   : > { %v1125_v11 = vpop.permute.xlu2 %1124 }
 0x8bb   : > { %v1127_v12 = vmul.f32 %v1125_v11, %v1122_v10 }
 0x8bd   : > { %v1129_v13 = vadd.f32 %v1128_v22, %v1127_v12 }
 0x8bf   : > { %1172 = vrot.lane.b32.xlu1 %v1129_v13, %s1616_s29 }
 0x8c2   : > { %v1166_v18 = vpop.permute.xlu0 %1165  ;;  %v772_v19 = vpop.permute.xlu2 %771 }
 0x8c3   : > { %v1168_v20 = vmul.f32 %v1166_v18, %v1163_v17  ;;  %1378 = vst.msk [vmem:[%s1743_s2 + $0x6] sm:$0x3] %vm768_vm5, %v772_v19 }
 0x8c5   : > { %v1170_v23 = vadd.f32 %v1169_v9, %v1168_v20 }
 0x8c7   : > { %1178 = vrot.lane.b32.xlu2 %v1170_v23, %s1616_s29 }
 0x8ca   : > { %v902_v25 = vpop.permute.xlu0 %901  ;;  %v1038_v24 = vpop.permute.xlu2 %1037 }
 0x8cb   : > { %1383 = vst.msk [vmem:[%s1738_s27 + $0x2] sm:$0x3] %vm768_vm5, %v902_v25 }
 0x8cc   : > { %1389 = vst.msk [vmem:[%s1738_s27 + $0x4] sm:$0x3] %vm768_vm5, %v1038_v24 }
 0x8d2   : > { %v1044_v26 = vpop.permute.xlu0 %1043 }
 0x8d3   : > { %1390 = vst.msk [vmem:[%s1743_s2 + $0x2] sm:$0x3] %vm768_vm5, %v1044_v26 }
 0x921   : > { %v1179_v27 = vpop.permute.xlu2 %1178 }
 0x922   : > { %1181 = vst.msk [vmem:[%s1743_s2] sm:$0x3] %vm768_vm5, %v1179_v27 }
 0x923   : > { %1183 = vst.msk [vmem:[#allocation3] sm:$0x3] %vm768_vm5, %v1179_v27 }
 0x92f   : > { %1187 = sbr.rel (%p1396_p9) target bundleno = 2358 (0x936), region = 80 }
 0x931   : > { %v1173_v16 = vpop.permute.xlu1 %1172 }
 0x932   : > { %1395 = vst.msk [vmem:[%s1738_s27 + $0x6] sm:$0x3] %vm768_vm5, %v1173_v16 }
 0x933   : > { %1182 = vst.msk [vmem:[#allocation2] sm:$0x3] %vm768_vm5, %v1173_v16 }
 0x934   : > { %1188 = vst.msk [vmem:[%s1912_s12] sm:$0x3] %vm768_vm5, %v1173_v16 }
 0x935   : > { %1189 = vst.msk [vmem:[%s1913_s13] sm:$0x3] %vm768_vm5, %v1179_v27 }
 0x936 PF: > { %s26_s25 = sadd.s32 1, %s1606_s25  }
 0x937   : > { %p23_p10 = scmp.ge.s32.totalorder %s26_s25, 4  }
 0x939   :  { %25 = sbr.rel (!%p23_p10) target bundleno = 4 (0x4), region = 154 }
 0x93e   :  { %1238 = vsyncpa [#allocation7], 1 }
 0x93f   :  { %1240 = vsyncpa [#allocation7 + $0x1], 1 }
 0x940   :  { %1241 = vsyncpa [#allocation9], 1 }

</bundles_post_ra>
